<compile_context>
chip_gen: v6e
topology: v6e:2x2x1
jax: 0.10.0
libtpu: 0.0.40
codegen_flags: <defaults>
</compile_context>

<pallas_src>
import functools

import numpy as np
import jax
import jax.numpy as jnp
from jax import lax
from jax.experimental import pallas as pl
from jax.experimental.pallas import tpu as pltpu


# ---------------------------------------------------------------------------
# buffers (same math as construct_linspaced_frequencies)
# ---------------------------------------------------------------------------
def construct_linspaced_frequencies(num_freqs, min_period_len, max_period_len):
    freqs = 2 * np.pi / 2 ** np.linspace(
        np.log2(min_period_len), np.log2(max_period_len), num_freqs
    )
    freqs = freqs[::-1].copy().astype(np.float32)[None, :]  # (1, F)
    return freqs


# ---------------------------------------------------------------------------
# fused / transposed weights (done once at "init" time)
#   wl_t : (4F, D)  rows = [periods(F) ; phases*scales(F) ; aligners(2F)], fed mu_left
#   wa_t : (2F, D)  aligner weights, fed mu_right
# ---------------------------------------------------------------------------
def build_fused_weights(w_periods, w_phases, w_aligners, phase_scales):
    wl = jnp.concatenate(
        [w_periods, w_phases * phase_scales, w_aligners], axis=1)   # (D, 4F)
    return wl.T.astype(jnp.float32), w_aligners.T.astype(jnp.float32)


def _round_up(x, m):
    return ((x + m - 1) // m) * m


# ---------------------------------------------------------------------------
# Pallas kernel: 2 NT matmuls + tanh + sin/cos pos-emb + interpolation mix,
# all in (features, tile_m) lane-dense layout.
# ---------------------------------------------------------------------------
def aligned_time_encoder_kernel(mul_ref, mur_ref, sc_ref, wlt_ref, wat_ref,
                                freqs_ref, out_ref, *, F):
    # mul_ref / mur_ref : (TM, D)   motion_u_left / motion_u_right rows
    # sc_ref            : (4, TM)   rows = [t, t_left, t_right, interp_w]
    # wlt_ref           : (4F, D)   fused weight^T for mu_left
    # wat_ref           : (2F, D)   aligner weight^T for mu_right
    # freqs_ref         : (F, 1)
    # out_ref           : (2F, TM)  rows = [sin half ; cos half]
    nt_dims = (((1,), (1,)), ((), ()))  # contract over D (minor dim of both)

    zl = lax.dot_general(wlt_ref[...], mul_ref[...], dimension_numbers=nt_dims,
                         preferred_element_type=jnp.float32)        # (4F, TM)
    al_r = lax.dot_general(wat_ref[...], mur_ref[...], dimension_numbers=nt_dims,
                           preferred_element_type=jnp.float32)      # (2F, TM)

    periods = jnp.tanh(zl[0:F, :]) + 1.0                            # (F, TM)
    ph = zl[F:2 * F, :]                                             # phases*scales
    al_l = zl[2 * F:4 * F, :]                                       # (2F, TM)

    fp = freqs_ref[...] * periods                                   # (F, TM)

    sc = sc_ref[...]                                                # (4, TM)
    tt = sc[0:1, :]
    tl = sc[1:2, :]
    tr = sc[2:3, :]
    w = sc[3:4, :]
    omw = 1.0 - w

    raw = fp * tt + ph
    raw_l = fp * tl + ph
    raw_r = fp * tr + ph

    add = omw * al_l + w * al_r                                     # (2F, TM)

    out_ref[0:F, :] = (jnp.sin(raw)
                       - (omw * jnp.sin(raw_l) + w * jnp.sin(raw_r))
                       + add[0:F, :])
    out_ref[F:2 * F, :] = (jnp.cos(raw)
                           - (omw * jnp.cos(raw_l) + w * jnp.cos(raw_r))
                           + add[F:2 * F, :])


def aligned_time_encoder(
    t, motion_u_left, motion_u_right, interp_weights, t_left, t_right,
    wl_t, wa_t, freqs_col, *, tile_m=1024,
):
    B, N, D = motion_u_left.shape
    M = B * N
    F = freqs_col.shape[0]
    assert wl_t.shape == (4 * F, D)
    assert wa_t.shape == (2 * F, D)

    # ----- free reshapes only; no concat / pad over the big operands --------
    mu_l = motion_u_left.reshape(M, D).astype(jnp.float32)          # (M, D)
    mu_r = motion_u_right.reshape(M, D).astype(jnp.float32)         # (M, D)
    sc = jnp.stack(
        [t.reshape(M), t_left.reshape(M), t_right.reshape(M),
         interp_weights.reshape(M)],
        axis=0).astype(jnp.float32)                                  # (4, M)

    # ----- M-tile on the lane axis: multiple of 128; >=2 grid steps for v7x -
    tile_m = int(tile_m)
    tile_m = max(128, min(_round_up(tile_m, 128),
                          _round_up(pl.cdiv(M, 2), 128)))
    grid_m = pl.cdiv(M, tile_m)

    out_t = pl.pallas_call(
        functools.partial(aligned_time_encoder_kernel, F=F),
        out_shape=jax.ShapeDtypeStruct((2 * F, M), jnp.float32),
        grid_spec=pltpu.PrefetchScalarGridSpec(
            num_scalar_prefetch=0,
            grid=(grid_m,),
            in_specs=[
                pl.BlockSpec((tile_m, D), lambda i: (i, 0)),     # motion_u_left
                pl.BlockSpec((tile_m, D), lambda i: (i, 0)),     # motion_u_right
                pl.BlockSpec((4, tile_m), lambda i: (0, i)),     # scalar pack
                pl.BlockSpec((4 * F, D), lambda i: (0, 0)),      # fused W_left^T
                pl.BlockSpec((2 * F, D), lambda i: (0, 0)),      # aligner W^T
                pl.BlockSpec((F, 1), lambda i: (0, 0)),          # freqs column
            ],
            out_specs=pl.BlockSpec((2 * F, tile_m), lambda i: (0, i)),
        ),
        compiler_params=pltpu.CompilerParams(
            dimension_semantics=("parallel",),
        ),
    )(mu_l, mu_r, sc, wl_t, wa_t, freqs_col)

    return out_t.T                                                   # (M, 2F)


# ---------------------------------------------------------------------------
# pure-JAX reference (mirror of the PyTorch forward, unfused weights)
# ---------------------------------------------------------------------------
def reference(t, mu_l, mu_r, w, tl, tr, Wp, Wph, Wa, freqs, scales):
    B, N, D = mu_l.shape
    M = B * N
    mu_l = mu_l.reshape(M, D)
    mu_r = mu_r.reshape(M, D)
    periods = jnp.tanh(mu_l @ Wp) + 1.0
    phases = mu_l @ Wph
    al_l = mu_l @ Wa
    al_r = mu_r @ Wa
    tv = t.reshape(M, 1)
    tlv = tl.reshape(M, 1)
    trv = tr.reshape(M, 1)
    raw = freqs * periods * tv + phases * scales
    raw_l = freqs * periods * tlv + phases * scales
    raw_r = freqs * periods * trv + phases * scales
    pos = jnp.concatenate([jnp.sin(raw), jnp.cos(raw)], 1)
    pos_l = jnp.concatenate([jnp.sin(raw_l), jnp.cos(raw_l)], 1)
    pos_r = jnp.concatenate([jnp.sin(raw_r), jnp.cos(raw_r)], 1)
    wv = w.reshape(M, 1)
    rem = pos_l * (1 - wv) + pos_r * wv
    add = al_l * (1 - wv) + al_r * wv
    return pos - rem + add


if __name__ == "__main__":
    # small config: latent_dim=32, time_enc.dim=16, min/max period 16/1024
    latent_dim = 32
    F = 16
    min_period_len = 16
    max_period_len = 1024
    B, N = 2, 300          # M = 600 -> tile_m 384 -> grid of 2 (partial tail)

    freqs_np = construct_linspaced_frequencies(F, min_period_len, max_period_len)
    period_lens = 2 * np.pi / freqs_np
    phase_scales_np = (max_period_len / period_lens).astype(np.float32)

    freqs = jnp.asarray(freqs_np)                 # (1, F)
    phase_scales = jnp.asarray(phase_scales_np)   # (1, F)
    freqs_col = freqs.reshape(F, 1)               # (F, 1) for the kernel

    key = jax.random.PRNGKey(0)
    k = jax.random.split(key, 9)

    # FullyConnectedLayer: weight ~ N(0,1), runtime gain 1/sqrt(in), no bias.
    gain = 1.0 / np.sqrt(latent_dim)
    Wp = jax.random.normal(k[0], (latent_dim, F), jnp.float32) * gain
    Wph = jax.random.normal(k[1], (latent_dim, F), jnp.float32) * gain
    Wa = jax.random.normal(k[2], (latent_dim, 2 * F), jnp.float32) * gain

    motion_u_left = jax.random.normal(k[3], (B, N, latent_dim), jnp.float32)
    motion_u_right = jax.random.normal(k[4], (B, N, latent_dim), jnp.float32)
    t = jax.random.uniform(k[5], (B, N), jnp.float32) * 100.0
    t_left = t - jax.random.uniform(k[6], (B, N), jnp.float32) * 4.0
    t_right = t + jax.random.uniform(k[7], (B, N), jnp.float32) * 4.0
    interp_weights = jax.random.uniform(k[8], (B, N, 1), jnp.float32)

    # done once at "init" time (equivalent of module construction)
    wl_t, wa_t = build_fused_weights(Wp, Wph, Wa, phase_scales)

    out = aligned_time_encoder(
        t, motion_u_left, motion_u_right, interp_weights, t_left, t_right,
        wl_t, wa_t, freqs_col,
    )
    out = jax.block_until_ready(out)

    ref = reference(t, motion_u_left, motion_u_right, interp_weights,
                    t_left, t_right, Wp, Wph, Wa, freqs, phase_scales)
    assert out.shape == (B * N, 2 * F)
    np.testing.assert_allclose(np.asarray(out), np.asarray(ref),
                               rtol=5e-4, atol=5e-4)
    print("KERNEL_OK")
</pallas_src>

<mosaic_0001>
module attributes {stable_mosaic.version = 11 : i64} {
  func.func @aligned_time_encoder_kernel(%arg0: i32, %arg1: memref<384x32xf32, #tpu.memory_space<vmem>>, %arg2: memref<384x32xf32, #tpu.memory_space<vmem>>, %arg3: memref<4x384xf32, #tpu.memory_space<vmem>>, %arg4: memref<64x32xf32, #tpu.memory_space<vmem>>, %arg5: memref<32x32xf32, #tpu.memory_space<vmem>>, %arg6: memref<16x1xf32, #tpu.memory_space<vmem>>, %arg7: memref<32x384xf32, #tpu.memory_space<vmem>>) attributes {dimension_semantics = [#tpu.dimension_semantics<parallel>], iteration_bounds = array<i64: 2>, scalar_prefetch = 0 : i64, scratch_operands = 0 : i64, tpu.core_type = #tpu.core_type<tc>, window_params = [{transform_indices = @transform_0, window_bounds = array<i64: 384, 32>}, {transform_indices = @transform_1, window_bounds = array<i64: 384, 32>}, {transform_indices = @transform_2, window_bounds = array<i64: 4, 384>}, {pipeline_mode = #tpu.pipeline_mode<synchronous>, transform_indices = @transform_3, window_bounds = array<i64: 64, 32>}, {pipeline_mode = #tpu.pipeline_mode<synchronous>, transform_indices = @transform_4, window_bounds = array<i64: 32, 32>}, {pipeline_mode = #tpu.pipeline_mode<synchronous>, transform_indices = @transform_5, window_bounds = array<i64: 16, 1>}, {transform_indices = @transform_6, window_bounds = array<i64: 32, 384>}]} {
    %c0 = arith.constant 0 : index
    %c0_0 = arith.constant 0 : index
    %0 = vector.load %arg4[%c0, %c0_0] : memref<64x32xf32, #tpu.memory_space<vmem>>, vector<64x32xf32>
    %c0_1 = arith.constant 0 : index
    %c0_2 = arith.constant 0 : index
    %1 = vector.load %arg1[%c0_1, %c0_2] : memref<384x32xf32, #tpu.memory_space<vmem>>, vector<384x32xf32>
    %cst = arith.constant dense<0.000000e+00> : vector<64x384xf32>
    %2 = tpu.matmul %0, %1, %cst {dimension_numbers = #tpu.dot_dimension_numbers<[1], [1], [0], [0], [0, 0, 1, 0], [], []>} : vector<64x32xf32>, vector<384x32xf32>, vector<64x384xf32> -> vector<64x384xf32>
    %c0_3 = arith.constant 0 : index
    %c0_4 = arith.constant 0 : index
    %3 = vector.load %arg5[%c0_3, %c0_4] : memref<32x32xf32, #tpu.memory_space<vmem>>, vector<32x32xf32>
    %c0_5 = arith.constant 0 : index
    %c0_6 = arith.constant 0 : index
    %4 = vector.load %arg2[%c0_5, %c0_6] : memref<384x32xf32, #tpu.memory_space<vmem>>, vector<384x32xf32>
    %cst_7 = arith.constant dense<0.000000e+00> : vector<32x384xf32>
    %5 = tpu.matmul %3, %4, %cst_7 {dimension_numbers = #tpu.dot_dimension_numbers<[1], [1], [0], [0], [0, 0, 1, 0], [], []>} : vector<32x32xf32>, vector<384x32xf32>, vector<32x384xf32> -> vector<32x384xf32>
    %6 = vector.extract_strided_slice %2 {offsets = [0, 0], sizes = [16, 384], strides = [1, 1]} : vector<64x384xf32> to vector<16x384xf32>
    %7 = math.tanh %6 : vector<16x384xf32>
    %cst_8 = arith.constant 1.000000e+00 : f32
    %8 = vector.broadcast %cst_8 : f32 to vector<16x384xf32>
    %9 = arith.addf %7, %8 : vector<16x384xf32>
    %10 = vector.extract_strided_slice %2 {offsets = [16, 0], sizes = [16, 384], strides = [1, 1]} : vector<64x384xf32> to vector<16x384xf32>
    %11 = vector.extract_strided_slice %2 {offsets = [32, 0], sizes = [32, 384], strides = [1, 1]} : vector<64x384xf32> to vector<32x384xf32>
    %c0_9 = arith.constant 0 : index
    %c0_10 = arith.constant 0 : index
    %12 = vector.load %arg6[%c0_9, %c0_10] : memref<16x1xf32, #tpu.memory_space<vmem>>, vector<16x1xf32>
    %13 = vector.broadcast %12 : vector<16x1xf32> to vector<16x384xf32>
    %14 = arith.mulf %13, %9 : vector<16x384xf32>
    %c0_11 = arith.constant 0 : index
    %c0_12 = arith.constant 0 : index
    %15 = vector.load %arg3[%c0_11, %c0_12] : memref<4x384xf32, #tpu.memory_space<vmem>>, vector<4x384xf32>
    %16 = vector.extract_strided_slice %15 {offsets = [0, 0], sizes = [1, 384], strides = [1, 1]} : vector<4x384xf32> to vector<1x384xf32>
    %17 = vector.extract_strided_slice %15 {offsets = [1, 0], sizes = [1, 384], strides = [1, 1]} : vector<4x384xf32> to vector<1x384xf32>
    %18 = vector.extract_strided_slice %15 {offsets = [2, 0], sizes = [1, 384], strides = [1, 1]} : vector<4x384xf32> to vector<1x384xf32>
    %19 = vector.extract_strided_slice %15 {offsets = [3, 0], sizes = [1, 384], strides = [1, 1]} : vector<4x384xf32> to vector<1x384xf32>
    %cst_13 = arith.constant 1.000000e+00 : f32
    %20 = vector.broadcast %cst_13 : f32 to vector<1x384xf32>
    %21 = arith.subf %20, %19 : vector<1x384xf32>
    %22 = vector.broadcast %16 : vector<1x384xf32> to vector<16x384xf32>
    %23 = arith.mulf %14, %22 : vector<16x384xf32>
    %24 = arith.addf %23, %10 : vector<16x384xf32>
    %25 = vector.broadcast %17 : vector<1x384xf32> to vector<16x384xf32>
    %26 = arith.mulf %14, %25 : vector<16x384xf32>
    %27 = arith.addf %26, %10 : vector<16x384xf32>
    %28 = vector.broadcast %18 : vector<1x384xf32> to vector<16x384xf32>
    %29 = arith.mulf %14, %28 : vector<16x384xf32>
    %30 = arith.addf %29, %10 : vector<16x384xf32>
    %31 = vector.broadcast %21 : vector<1x384xf32> to vector<32x384xf32>
    %32 = arith.mulf %31, %11 : vector<32x384xf32>
    %33 = vector.broadcast %19 : vector<1x384xf32> to vector<32x384xf32>
    %34 = arith.mulf %33, %5 : vector<32x384xf32>
    %35 = arith.addf %32, %34 : vector<32x384xf32>
    %36 = math.sin %24 : vector<16x384xf32>
    %37 = math.sin %27 : vector<16x384xf32>
    %38 = vector.broadcast %21 : vector<1x384xf32> to vector<16x384xf32>
    %39 = arith.mulf %38, %37 : vector<16x384xf32>
    %40 = math.sin %30 : vector<16x384xf32>
    %41 = vector.broadcast %19 : vector<1x384xf32> to vector<16x384xf32>
    %42 = arith.mulf %41, %40 : vector<16x384xf32>
    %43 = arith.addf %39, %42 : vector<16x384xf32>
    %44 = arith.subf %36, %43 : vector<16x384xf32>
    %45 = vector.extract_strided_slice %35 {offsets = [0, 0], sizes = [16, 384], strides = [1, 1]} : vector<32x384xf32> to vector<16x384xf32>
    %46 = arith.addf %44, %45 : vector<16x384xf32>
    %c0_14 = arith.constant 0 : index
    %c0_15 = arith.constant 0 : index
    %47 = vector.load %arg7[%c0_14, %c0_15] : memref<32x384xf32, #tpu.memory_space<vmem>>, vector<16x384xf32>
    tpu.vector_store %arg7[%c0_14, %c0_15], %46 {strides = array<i32>} : memref<32x384xf32, #tpu.memory_space<vmem>>, vector<16x384xf32>,
    %48 = math.cos %24 : vector<16x384xf32>
    %49 = math.cos %27 : vector<16x384xf32>
    %50 = vector.broadcast %21 : vector<1x384xf32> to vector<16x384xf32>
    %51 = arith.mulf %50, %49 : vector<16x384xf32>
    %52 = math.cos %30 : vector<16x384xf32>
    %53 = vector.broadcast %19 : vector<1x384xf32> to vector<16x384xf32>
    %54 = arith.mulf %53, %52 : vector<16x384xf32>
    %55 = arith.addf %51, %54 : vector<16x384xf32>
    %56 = arith.subf %48, %55 : vector<16x384xf32>
    %57 = vector.extract_strided_slice %35 {offsets = [16, 0], sizes = [16, 384], strides = [1, 1]} : vector<32x384xf32> to vector<16x384xf32>
    %58 = arith.addf %56, %57 : vector<16x384xf32>
    %c16 = arith.constant 16 : index
    %c0_16 = arith.constant 0 : index
    %59 = vector.load %arg7[%c16, %c0_16] : memref<32x384xf32, #tpu.memory_space<vmem>>, vector<16x384xf32>
    tpu.vector_store %arg7[%c16, %c0_16], %58 {strides = array<i32>} : memref<32x384xf32, #tpu.memory_space<vmem>>, vector<16x384xf32>,
    return
  }
  func.func @transform_0(%arg0: i32) -> (i32, i32) {
    %c0_i32 = arith.constant 0 : i32
    %c0_i32_0 = arith.constant 0 : i32
    return %arg0, %c0_i32 : i32, i32
  }
  func.func @transform_1(%arg0: i32) -> (i32, i32) {
    %c0_i32 = arith.constant 0 : i32
    %c0_i32_0 = arith.constant 0 : i32
    return %arg0, %c0_i32 : i32, i32
  }
  func.func @transform_2(%arg0: i32) -> (i32, i32) {
    %c0_i32 = arith.constant 0 : i32
    %c0_i32_0 = arith.constant 0 : i32
    return %c0_i32, %arg0 : i32, i32
  }
  func.func @transform_3(%arg0: i32) -> (i32, i32) {
    %c0_i32 = arith.constant 0 : i32
    %c0_i32_0 = arith.constant 0 : i32
    %c0_i32_1 = arith.constant 0 : i32
    return %c0_i32, %c0_i32_0 : i32, i32
  }
  func.func @transform_4(%arg0: i32) -> (i32, i32) {
    %c0_i32 = arith.constant 0 : i32
    %c0_i32_0 = arith.constant 0 : i32
    %c0_i32_1 = arith.constant 0 : i32
    return %c0_i32, %c0_i32_0 : i32, i32
  }
  func.func @transform_5(%arg0: i32) -> (i32, i32) {
    %c0_i32 = arith.constant 0 : i32
    %c0_i32_0 = arith.constant 0 : i32
    %c0_i32_1 = arith.constant 0 : i32
    return %c0_i32, %c0_i32_0 : i32, i32
  }
  func.func @transform_6(%arg0: i32) -> (i32, i32) {
    %c0_i32 = arith.constant 0 : i32
    %c0_i32_0 = arith.constant 0 : i32
    return %c0_i32, %arg0 : i32, i32
  }
}

</mosaic_0001>

<bundles_post_ra>
// kernel: tpu_custom_call.1
= control target key start
LH: loop header
LB: loop body
LE: loop exit
PB: predicated region body
PF: predicated region fallthrough
CT: control target
= control target key end

     0   :  { %11 = vsyncpa [#allocation3], 0  ;;  %s8805_s0 = inlined_call_operand.vmem [shape: f32[600,32], index: 0, kind: input, shape index: {}]   ;;  %s8806_s1 = inlined_call_operand.vmem [shape: f32[600,32], index: 1, kind: input, shape index: {}]   ;;  %s8807_s2 = inlined_call_operand.vmem [shape: f32[4,600], index: 2, kind: input, shape index: {}]   ;;  %s8808_s3 = inlined_call_operand.vmem [shape: f32[64,32], index: 3, kind: input, shape index: {}]   ;;  %s8809_s4 = inlined_call_operand.vmem [shape: f32[32,32], index: 4, kind: input, shape index: {}]   ;;  %s8810_s5 = inlined_call_operand.vmem [shape: f32[16,1], index: 5, kind: input, shape index: {}]   ;;  %s8811_s6 = inlined_call_operand.hbm [shape: f32[32,600], index: 6, kind: output, shape index: {}]  }
   0x1   :  { %13 = vsyncpa [#allocation3 + $0x1], 0  ;;  %s6146_s21 = smov 0   ;;  %s6148_s22 = smov 0  }
   0x2   :  { %s6150_s23 = smov 0   ;;  %s6152_s24 = smov 0  }
   0x3 LB: > { %s6167_s25 = sadd.s32 4294967295, %s6099_s24   ;;  %s5336_s26 = sadd.s32 4294967294, %s6099_s24   ;;  %s6099_s24 = sphi %s6152_s24, %s9190_s24   ;;  %s6095_s23 = sphi %s6150_s23, %s9189_s23   ;;  %s6091_s22 = sphi %s6148_s22, %s9188_s22   ;;  %s6087_s21 = sphi %s6146_s21, %s9187_s21  }
   0x4   : > { %s6171_s27 = sadd.s32 1, %s6099_s24   ;;  %s167_s28 = sadd.s32 1, %s6095_s23 }
   0x5   : > { %s164_s29 = ssub.s32 %s6099_s24, %s6171_s27  ;;  %p177_p0 = scmp.ne.s32.totalorder %s6095_s23, %s6091_s22 }
   0x6   : > { %p165_p1 = scmp.eq.s32.totalorder %s164_s29, 0  ;;  %p178_p2 = scmp.eq.s32.totalorder %s6167_s25, 1 }
   0x7   : > { %p183_p3 = scmp.ne.s32.totalorder %s6091_s22, %s6087_s21  ;;  %p184_p4 = scmp.eq.s32.totalorder %s5336_s26, 1 }
   0x8   : > { %s6182_s30 = scalar_select %p165_p1, %s6095_s23, %s167_s28  }
   0x9   : > { %p6184_p5 = por %p178_p2, %p177_p0  ;;  %p6188_p6 = por %p184_p4, %p183_p3 }
   0xa   : > { %p5339_p7 = scmp.ge.s32.totalorder %s6099_s24, 1  ;;  %p262_p8 = scmp.lt.s32.totalorder %s6099_s24, 3 }
   0xc   : > { %p263_p9 = pnand %p5339_p7, %p262_p8 }
   0xe   : > { %266 = sbr.rel (%p263_p9) target bundleno = 881 (0x371), region = 44 }
  0x13   : > { %s314_s9 = smul.u32 48, %s6167_s25  ;;  %vm417_vm0 = vcmask 261120   ;;  %v6198_v0 = vld [vmem:[%s8808_s3] sm:$0xff]  ;;  %v6101_v2 = vmov 0   ;;  %v1199_v30 = vld [vmem:[%s8810_s5 + $0x8] sm:$0xff]  ;;  %v363_v57 = vld [vmem:[%s8808_s3 + $0x10] sm:$0xff] }
  0x14   : > { %5650 = vmatprep.mubr.msk.f32.mxu0 %vm417_vm0, %v6198_v0  ;;  %5782 = vmatprep.mubr.msk.f32.mxu1 %vm417_vm0, %v6198_v0  ;;  %v1198_v1 = vld [vmem:[%s8810_s5] sm:$0xff]  ;;  %v362_v54 = vld [vmem:[%s8808_s3 + $0x8] sm:$0xff]  ;;  %v364_v58 = vld [vmem:[%s8808_s3 + $0x18] sm:$0xff]  ;;  %s6525_s15 = smul.u32 3, %s6167_s25  ;;  %s311_s26 = sand.u32 1, %s6091_s22  }
  0x15   : > { %p319_p10 = scmp.lt.s32.totalorder %s314_s9, 74  ;;  %5952 = vset.pattern.permute.xlu0 %v6101_v2  ;;  %s5832_s29 = smul.u32 96, %s311_s26 }
  0x16   : > { %1202 = vperm.xlu0 %5952, %v1198_v1   ;;  %p347_p11 = scmp.lt.s32.totalorder %s6525_s15, 4  ;;  %s8739_s10 = scalar_lea.sflag [#allocation3], %s311_s26 }
  0x17   : > { %s9192_s9 = smov (!%p319_p10, %s314_s9), 74  ;;  %s5238_s11 = ssub.s32 (%p6184_p5), 5, %s6525_s15 }
  0x18   : > { %s5340_s12 = sshll.u32 %s9192_s9, 3  ;;  %s8275_s9 = scalar_lea.vmem [#allocation2], %s5832_s29 }
  0x19   : > { %s6215_s17 = scalar_lea.vmem %s8805_s0, %s5340_s12  ;;  %s6330_s28 = scalar_lea.vmem %s8806_s1, %s5340_s12 }
  0x1a   : > { %v400_v3 = vld [vmem:[%s6215_s17 + $0xf8] sm:$0xff]  ;;  %v399_v6 = vld [vmem:[%s6215_s17 + $0xf0] sm:$0xff]  ;;  %v398_v9 = vld [vmem:[%s6215_s17 + $0xe8] sm:$0xff]  ;;  %1207 = vperm.xlu0 %5952, %v1199_v30   ;;  %s348_s16 = scalar_select %p347_p11, %s6525_s15, 4 }
  0x1b   : > { %v416_v4 = vld [vmem:[%s6215_s17 + $0x178] sm:$0xff]  ;;  %5618 = vmatprep.subr.msk.mxu0 %vm417_vm0, %v400_v3  ;;  %v415_v7 = vld [vmem:[%s6215_s17 + $0x170] sm:$0xff]  ;;  %v414_v10 = vld [vmem:[%s6215_s17 + $0x168] sm:$0xff]  ;;  %p5239_p12 = scmp.lt.s32.totalorder (%p6184_p5), %s5238_s11, 3 }
  0x1c   : > { %v384_v5 = vld [vmem:[%s6215_s17 + $0x78] sm:$0xff]  ;;  %5750 = vmatprep.subr.msk.mxu1 %vm417_vm0, %v416_v4  ;;  %v383_v8 = vld [vmem:[%s6215_s17 + $0x70] sm:$0xff]  ;;  %v382_v11 = vld [vmem:[%s6215_s17 + $0x68] sm:$0xff] }
  0x1d   : > { %5619 = vmatpush3.xpose.msk.msra.mxu0 %vm417_vm0, %v384_v5  ;;  %5751 = vmatpush3.xpose.msk.msra.mxu1 %vm417_vm0, %v416_v4  ;;  %v397_v12 = vld [vmem:[%s6215_s17 + $0xe0] sm:$0xff]  ;;  %v396_v15 = vld [vmem:[%s6215_s17 + $0xd8] sm:$0xff]  ;;  %v395_v18 = vld [vmem:[%s6215_s17 + $0xd0] sm:$0xff] }
  0x1e   : > { %5620 = vmatprep.subr.msk.mxu0 %vm417_vm0, %v399_v6  ;;  %5752 = vmatprep.subr.msk.mxu1 %vm417_vm0, %v415_v7  ;;  %v413_v13 = vld [vmem:[%s6215_s17 + $0x160] sm:$0xff]  ;;  %v412_v16 = vld [vmem:[%s6215_s17 + $0x158] sm:$0xff]  ;;  %v411_v19 = vld [vmem:[%s6215_s17 + $0x150] sm:$0xff] }
  0x1f   : > { %v381_v14 = vld [vmem:[%s6215_s17 + $0x60] sm:$0xff]  ;;  %v380_v17 = vld [vmem:[%s6215_s17 + $0x58] sm:$0xff]  ;;  %v379_v20 = vld [vmem:[%s6215_s17 + $0x50] sm:$0xff] }
  0x20   : > { %v394_v21 = vld [vmem:[%s6215_s17 + $0xc8] sm:$0xff]  ;;  %v393_v24 = vld [vmem:[%s6215_s17 + $0xc0] sm:$0xff]  ;;  %v392_v27 = vld [vmem:[%s6215_s17 + $0xb8] sm:$0xff] }
  0x21   : > { %5621 = vmatpush3.xpose.msk.msra.mxu0 %vm417_vm0, %v383_v8  ;;  %5753 = vmatpush3.xpose.msk.msra.mxu1 %vm417_vm0, %v415_v7  ;;  %v410_v22 = vld [vmem:[%s6215_s17 + $0x148] sm:$0xff]  ;;  %v409_v25 = vld [vmem:[%s6215_s17 + $0x140] sm:$0xff]  ;;  %v408_v28 = vld [vmem:[%s6215_s17 + $0x138] sm:$0xff] }
  0x22   : > { %5622 = vmatprep.subr.msk.mxu0 %vm417_vm0, %v398_v9  ;;  %5754 = vmatprep.subr.msk.mxu1 %vm417_vm0, %v414_v10  ;;  %v378_v23 = vld [vmem:[%s6215_s17 + $0x48] sm:$0xff]  ;;  %v377_v26 = vld [vmem:[%s6215_s17 + $0x40] sm:$0xff]  ;;  %v376_v29 = vld [vmem:[%s6215_s17 + $0x38] sm:$0xff] }
  0x23   : > { %v391_v31 = vld [vmem:[%s6215_s17 + $0xb0] sm:$0xff]  ;;  %v390_v34 = vld [vmem:[%s6215_s17 + $0xa8] sm:$0xff]  ;;  %v389_v37 = vld [vmem:[%s6215_s17 + $0xa0] sm:$0xff] }
  0x24   : > { %v407_v32 = vld [vmem:[%s6215_s17 + $0x130] sm:$0xff]  ;;  %v406_v35 = vld [vmem:[%s6215_s17 + $0x128] sm:$0xff]  ;;  %v405_v38 = vld [vmem:[%s6215_s17 + $0x120] sm:$0xff] }
  0x25   : > { %5623 = vmatpush3.xpose.msk.msra.mxu0 %vm417_vm0, %v382_v11  ;;  %5755 = vmatpush3.xpose.msk.msra.mxu1 %vm417_vm0, %v414_v10  ;;  %v375_v33 = vld [vmem:[%s6215_s17 + $0x30] sm:$0xff]  ;;  %v374_v36 = vld [vmem:[%s6215_s17 + $0x28] sm:$0xff]  ;;  %v373_v39 = vld [vmem:[%s6215_s17 + $0x20] sm:$0xff] }
  0x26   : > { %5624 = vmatprep.subr.msk.mxu0 %vm417_vm0, %v397_v12  ;;  %5756 = vmatprep.subr.msk.mxu1 %vm417_vm0, %v413_v13  ;;  %v388_v40 = vld [vmem:[%s6215_s17 + $0x98] sm:$0xff]  ;;  %v387_v43 = vld [vmem:[%s6215_s17 + $0x90] sm:$0xff]  ;;  %v386_v46 = vld [vmem:[%s6215_s17 + $0x88] sm:$0xff] }
  0x27   : > { %v404_v41 = vld [vmem:[%s6215_s17 + $0x118] sm:$0xff]  ;;  %v403_v44 = vld [vmem:[%s6215_s17 + $0x110] sm:$0xff]  ;;  %v402_v47 = vld [vmem:[%s6215_s17 + $0x108] sm:$0xff] }
  0x28   : > { %v372_v42 = vld [vmem:[%s6215_s17 + $0x18] sm:$0xff]  ;;  %v371_v45 = vld [vmem:[%s6215_s17 + $0x10] sm:$0xff]  ;;  %v370_v48 = vld [vmem:[%s6215_s17 + $0x8] sm:$0xff] }
  0x29   : > { %5625 = vmatpush3.xpose.msk.msra.mxu0 %vm417_vm0, %v381_v14  ;;  %5757 = vmatpush3.xpose.msk.msra.mxu1 %vm417_vm0, %v413_v13  ;;  %v385_v49 = vld [vmem:[%s6215_s17 + $0x80] sm:$0xff]  ;;  %v839_v52 = vld [vmem:[%s6330_s28 + $0xf8] sm:$0xff]  ;;  %v838_v56 = vld [vmem:[%s6330_s28 + $0xf0] sm:$0xff] }
  0x2a   : > { %5626 = vmatprep.subr.msk.mxu0 %vm417_vm0, %v396_v15  ;;  %5758 = vmatprep.subr.msk.mxu1 %vm417_vm0, %v412_v16  ;;  %v401_v50 = vld [vmem:[%s6215_s17 + $0x100] sm:$0xff]  ;;  %v855_v53 = vld [vmem:[%s6330_s28 + $0x178] sm:$0xff]  ;;  %v822_v59 = vld [vmem:[%s6330_s28 + $0x70] sm:$0xff] }
  0x2b   : > { %v369_v51 = vld [vmem:[%s6215_s17] sm:$0xff]  ;;  %v823_v55 = vld [vmem:[%s6330_s28 + $0x78] sm:$0xff]  ;;  %v837_v60 = vld [vmem:[%s6330_s28 + $0xe8] sm:$0xff]  ;;  %s5342_s17 = sshll.u32 %s348_s16, 2 }
  0x2c   : > { %v854_v61 = vld [vmem:[%s6330_s28 + $0x170] sm:$0xff]  ;;  %v853_v62 = vld [vmem:[%s6330_s28 + $0x168] sm:$0xff]  ;;  %v836_v1 = vld [vmem:[%s6330_s28 + $0xe0] sm:$0xff]  ;;  %s6534_s20 = scalar_lea.vmem %s8807_s2, %s5342_s17 }
  0x2d   : > { %5627 = vmatpush3.xpose.msk.msra.mxu0 %vm417_vm0, %v380_v17  ;;  %5759 = vmatpush3.xpose.msk.msra.mxu1 %vm417_vm0, %v412_v16  ;;  %v821_v63 = vld [vmem:[%s6330_s28 + $0x68] sm:$0xff]  ;;  %v852_v2 = vld [vmem:[%s6330_s28 + $0x160] sm:$0xff]  ;;  %v367_v5 = vld [vmem:[%s8808_s3 + $0x30] sm:$0xff] }
  0x2e   : > { %5628 = vmatprep.subr.msk.mxu0 %vm417_vm0, %v395_v18  ;;  %5760 = vmatprep.subr.msk.mxu1 %vm417_vm0, %v411_v19  ;;  %v366_v3 = vld [vmem:[%s8808_s3 + $0x28] sm:$0xff]  ;;  %v820_v4 = vld [vmem:[%s6330_s28 + $0x60] sm:$0xff]  ;;  %v835_v6 = vld [vmem:[%s6330_s28 + $0xd8] sm:$0xff] }
  0x2f   : > { %v851_v7 = vld [vmem:[%s6330_s28 + $0x158] sm:$0xff]  ;;  %v6409_v10 = vld [vmem:[%s8809_s4] sm:$0xff]  ;;  %v834_v11 = vld [vmem:[%s6330_s28 + $0xd0] sm:$0xff] }
  0x30   : > { %v368_v8 = vld [vmem:[%s8808_s3 + $0x38] sm:$0xff]  ;;  %v850_v12 = vld [vmem:[%s6330_s28 + $0x150] sm:$0xff]  ;;  %v833_v14 = vld [vmem:[%s6330_s28 + $0xc8] sm:$0xff] }
  0x31   : > { %5629 = vmatpush3.xpose.msk.msra.mxu0 %vm417_vm0, %v379_v20  ;;  %5761 = vmatpush3.xpose.msk.msra.mxu1 %vm417_vm0, %v411_v19  ;;  %v819_v9 = vld [vmem:[%s6330_s28 + $0x58] sm:$0xff]  ;;  %v818_v13 = vld [vmem:[%s6330_s28 + $0x50] sm:$0xff]  ;;  %v849_v15 = vld [vmem:[%s6330_s28 + $0x148] sm:$0xff] }
  0x32   : > { %5630 = vmatprep.subr.msk.mxu0 %vm417_vm0, %v394_v21  ;;  %5762 = vmatprep.subr.msk.mxu1 %vm417_vm0, %v410_v22  ;;  %v817_v16 = vld [vmem:[%s6330_s28 + $0x48] sm:$0xff]  ;;  %v832_v17 = vld [vmem:[%s6330_s28 + $0xc0] sm:$0xff]  ;;  %v831_v20 = vld [vmem:[%s6330_s28 + $0xb8] sm:$0xff] }
  0x33   : > { %v848_v18 = vld [vmem:[%s6330_s28 + $0x140] sm:$0xff]  ;;  %v847_v21 = vld [vmem:[%s6330_s28 + $0x138] sm:$0xff] }
  0x34   : > { %v816_v19 = vld [vmem:[%s6330_s28 + $0x40] sm:$0xff] }
  0x35   : > { %5631 = vmatpush3.xpose.msk.msra.mxu0 %vm417_vm0, %v378_v23  ;;  %5763 = vmatpush3.xpose.msk.msra.mxu1 %vm417_vm0, %v410_v22  ;;  %v815_v22 = vld [vmem:[%s6330_s28 + $0x38] sm:$0xff]  ;;  %v830_v23 = vld [vmem:[%s6330_s28 + $0xb0] sm:$0xff]  ;;  %v844_v30 = vld [vmem:[%s6330_s28 + $0x120] sm:$0xff] }
  0x36   : > { %5632 = vmatprep.subr.msk.mxu0 %vm417_vm0, %v393_v24  ;;  %5764 = vmatprep.subr.msk.mxu1 %vm417_vm0, %v409_v25  ;;  %v846_v24 = vld [vmem:[%s6330_s28 + $0x130] sm:$0xff] }
  0x39   : > { %5633 = vmatpush3.xpose.msk.msra.mxu0 %vm417_vm0, %v377_v26  ;;  %5765 = vmatpush3.xpose.msk.msra.mxu1 %vm417_vm0, %v409_v25  ;;  %v814_v25 = vld [vmem:[%s6330_s28 + $0x30] sm:$0xff]  ;;  %v829_v26 = vld [vmem:[%s6330_s28 + $0xa8] sm:$0xff] }
  0x3a   : > { %5634 = vmatprep.subr.msk.mxu0 %vm417_vm0, %v392_v27  ;;  %5766 = vmatprep.subr.msk.mxu1 %vm417_vm0, %v408_v28  ;;  %v845_v27 = vld [vmem:[%s6330_s28 + $0x128] sm:$0xff] }
  0x3d   : > { %5635 = vmatpush3.xpose.msk.msra.mxu0 %vm417_vm0, %v376_v29  ;;  %5767 = vmatpush3.xpose.msk.msra.mxu1 %vm417_vm0, %v408_v28  ;;  %v813_v28 = vld [vmem:[%s6330_s28 + $0x28] sm:$0xff]  ;;  %v828_v29 = vld [vmem:[%s6330_s28 + $0xa0] sm:$0xff] }
  0x3e   : > { %5636 = vmatprep.subr.msk.mxu0 %vm417_vm0, %v391_v31  ;;  %5768 = vmatprep.subr.msk.mxu1 %vm417_vm0, %v407_v32  ;;  %v812_v31 = vld [vmem:[%s6330_s28 + $0x20] sm:$0xff] }
  0x41   : > { %5637 = vmatpush3.xpose.msk.msra.mxu0 %vm417_vm0, %v375_v33  ;;  %5769 = vmatpush3.xpose.msk.msra.mxu1 %vm417_vm0, %v407_v32  ;;  %v827_v32 = vld [vmem:[%s6330_s28 + $0x98] sm:$0xff] }
  0x42   : > { %5638 = vmatprep.subr.msk.mxu0 %vm417_vm0, %v390_v34  ;;  %5770 = vmatprep.subr.msk.mxu1 %vm417_vm0, %v406_v35  ;;  %v843_v33 = vld [vmem:[%s6330_s28 + $0x118] sm:$0xff] }
  0x43   : > { %v811_v34 = vld [vmem:[%s6330_s28 + $0x18] sm:$0xff] }
  0x45   : > { %5639 = vmatpush3.xpose.msk.msra.mxu0 %vm417_vm0, %v374_v36  ;;  %5771 = vmatpush3.xpose.msk.msra.mxu1 %vm417_vm0, %v406_v35  ;;  %v826_v35 = vld [vmem:[%s6330_s28 + $0x90] sm:$0xff] }
  0x46   : > { %5640 = vmatprep.subr.msk.mxu0 %vm417_vm0, %v389_v37  ;;  %5772 = vmatprep.subr.msk.mxu1 %vm417_vm0, %v405_v38  ;;  %v842_v36 = vld [vmem:[%s6330_s28 + $0x110] sm:$0xff] }
  0x47   : > { %v810_v37 = vld [vmem:[%s6330_s28 + $0x10] sm:$0xff] }
  0x49   : > { %5641 = vmatpush3.xpose.msk.msra.mxu0 %vm417_vm0, %v373_v39  ;;  %5773 = vmatpush3.xpose.msk.msra.mxu1 %vm417_vm0, %v405_v38  ;;  %v825_v38 = vld [vmem:[%s6330_s28 + $0x88] sm:$0xff] }
  0x4a   : > { %5642 = vmatprep.subr.msk.mxu0 %vm417_vm0, %v388_v40  ;;  %5774 = vmatprep.subr.msk.mxu1 %vm417_vm0, %v404_v41  ;;  %v841_v39 = vld [vmem:[%s6330_s28 + $0x108] sm:$0xff] }
  0x4b   : > { %v809_v40 = vld [vmem:[%s6330_s28 + $0x8] sm:$0xff] }
  0x4d   : > { %5643 = vmatpush3.xpose.msk.msra.mxu0 %vm417_vm0, %v372_v42  ;;  %5775 = vmatpush3.xpose.msk.msra.mxu1 %vm417_vm0, %v404_v41  ;;  %v824_v41 = vld [vmem:[%s6330_s28 + $0x80] sm:$0xff] }
  0x4e   : > { %5644 = vmatprep.subr.msk.mxu0 %vm417_vm0, %v387_v43  ;;  %5776 = vmatprep.subr.msk.mxu1 %vm417_vm0, %v403_v44  ;;  %v840_v42 = vld [vmem:[%s6330_s28 + $0x100] sm:$0xff] }
  0x4f   : > { %v808_v43 = vld [vmem:[%s6330_s28] sm:$0xff] }
  0x51   : > { %5645 = vmatpush3.xpose.msk.msra.mxu0 %vm417_vm0, %v371_v45  ;;  %5777 = vmatpush3.xpose.msk.msra.mxu1 %vm417_vm0, %v403_v44  ;;  %v805_v44 = vld [vmem:[%s8809_s4 + $0x8] sm:$0xff]  ;;  %v806_v45 = vld [vmem:[%s8809_s4 + $0x10] sm:$0xff] }
  0x52   : > { %5646 = vmatprep.subr.msk.mxu0 %vm417_vm0, %v386_v46  ;;  %5778 = vmatprep.subr.msk.mxu1 %vm417_vm0, %v402_v47  ;;  %v807_v46 = vld [vmem:[%s8809_s4 + $0x18] sm:$0xff] }
  0x55   : > { %5647 = vmatpush3.xpose.msk.msra.mxu0 %vm417_vm0, %v370_v48  ;;  %5779 = vmatpush3.xpose.msk.msra.mxu1 %vm417_vm0, %v402_v47  ;;  %v1222_v47 = vlaneseq }
  0x56   : > { %5648 = vmatprep.subr.msk.mxu0 %vm417_vm0, %v385_v49  ;;  %5780 = vmatprep.subr.msk.mxu1 %vm417_vm0, %v401_v50 }
  0x59   : > { %5649 = vmatpush3.xpose.msk.msra.mxu0 %vm417_vm0, %v369_v51  ;;  %5781 = vmatpush3.xpose.msk.msra.mxu1 %vm417_vm0, %v401_v50  ;;  %v6529_v50 = vshrl.u32 %v1222_v47, 7 }
  0x5a   : > { %5690 = vmatprep.subr.msk.mxu0 %vm417_vm0, %v839_v52  ;;  %5794 = vmatprep.subr.msk.mxu1 %vm417_vm0, %v855_v53 }
  0x5b   : > { %v6537_v51 = vsub.s32 0, %v6529_v50  ;;  %v6540_v52 = vsub.s32 1, %v6529_v50 }
  0x5c   : > { %5651 = vmatmul.mubr.msk.f32.vlgmr.msra.gmra.mxu0 %vm417_vm0, %v6198_v0  ;;  %5783 = vmatmul.mubr.msk.f32.vlgmr.msra.gmra.mxu1 %vm417_vm0, %v362_v54  ;;  %v365_v0 = vld [vmem:[%s8808_s3 + $0x20] sm:$0xff] }
  0x5d   : > { %5652 = vmatprep.mubr.msk.f32.mxu0 %vm417_vm0, %v362_v54  ;;  %5691 = vmatpush3.xpose.msk.msra.mxu0 %vm417_vm0, %v823_v55 }
  0x5e   : > { %5785 = vmatprep.mubr.msk.f32.mxu1 %vm417_vm0, %v363_v57  ;;  %5692 = vmatprep.subr.msk.mxu0 %vm417_vm0, %v838_v56 }
  0x5f   : > { %5795 = vmatpush3.xpose.msk.msra.mxu1 %vm417_vm0, %v855_v53  ;;  %v6543_v53 = vld [vmem:[%s6534_s20] sm:$0xff] }
  0x60   : > { %5653 = vmatmul.mubr.msk.f32.gmra.mxu0 %vm417_vm0, %v362_v54  ;;  %5786 = vmatmul.mubr.msk.f32.gmra.mxu1 %vm417_vm0, %v364_v58  ;;  %v6546_v54 = vsub.s32 2, %v6529_v50  ;;  %v1225_v55 = vrot.slane %v6543_v53, %v6537_v51  ;;  %v1264_v56 = vrot.slane %v6543_v53, %v6540_v52 }
  0x61   : > { %5654 = vmatprep.mubr.msk.f32.mxu0 %vm417_vm0, %v363_v57  ;;  %5693 = vmatpush3.xpose.msk.msra.mxu0 %vm417_vm0, %v822_v59 }
  0x62   : > { %5694 = vmatprep.subr.msk.mxu0 %vm417_vm0, %v837_v60  ;;  %5796 = vmatprep.subr.msk.mxu1 %vm417_vm0, %v854_v61 }
  0x63   : > { %5797 = vmatpush3.xpose.msk.msra.mxu1 %vm417_vm0, %v854_v61  ;;  %5788 = vmatprep.mubr.msk.f32.mxu1 %vm417_vm0, %v365_v0  ;;  %v6557_v61 = vrot.slane %v1225_v55, %v6537_v51 }
  0x64   : > { %5655 = vmatmul.mubr.msk.f32.gmra.mxu0 %vm417_vm0, %v363_v57  ;;  %5798 = vmatprep.subr.msk.mxu1 %vm417_vm0, %v853_v62  ;;  %v1303_v57 = vrot.slane %v6543_v53, %v6546_v54 }
  0x65   : > { %5656 = vmatprep.mubr.msk.f32.mxu0 %vm417_vm0, %v364_v58  ;;  %5695 = vmatpush3.xpose.msk.msra.mxu0 %vm417_vm0, %v821_v63 }
  0x66   : > { %5696 = vmatprep.subr.msk.mxu0 %vm417_vm0, %v836_v1  ;;  %5789 = vmatmul.mubr.msk.f32.gmra.mxu1 %vm417_vm0, %v366_v3 }
  0x67   : > { %5799 = vmatpush3.xpose.msk.msra.mxu1 %vm417_vm0, %v853_v62  ;;  %5791 = vmatprep.mubr.msk.f32.mxu1 %vm417_vm0, %v367_v5  ;;  %v6560_v62 = vrot.slane %v1264_v56, %v6540_v52  ;;  %v8820_v56 = vmov 2475754826  }
  0x68   : > { %5657 = vmatmul.mubr.msk.f32.gmra.mxu0 %vm417_vm0, %v364_v58  ;;  %5800 = vmatprep.subr.msk.mxu1 %vm417_vm0, %v852_v2 }
  0x69   : > { %5697 = vmatpush3.xpose.msk.msra.mxu0 %vm417_vm0, %v820_v4  ;;  %5658 = vmatprep.mubr.msk.f32.mxu0 %vm417_vm0, %v365_v0 }
  0x6a   : > { %5698 = vmatprep.subr.msk.mxu0 %vm417_vm0, %v835_v6  ;;  %5792 = vmatmul.mubr.msk.f32.gmra.mxu1 %vm417_vm0, %v368_v8 }
  0x6b   : > { %5801 = vmatpush3.xpose.msk.msra.mxu1 %vm417_vm0, %v852_v2  ;;  %5826 = vmatprep.mubr.msk.f32.mxu1 %vm417_vm0, %v6409_v10  ;;  %v1228_v2 = vsub.s32 4, %v6529_v50 }
  0x6c   : > { %5802 = vmatprep.subr.msk.mxu1 %vm417_vm0, %v851_v7  ;;  %5659 = vmatmul.mubr.msk.f32.gmra.mxu0 %vm417_vm0, %v365_v0  ;;  %v6565_v0 = vrot.slane %v1303_v57, %v6546_v54 }
  0x6d   : > { %5699 = vmatpush3.xpose.msk.msra.mxu0 %vm417_vm0, %v819_v9  ;;  %5660 = vmatprep.mubr.msk.f32.mxu0 %vm417_vm0, %v366_v3 }
  0x6e   : > { %5700 = vmatprep.subr.msk.mxu0 %vm417_vm0, %v834_v11 }
  0x6f   : > { %5803 = vmatpush3.xpose.msk.msra.mxu1 %vm417_vm0, %v851_v7 }
  0x70   : > { %5804 = vmatprep.subr.msk.mxu1 %vm417_vm0, %v850_v12  ;;  %5661 = vmatmul.mubr.msk.f32.gmra.mxu0 %vm417_vm0, %v366_v3 }
  0x71   : > { %5701 = vmatpush3.xpose.msk.msra.mxu0 %vm417_vm0, %v818_v13  ;;  %5662 = vmatprep.mubr.msk.f32.mxu0 %vm417_vm0, %v367_v5 }
  0x72   : > { %5702 = vmatprep.subr.msk.mxu0 %vm417_vm0, %v833_v14 }
  0x73   : > { %5805 = vmatpush3.xpose.msk.msra.mxu1 %vm417_vm0, %v850_v12  ;;  %v1229_v12 = vrot.slane %v6543_v53, %v1228_v2  ;;  %v8818_v2 = vmov 2102212464  }
  0x74   : > { %5806 = vmatprep.subr.msk.mxu1 %vm417_vm0, %v849_v15  ;;  %5663 = vmatmul.mubr.msk.f32.gmra.mxu0 %vm417_vm0, %v367_v5 }
  0x75   : > { %5703 = vmatpush3.xpose.msk.msra.mxu0 %vm417_vm0, %v817_v16  ;;  %5664 = vmatprep.mubr.msk.f32.mxu0 %vm417_vm0, %v368_v8 }
  0x76   : > { %5704 = vmatprep.subr.msk.mxu0 %vm417_vm0, %v832_v17 }
  0x77   : > { %5807 = vmatpush3.xpose.msk.msra.mxu1 %vm417_vm0, %v849_v15 }
  0x78   : > { %5808 = vmatprep.subr.msk.mxu1 %vm417_vm0, %v848_v18  ;;  %5665 = vmatmul.mubr.msk.f32.gmra.mxu0 %vm417_vm0, %v368_v8 }
  0x79   : > { %5705 = vmatpush3.xpose.msk.msra.mxu0 %vm417_vm0, %v816_v19  ;;  %5722 = vmatprep.mubr.msk.f32.mxu0 %vm417_vm0, %v6409_v10 }
  0x7a   : > { %5706 = vmatprep.subr.msk.mxu0 %vm417_vm0, %v831_v20  ;;  %v6589_v20 = vrot.slane %v1229_v12, %v6537_v51 }
  0x7b   : > { %5809 = vmatpush3.xpose.msk.msra.mxu1 %vm417_vm0, %v848_v18 }
  0x7c   : > { %5810 = vmatprep.subr.msk.mxu1 %vm417_vm0, %v847_v21  ;;  %8940 = vst [vmem:[#allocation7_spill] sm:$0xff] %v6589_v20 }
  0x7d   : > { %5707 = vmatpush3.xpose.msk.msra.mxu0 %vm417_vm0, %v815_v22 }
  0x7e   : > { %5708 = vmatprep.subr.msk.mxu0 %vm417_vm0, %v830_v23 }
  0x7f   : > { %5811 = vmatpush3.xpose.msk.msra.mxu1 %vm417_vm0, %v847_v21 }
  0x80   : > { %5812 = vmatprep.subr.msk.mxu1 %vm417_vm0, %v846_v24 }
  0x81   : > { %5709 = vmatpush3.xpose.msk.msra.mxu0 %vm417_vm0, %v814_v25 }
  0x82   : > { %5710 = vmatprep.subr.msk.mxu0 %vm417_vm0, %v829_v26 }
  0x83   : > { %5813 = vmatpush3.xpose.msk.msra.mxu1 %vm417_vm0, %v846_v24 }
  0x84   : > { %5814 = vmatprep.subr.msk.mxu1 %vm417_vm0, %v845_v27 }
  0x85   : > { %5711 = vmatpush3.xpose.msk.msra.mxu0 %vm417_vm0, %v813_v28  ;;  %v1267_v28 = vsub.s32 5, %v6529_v50 }
  0x86   : > { %5712 = vmatprep.subr.msk.mxu0 %vm417_vm0, %v828_v29 }
  0x87   : > { %5815 = vmatpush3.xpose.msk.msra.mxu1 %vm417_vm0, %v845_v27 }
  0x88   : > { %5816 = vmatprep.subr.msk.mxu1 %vm417_vm0, %v844_v30 }
  0x89   : > { %5713 = vmatpush3.xpose.msk.msra.mxu0 %vm417_vm0, %v812_v31 }
  0x8a   : > { %5714 = vmatprep.subr.msk.mxu0 %vm417_vm0, %v827_v32 }
  0x8b   : > { %5817 = vmatpush3.xpose.msk.msra.mxu1 %vm417_vm0, %v844_v30 }
  0x8c   : > { %5818 = vmatprep.subr.msk.mxu1 %vm417_vm0, %v843_v33 }
  0x8d   : > { %5715 = vmatpush3.xpose.msk.msra.mxu0 %vm417_vm0, %v811_v34 }
  0x8e   : > { %5716 = vmatprep.subr.msk.mxu0 %vm417_vm0, %v826_v35  ;;  %v1306_v35 = vsub.s32 6, %v6529_v50 }
  0x8f   : > { %5819 = vmatpush3.xpose.msk.msra.mxu1 %vm417_vm0, %v843_v33 }
  0x90   : > { %5820 = vmatprep.subr.msk.mxu1 %vm417_vm0, %v842_v36 }
  0x91   : > { %5717 = vmatpush3.xpose.msk.msra.mxu0 %vm417_vm0, %v810_v37  ;;  %v6562_v63 = vpop.permute.xlu0 %1202 }
  0x92   : > { %5718 = vmatprep.subr.msk.mxu0 %vm417_vm0, %v825_v38 }
  0x93   : > { %5821 = vmatpush3.xpose.msk.msra.mxu1 %vm417_vm0, %v842_v36 }
  0x94   : > { %5822 = vmatprep.subr.msk.mxu1 %vm417_vm0, %v841_v39 }
  0x95   : > { %5719 = vmatpush3.xpose.msk.msra.mxu0 %vm417_vm0, %v809_v40 }
  0x96   : > { %5720 = vmatprep.subr.msk.mxu0 %vm417_vm0, %v824_v41 }
  0x97   : > { %5823 = vmatpush3.xpose.msk.msra.mxu1 %vm417_vm0, %v841_v39  ;;  %v6604_v39 = vrot.slane %v6543_v53, %v1267_v28 }
  0x98   : > { %5824 = vmatprep.subr.msk.mxu1 %vm417_vm0, %v840_v42 }
  0x99   : > { %5721 = vmatpush3.xpose.msk.msra.mxu0 %vm417_vm0, %v808_v43 }
  0x9b   : > { %5825 = vmatpush3.xpose.msk.msra.mxu1 %vm417_vm0, %v840_v42 }
  0x9c   : > { %5723 = vmatmul.mubr.msk.f32.vlgmr.msra.gmra.mxu0 %vm417_vm0, %v6409_v10 }
  0x9d   : > { %5724 = vmatprep.mubr.msk.f32.mxu0 %vm417_vm0, %v805_v44 }
  0x9e   : > { %5827 = vmatmul.mubr.msk.f32.vlgmr.msra.gmra.mxu1 %vm417_vm0, %v805_v44 }
  0x9f   : > { %5829 = vmatprep.mubr.msk.f32.mxu1 %vm417_vm0, %v806_v45 }
  0xa0   : > { %5725 = vmatmul.mubr.msk.f32.gmra.mxu0 %vm417_vm0, %v805_v44 }
  0xa1   : > { %5726 = vmatprep.mubr.msk.f32.mxu0 %vm417_vm0, %v806_v45 }
  0xa2   : > { %5830 = vmatmul.mubr.msk.f32.gmra.mxu1 %vm417_vm0, %v807_v46 }
  0xa4   : > { %5727 = vmatmul.mubr.msk.f32.gmra.mxu0 %vm417_vm0, %v806_v45 }
  0xa5   : > { %5728 = vmatprep.mubr.msk.f32.mxu0 %vm417_vm0, %v807_v46 }
  0xa8   : > { %5729 = vmatmul.mubr.msk.f32.gmra.mxu0 %vm417_vm0, %v807_v46 }
 0x11c   : > { %v652_v48 = vpop.f32.mrf.mxu0 }
 0x11d   : > { %5953 = vtanh.f32 %v652_v48 }
 0x11e   : > { %v654_v49 = vpop.f32.mrf.mxu0 }
 0x11f   : > { %5955 = vtanh.f32 %v654_v49  ;;  %v8825_v49 = vmov 683565275  }
 0x120   : > { %v6554_v59 = vpop.f32.mrf.mxu0 }
 0x122   : > { %v6569_v4 = vpop.f32.mrf.mxu0 }
 0x124   : > { %v664_v7 = vpop.f32.mrf.mxu0 }
 0x126   : > { %v6601_v38 = vpop.f32.mrf.mxu0 }
 0x12a   : > { %v5954_v58 = vpop.eup %5953 }
 0x12b   : > { %v1192_v60 = vadd.f32 1.0, %v5954_v58 }
 0x12c   : > { %v5956_v3 = vpop.eup %5955 }
 0x12d   : > { %v1210_v1 = vmul.f32 %v6562_v63, %v1192_v60  ;;  %v1193_v9 = vadd.f32 1.0, %v5956_v3  ;;  %v8816_v60 = vmov 2131351028  }
 0x12f   : > { %v1249_v5 = vmul.f32 %v6557_v61, %v1210_v1  ;;  %v1288_v6 = vmul.f32 %v6560_v62, %v1210_v1  ;;  %v1327_v8 = vmul.f32 %v6565_v0, %v1210_v1  ;;  %v6586_v18 = vmul.f32 %v6562_v63, %v1193_v9 }
 0x131   : > { %v6574_v10 = vadd.f32 %v1249_v5, %v664_v7  ;;  %v6576_v11 = vadd.f32 %v1288_v6, %v664_v7  ;;  %v6579_v13 = vadd.f32 %v1327_v8, %v664_v7  ;;  %v1250_v30 = vmul.f32 %v6589_v20, %v6586_v18 }
 0x132   : > { %v8836_v5 = vmov 920167782  }
 0x133   : > { %8938 = vst [vmem:[#allocation5_spill] sm:$0xff] %v6576_v11  ;;  %8939 = vst [vmem:[#allocation6_spill] sm:$0xff] %v6579_v13  ;;  %v8815_v14 = vand.u32 2147483647, %v6574_v10  ;;  %v1434_v15 = vand.u32 2139095040, %v6574_v10  ;;  %v2058_v17 = vand.u32 2139095040, %v6576_v11  ;;  %v6607_v43 = vadd.f32 %v1250_v30, %v6601_v38 }
 0x134   : > { %v8814_v16 = vand.u32 2147483647, %v6576_v11  ;;  %v2688_v24 = vand.u32 2139095040, %v6579_v13  ;;  %v8812_v37 = vand.u32 2147483647, %v6579_v13 }
 0x135   : > { %v1435_v19 = vshrl.u32 %v1434_v15, 23  ;;  %v1438_v21 = vand.u32 8388607, %v8815_v14  ;;  %v2059_v22 = vshrl.u32 %v2058_v17, 23  ;;  %8941 = vst [vmem:[#allocation8_spill] sm:$0xff] %v6607_v43 }
 0x136   : > { %v2062_v23 = vand.u32 8388607, %v8814_v16  ;;  %v2689_v27 = vshrl.u32 %v2688_v24, 23  ;;  %v8822_v17 = vmov 1326507024  }
 0x137   : > { %v5463_v25 = vadd.s32 4294967169, %v1435_v19  ;;  %v5487_v26 = vadd.s32 4294967169, %v2059_v22  ;;  %v1439_v31 = vor.u32 8388608, %v1438_v21 }
 0x138   : > { %v2063_v32 = vor.u32 8388608, %v2062_v23  ;;  %v5511_v34 = vadd.s32 4294967169, %v2689_v27 }
 0x139   : > { %v1441_v29 = vadd.s32 1, %v5463_v25  ;;  %v2065_v33 = vadd.s32 1, %v5487_v26  ;;  %v6609_v44 = vshll.u32 %v1439_v31, 8 }
 0x13a   : > { %v6613_v46 = vshll.u32 %v2063_v32, 8  ;;  %v6615_v47 = vadd.s32 1, %v5511_v34 }
 0x13b   : > { %vm1442_vm1 = vcmp.gt.s32.totalorder %v1441_v29, 0  ;;  %vm2066_vm2 = vcmp.gt.s32.totalorder %v2065_v33, 0 }
 0x13c   : > { %v1443_v36 = vsel %vm1442_vm1, %v1441_v29, 0  ;;  %v2067_v42 = vsel %vm2066_vm2, %v2065_v33, 0  ;;  %vm2696_vm7 = vcmp.gt.s32.totalorder %v6615_v47, 0 }
 0x13d   : > { %v1444_v40 = vshrl.u32 %v1443_v36, 5  ;;  %v1445_v41 = vand.u32 31, %v1443_v36  ;;  %v6611_v45 = vshrl.u32 %v2067_v42, 5  ;;  %v2069_v58 = vand.u32 31, %v2067_v42 }
 0x13f   : > { %v1446_v48 = vsub.s32 32, %v1445_v41  ;;  %v1448_v55 = vshll.u32 %v8825_v49, %v1445_v41  ;;  %v1451_v57 = vshll.u32 %v8820_v56, %v1445_v41  ;;  %v1454_v1 = vshll.u32 %v8816_v60, %v1445_v41 }
 0x140   : > { %v1457_v3 = vshll.u32 %v8818_v2, %v1445_v41  ;;  %v1460_v6 = vshll.u32 %v8836_v5, %v1445_v41  ;;  %vm1463_vm3 = vcmp.lt.s32.totalorder %v1444_v40, 1  ;;  %vm1464_vm4 = vcmp.lt.s32.totalorder %v1444_v40, 2 }
 0x141   : > { %v1449_v7 = vshrl.u32 %v8820_v56, %v1446_v48  ;;  %v1452_v8 = vshrl.u32 %v8816_v60, %v1446_v48  ;;  %v1455_v9 = vshrl.u32 %v8818_v2, %v1446_v48  ;;  %v1447_v12 = vshrl.u32 %v8825_v49, %v1446_v48 }
 0x142   : > { %v1458_v15 = vshrl.u32 %v8836_v5, %v1446_v48  ;;  %v1461_v19 = vshrl.u32 %v8822_v17, %v1446_v48  ;;  %vm1465_vm5 = vcmp.lt.s32.totalorder %v1444_v40, 3  ;;  %v2070_v24 = vsub.s32 32, %v2069_v58 }
 0x143   : > { %v1450_v21 = vor.u32 %v1449_v7, %v1448_v55  ;;  %v1453_v22 = vor.u32 %v1452_v8, %v1451_v57  ;;  %v1456_v23 = vor.u32 %v1455_v9, %v1454_v1  ;;  %vm1466_vm6 = vcmp.lt.s32.totalorder %v1444_v40, 4 }
 0x144   : > { %v1459_v25 = vor.u32 %v1458_v15, %v1457_v3  ;;  %v1462_v26 = vor.u32 %v1461_v19, %v1460_v6  ;;  %v2072_v27 = vshll.u32 %v8825_v49, %v2069_v58  ;;  %v2075_v36 = vshll.u32 %v8820_v56, %v2069_v58 }
 0x145   : > { %v1467_v28 = vsel %vm1463_vm3, %v1447_v12, %v1450_v21  ;;  %v1468_v29 = vsel %vm1466_vm6, %v1456_v23, 2102212464  ;;  %v1471_v30 = vsel %vm1463_vm3, %v1450_v21, %v1453_v22  ;;  %v1475_v31 = vsel %vm1463_vm3, %v1453_v22, %v1456_v23 }
 0x146   : > { %v1469_v32 = vsel %vm1465_vm5, %v1453_v22, %v1468_v29  ;;  %v1472_v33 = vsel %vm1466_vm6, %v1459_v25, 920167782  ;;  %v1476_v34 = vsel %vm1466_vm6, %v1462_v26, 1326507024  ;;  %v2071_v48 = vshrl.u32 %v8825_v49, %v2070_v24 }
 0x147   : > { %v1473_v41 = vsel %vm1465_vm5, %v1456_v23, %v1472_v33  ;;  %v1477_v42 = vsel %vm1465_vm5, %v1459_v25, %v1476_v34  ;;  %v2073_v55 = vshrl.u32 %v8820_v56, %v2070_v24  ;;  %v1470_v57 = vsel %vm1464_vm4, %v1467_v28, %v1469_v32 }
 0x148   : > { %v1474_v1 = vsel %vm1464_vm4, %v1471_v30, %v1473_v41  ;;  %v1478_v3 = vsel %vm1464_vm4, %v1475_v31, %v1477_v42  ;;  %v2076_v6 = vshrl.u32 %v8816_v60, %v2070_v24  ;;  %v2078_v21 = vshll.u32 %v8816_v60, %v2069_v58 }
 0x149   : > { %v6644_v7 = vmul.u32.u64.low %v6609_v44, %v1478_v3  ;;  %v6645_v8 = vmul.u32.u64.high %v6609_v44, %v1478_v3, %v6644_v7  ;;  %v6648_v9 = vmul.u32.u64.low %v6609_v44, %v1474_v1  ;;  %v6649_v12 = vmul.u32.u64.high %v6609_v44, %v1474_v1, %v6648_v9 }
 0x14a   : > { %v2074_v15 = vor.u32 %v2073_v55, %v2072_v27  ;;  %v2077_v19 = vor.u32 %v2076_v6, %v2075_v36  ;;  %v2079_v22 = vshrl.u32 %v8818_v2, %v2070_v24  ;;  %v1486_v40 = vmul.u32 %v6609_v44, %v1470_v57  ;;  %v6674_v6 = vld [vmem:[%s6534_s20 + $0x8] sm:$0xf]  ;;  %v5784_v7 = vpop.f32.mrf.mxu1 }
 0x14b   : > { %v2081_v23 = vshll.u32 %v8818_v2, %v2069_v58  ;;  %v2082_v25 = vshrl.u32 %v8836_v5, %v2070_v24  ;;  %v2085_v26 = vshrl.u32 %v8822_v17, %v2070_v24  ;;  %v2084_v29 = vshll.u32 %v8836_v5, %v2069_v58 }
 0x14c   : > { %v2080_v28 = vor.u32 %v2079_v22, %v2078_v21  ;;  %vm2087_vm8 = vcmp.lt.s32.totalorder %v6611_v45, 1  ;;  %vm2088_vm9 = vcmp.lt.s32.totalorder %v6611_v45, 2  ;;  %vm1488_vm10 = vc.u32 %v6645_v8, %v6648_v9 }
 0x14d   : > { %v1489_v27 = vadd.s32 1, %v6649_v12  ;;  %v2083_v30 = vor.u32 %v2082_v25, %v2081_v23  ;;  %vm2089_vm11 = vcmp.lt.s32.totalorder %v6611_v45, 3  ;;  %v2086_v44 = vor.u32 %v2085_v26, %v2084_v29 }
 0x14e   : > { %vm2090_vm12 = vcmp.lt.s32.totalorder %v6611_v45, 4  ;;  %v2091_v24 = vsel %vm2087_vm8, %v2071_v48, %v2074_v15  ;;  %v2095_v31 = vsel %vm2087_vm8, %v2074_v15, %v2077_v19  ;;  %v2099_v34 = vsel %vm2087_vm8, %v2077_v19, %v2080_v28 }
 0x14f   : > { %v1490_v58 = vsel %vm1488_vm10, %v1489_v27, %v6649_v12  ;;  %v2092_v32 = vsel %vm2090_vm12, %v2080_v28, 2102212464  ;;  %v2096_v33 = vsel %vm2090_vm12, %v2083_v30, 920167782  ;;  %v2100_v55 = vsel %vm2090_vm12, %v2086_v44, 1326507024 }
 0x150   : > { %v1491_v36 = vadd.s32 %v1490_v58, %v1486_v40  ;;  %v2093_v41 = vsel %vm2089_vm11, %v2077_v19, %v2092_v32  ;;  %v2097_v42 = vsel %vm2089_vm11, %v2080_v28, %v2096_v33  ;;  %v2101_v1 = vsel %vm2089_vm11, %v2083_v30, %v2100_v55 }
 0x151   : > { %v2098_v57 = vsel %vm2088_vm9, %v2095_v31, %v2097_v42  ;;  %v2697_v3 = vsel %vm2696_vm7, %v6615_v47, 0  ;;  %v1538_v48 = vand.u32 2139095040, %v6607_v43  ;;  %v2102_v15 = vsel %vm2088_vm9, %v2099_v34, %v2101_v1 }
 0x152   : > { %v1492_v12 = vadd.s32 536870912, %v1491_v36  ;;  %v6679_v19 = vmul.u32.u64.low %v6613_v46, %v2098_v57  ;;  %v6680_v21 = vmul.u32.u64.high %v6613_v46, %v2098_v57, %v6679_v19  ;;  %v2094_v22 = vsel %vm2088_vm9, %v2091_v24, %v2093_v41 }
 0x153   : > { %v6686_v40 = vmul.u32.u64.low %v6613_v46, %v2102_v15  ;;  %v6687_v47 = vmul.u32.u64.high %v6613_v46, %v2102_v15, %v6686_v40  ;;  %v6692_v23 = vrot.slane %v6543_v53, %v1306_v35  ;;  %v2699_v26 = vand.u32 31, %v2697_v3 }
 0x154   : > { %v6694_v25 = vshrl.u32 %v1492_v12, 30  ;;  %v6698_v28 = vrot.slane %v6604_v39, %v6540_v52  ;;  %v1233_v45 = vrot.slane %v6674_v6, %v6537_v51  ;;  %5957 = vtanh.f32 %v5784_v7 }
 0x155   : > { %v2692_v29 = vand.u32 8388607, %v8812_v37  ;;  %v1539_v27 = vshrl.u32 %v1538_v48, 23  ;;  %v1272_v30 = vrot.slane %v6674_v6, %v6540_v52  ;;  %v2110_v35 = vmul.u32 %v6613_v46, %v2094_v22 }
 0x156   : > { %8942 = vst [vmem:[#allocation9_spill] sm:$0xff] %v6694_v25  ;;  %8943 = vst [vmem:[#allocation10_spill] sm:$0xff] %v6698_v28  ;;  %v1494_v53 = vshll.u32 %v6694_v25, 30  ;;  %v2113_v44 = vadd.s32 1, %v6680_v21  ;;  %v2700_v24 = vsub.s32 32, %v2699_v26  ;;  %vm2112_vm13 = vc.u32 %v6687_v47, %v6679_v19 }
 0x157   : > { %v6711_v39 = vshrl.u32 %v2697_v3, 5  ;;  %v2702_v31 = vshll.u32 %v8825_v49, %v2699_v26  ;;  %v2705_v58 = vshll.u32 %v8820_v56, %v2699_v26  ;;  %v2708_v46 = vshll.u32 %v8816_v60, %v2699_v26 }
 0x158   : > { %v6715_v32 = vsub.s32 %v1491_v36, %v1494_v53  ;;  %v2114_v33 = vsel %vm2112_vm13, %v2113_v44, %v6680_v21  ;;  %v2703_v34 = vshrl.u32 %v8820_v56, %v2700_v24  ;;  %v2706_v42 = vshrl.u32 %v8816_v60, %v2700_v24 }
 0x159   : > { %v2115_v41 = vadd.s32 %v2114_v33, %v2110_v35  ;;  %v2709_v55 = vshrl.u32 %v8818_v2, %v2700_v24  ;;  %v2711_v57 = vshll.u32 %v8818_v2, %v2699_v26  ;;  %v2712_v48 = vshrl.u32 %v8836_v5, %v2700_v24 }
 0x15a   : > { %v1497_v1 = vsub.s32 0, %v6715_v32  ;;  %v2704_v3 = vor.u32 %v2703_v34, %v2702_v31  ;;  %v2714_v36 = vshll.u32 %v8836_v5, %v2699_v26  ;;  %v2707_v12 = vor.u32 %v2706_v42, %v2705_v58 }
 0x15b   : > { %v2116_v7 = vadd.s32 536870912, %v2115_v41  ;;  %v2710_v15 = vor.u32 %v2709_v55, %v2708_v46  ;;  %v2715_v21 = vshrl.u32 %v8822_v17, %v2700_v24  ;;  %v2693_v40 = vor.u32 8388608, %v2692_v29 }
 0x15c   : > { %v5464_v22 = vmin.u32 %v1497_v1, %v6715_v32  ;;  %v2713_v53 = vor.u32 %v2712_v48, %v2711_v57  ;;  %v1311_v35 = vrot.slane %v6674_v6, %v6546_v54  ;;  %vm2720_vm14 = vcmp.lt.s32.totalorder %v6711_v39, 4 }
 0x15d   : > { %v6730_v44 = vshrl.u32 %v2116_v7, 30  ;;  %v2716_v33 = vor.u32 %v2715_v21, %v2714_v36  ;;  %v5467_v31 = vadd.s32 4294967169, %v1539_v27  ;;  %vm2717_vm15 = vcmp.lt.s32.totalorder %v6711_v39, 1 }
 0x15e   : > { %v1499_v34 = vclz %v5464_v22  ;;  %vm2719_vm0 = vcmp.lt.s32.totalorder %v6711_v39, 3  ;;  %v2726_v26 = vsel %vm2720_vm14, %v2713_v53, 920167782  ;;  %v2725_v29 = vsel %vm2717_vm15, %v2704_v3, %v2707_v12 }
 0x15f   : > { %v2118_v58 = vshll.u32 %v6730_v44, 30  ;;  %v2727_v46 = vsel %vm2719_vm0, %v2710_v15, %v2726_v26  ;;  %v2729_v42 = vsel %vm2717_vm15, %v2707_v12, %v2710_v15  ;;  %vm2718_vm1 = vcmp.lt.s32.totalorder %v6711_v39, 2 }
 0x160   : > { %v5465_v55 = vadd.s32 4294967294, %v1499_v34  ;;  %v2730_v27 = vsel %vm2720_vm14, %v2716_v33, 1326507024  ;;  %v2733_v57 = vshll.u32 %v2693_v40, 8  ;;  %v2722_v48 = vsel %vm2720_vm14, %v2710_v15, 2102212464  ;;  %v765_v33 = vpop.f32.mrf.mxu1 }
 0x161   : > { %v6743_v1 = vsub.s32 %v2115_v41, %v2118_v58  ;;  %v2731_v36 = vsel %vm2719_vm0, %v2713_v53, %v2730_v27  ;;  %v1545_v7 = vadd.s32 1, %v5467_v31  ;;  %v5958_v21 = vpop.eup %5957  ;;  %v2701_v22 = vshrl.u32 %v8825_v49, %v2700_v24 }
 0x162   : > { %vm5466_vm2 = vcmp.lt.s32.totalorder %v5465_v55, 0  ;;  %v2728_v26 = vsel %vm2718_vm1, %v2725_v29, %v2727_v46  ;;  %v2732_v34 = vsel %vm2718_vm1, %v2729_v42, %v2731_v36  ;;  %v2723_v24 = vsel %vm2719_vm0, %v2707_v12, %v2722_v48 }
 0x163   : > { %v6752_v37 = vsel %vm5466_vm2, 0, %v5465_v55  ;;  %v2121_v41 = vsub.s32 0, %v6743_v1  ;;  %v6755_v40 = vmul.u32.u64.low %v2733_v57, %v2732_v34  ;;  %v6756_v15 = vmul.u32.u64.high %v2733_v57, %v2732_v34, %v6755_v40 }
 0x164   : > { %v2721_v53 = vsel %vm2717_vm15, %v2701_v22, %v2704_v3  ;;  %v8813_v31 = vand.u32 2147483647, %v6607_v43  ;;  %vm1546_vm3 = vcmp.gt.s32.totalorder %v1545_v7, 0  ;;  %v1507_v55 = vsub.s32 4294967266, %v6752_v37 }
 0x165   : > { %v5488_v58 = vmin.u32 %v2121_v41, %v6743_v1  ;;  %v6764_v29 = vmul.u32.u64.low %v2733_v57, %v2728_v26  ;;  %v6765_v46 = vmul.u32.u64.high %v2733_v57, %v2728_v26, %v6764_v29  ;;  %v1547_v42 = vsel %vm1546_vm3, %v1545_v7, 0 }
 0x166   : > { %v6771_v27 = vrot.slane %v6692_v23, %v6546_v54  ;;  %v1549_v3 = vand.u32 31, %v1547_v42  ;;  %v6777_v12 = vrot.slane %v1233_v45, %v6537_v51  ;;  %5959 = vtanh.f32 %v765_v33 }
 0x167   : > { %v2123_v48 = vclz %v5488_v58  ;;  %v2724_v36 = vsel %vm2718_vm1, %v2721_v53, %v2723_v24  ;;  %v6785_v7 = vrot.slane %v1272_v30, %v6540_v52  ;;  %5961 = vtanh.f32 %v6554_v59 }
 0x168   : > { %8944 = vst [vmem:[#allocation11_spill] sm:$0xff] %v6771_v27  ;;  %vm2742_vm4 = vc.u32 %v6756_v15, %v6764_v29  ;;  %v1289_v51 = vmul.f32 %v6698_v28, %v6586_v18  ;;  %v6793_v23 = vrot.slane %v1311_v35, %v6546_v54  ;;  %v2743_v39 = vadd.s32 1, %v6765_v46 }
 0x169   : > { %8945 = vst [vmem:[#allocation12_spill] sm:$0xff] %v6785_v7  ;;  %v5489_v45 = vadd.s32 4294967294, %v2123_v48  ;;  %v1542_v22 = vand.u32 8388607, %v8813_v31  ;;  %v1550_v26 = vsub.s32 32, %v1549_v3  ;;  %5963 = vtanh.f32 %v6569_v4 }
 0x16a   : > { %v1503_v52 = vsub.s32 32, %v6752_v37  ;;  %v1508_v59 = vadd.s32 127, %v1507_v55  ;;  %v2740_v30 = vmul.u32 %v2733_v57, %v2724_v36  ;;  %v6800_v34 = vadd.f32 1.0, %v5958_v21 }
 0x16b   : > { %vm5490_vm5 = vcmp.lt.s32.totalorder %v5489_v45, 0  ;;  %v2744_v41 = vsel %vm2742_vm4, %v2743_v39, %v6765_v46  ;;  %v6805_v54 = vmul.f32 %v6771_v27, %v6586_v18  ;;  %v1487_v35 = vadd.s32 %v6648_v9, %v6645_v8 }
 0x16c   : > { %v6809_v40 = vsel %vm5490_vm5, 0, %v5489_v45  ;;  %v2745_v33 = vadd.s32 %v2744_v41, %v2740_v30  ;;  %v6812_v4 = vadd.f32 %v1289_v51, %v6601_v38  ;;  %v1504_v57 = vshll.u32 %v6715_v32, %v6752_v37 }
 0x16d   : > { %v1543_v21 = vor.u32 8388608, %v1542_v22  ;;  %v1553_v53 = vshrl.u32 %v8820_v56, %v1550_v26  ;;  %v1556_v24 = vshrl.u32 %v8816_v60, %v1550_v26  ;;  %v1505_v58 = vshrl.u32 %v1487_v35, %v1503_v52 }
 0x16e   : > { %8946 = vst [vmem:[#allocation13_spill] sm:$0xff] %v6812_v4  ;;  %v1509_v18 = vshll.u32 %v1508_v59, 23  ;;  %v2746_v46 = vadd.s32 536870912, %v2745_v33  ;;  %v1559_v55 = vshrl.u32 %v8818_v2, %v1550_v26  ;;  %v2131_v8 = vsub.s32 4294967266, %v6809_v40 }
 0x16f   : > { %v1552_v9 = vshll.u32 %v8825_v49, %v1549_v3  ;;  %v1555_v48 = vshll.u32 %v8820_v56, %v1549_v3  ;;  %v1562_v36 = vshrl.u32 %v8836_v5, %v1550_v26  ;;  %v1558_v37 = vshll.u32 %v8816_v60, %v1549_v3 }
 0x170   : > { %v6823_v51 = vshrl.u32 %v2746_v46, 30  ;;  %v1561_v32 = vshll.u32 %v8818_v2, %v1549_v3  ;;  %v1565_v45 = vshrl.u32 %v8822_v17, %v1550_v26  ;;  %v2127_v39 = vsub.s32 32, %v6809_v40 }
 0x171   : > { %v1548_v22 = vshrl.u32 %v1547_v42, 5  ;;  %v1554_v52 = vor.u32 %v1553_v53, %v1552_v9  ;;  %v1557_v59 = vor.u32 %v1556_v24, %v1555_v48  ;;  %v1560_v41 = vor.u32 %v1559_v55, %v1558_v37 }
 0x172   : > { %v2748_v30 = vshll.u32 %v6823_v51, 30  ;;  %v1563_v35 = vor.u32 %v1562_v36, %v1561_v32  ;;  %v1564_v31 = vshll.u32 %v8836_v5, %v1549_v3  ;;  %v1506_v16 = vor.u32 %v1505_v58, %v1504_v57 }
 0x173   : > { %v2111_v46 = vadd.s32 %v6679_v19, %v6687_v47  ;;  %v2132_v14 = vadd.s32 127, %v2131_v8  ;;  %v1583_v60 = vshll.u32 %v1543_v21, 8  ;;  %v5960_v2 = vpop.eup %5959  ;;  %v1510_v56 = vor.u32 4788187, %v1509_v18 }
 0x174   : > { %v6833_v17 = vsub.s32 %v2745_v33, %v2748_v30  ;;  %v1551_v42 = vshrl.u32 %v8825_v49, %v1550_v26  ;;  %v1566_v53 = vor.u32 %v1565_v45, %v1564_v31  ;;  %v5962_v24 = vpop.eup %5961  ;;  %vm1567_vm6 = vcmp.lt.s32.totalorder %v1548_v22, 1  ;;  %v1208_v45 = vpop.permute.xlu0 %1207 }
 0x175   : > { %v2129_v9 = vshrl.u32 %v2111_v46, %v2127_v39  ;;  %vm1569_vm7 = vcmp.lt.s32.totalorder %v1548_v22, 3  ;;  %vm1570_vm8 = vcmp.lt.s32.totalorder %v1548_v22, 4  ;;  %v1575_v58 = vsel %vm1567_vm6, %v1554_v52, %v1557_v59 }
 0x176   : > { %v2751_v3 = vsub.s32 0, %v6833_v17  ;;  %v1572_v57 = vsel %vm1570_vm8, %v1560_v41, 2102212464  ;;  %v1576_v55 = vsel %vm1570_vm8, %v1563_v35, 920167782  ;;  %v5964_v19 = vpop.eup %5963  ;;  %v2133_v47 = vshll.u32 %v2132_v14, 23 }
 0x177   : > { %vm1568_vm9 = vcmp.lt.s32.totalorder %v1548_v22, 2  ;;  %v1577_v21 = vsel %vm1569_vm7, %v1560_v41, %v1576_v55  ;;  %v1579_v33 = vsel %vm1567_vm6, %v1557_v59, %v1560_v41  ;;  %v1571_v26 = vsel %vm1567_vm6, %v1551_v42, %v1554_v52 }
 0x178   : > { %v5512_v18 = vmin.u32 %v2751_v3, %v6833_v17  ;;  %v1578_v31 = vsel %vm1568_vm9, %v1575_v58, %v1577_v21  ;;  %v1580_v8 = vsel %vm1570_vm8, %v1566_v53, 1326507024  ;;  %v1573_v48 = vsel %vm1569_vm7, %v1557_v59, %v1572_v57 }
 0x179   : > { %v1581_v36 = vsel %vm1569_vm7, %v1563_v35, %v1580_v8  ;;  %v6842_v37 = vmul.u32.u64.low %v1583_v60, %v1578_v31  ;;  %v6843_v32 = vmul.u32.u64.high %v1583_v60, %v1578_v31, %v6842_v37  ;;  %v1511_v14 = vand.u32 2147483647, %v1510_v56 }
 0x17a   : > { %v2128_v39 = vshll.u32 %v6743_v1, %v6809_v40  ;;  %v2753_v30 = vclz %v5512_v18  ;;  %v1582_v41 = vsel %vm1568_vm9, %v1579_v33, %v1581_v36  ;;  %v1513_v52 = vcvt.s32.f32 %v1506_v16 }
 0x17b   : > { %v2134_v46 = vor.u32 4788187, %v2133_v47  ;;  %v6849_v42 = vmul.u32.u64.low %v1583_v60, %v1582_v41  ;;  %v6850_v53 = vmul.u32.u64.high %v1583_v60, %v1582_v41, %v6849_v42  ;;  %v1574_v35 = vsel %vm1568_vm9, %v1571_v26, %v1573_v48 }
 0x17c   : > { %v2130_v59 = vor.u32 %v2129_v9, %v2128_v39  ;;  %v5513_v3 = vadd.s32 4294967294, %v2753_v30  ;;  %v2162_v57 = vand.u32 2139095040, %v6812_v4  ;;  %v1194_v58 = vadd.f32 1.0, %v5960_v2 }
 0x17d   : > { %v6855_v56 = vmul.f32 %v1208_v45, %v6800_v34  ;;  %v6859_v1 = vadd.f32 %v6805_v54, %v6601_v38  ;;  %v1593_v16 = vadd.s32 1, %v6843_v32  ;;  %v1195_v40 = vadd.f32 1.0, %v5962_v24 }
 0x17e   : > { %v1514_v55 = vmul.f32 %v1513_v52, %v1511_v14  ;;  %vm5514_vm10 = vcmp.lt.s32.totalorder %v5513_v3, 0  ;;  %v2163_v47 = vshrl.u32 %v2162_v57, 23  ;;  %v2135_v9 = vand.u32 2147483647, %v2134_v46 }
 0x17f   : > { %8947 = vst [vmem:[#allocation14_spill] sm:$0xff] %v6859_v1  ;;  %v6862_v21 = vsel %vm5514_vm10, 0, %v5513_v3  ;;  %v1590_v22 = vmul.u32 %v1583_v60, %v1574_v35  ;;  %vm1592_vm11 = vc.u32 %v6850_v53, %v6842_v37  ;;  %v1196_v2 = vadd.f32 1.0, %v5964_v19 }
 0x180   : > { %v2137_v34 = vcvt.s32.f32 %v2130_v59  ;;  %v1594_v33 = vsel %vm1592_vm11, %v1593_v16, %v6843_v32  ;;  %v8824_v38 = vand.u32 2147483647, %v6812_v4  ;;  %v2761_v54 = vsub.s32 4294967266, %v6862_v21 }
 0x181   : > { %v1595_v18 = vadd.s32 %v1594_v33, %v1590_v22  ;;  %v5491_v24 = vadd.s32 4294967169, %v2163_v47  ;;  %v2792_v26 = vand.u32 2139095040, %v6859_v1  ;;  %v6871_v31 = vmul.f32 %v6562_v63, %v1194_v58 }
 0x182   : > { %v2141_v60 = vsub.s32 4, %v6730_v44  ;;  %v6876_v8 = vmul.f32 %v6777_v12, %v6855_v56  ;;  %v6880_v19 = vmul.f32 %v6785_v7, %v6855_v56  ;;  %v1515_v48 = vxor.u32 2147483648, %v1514_v55 }
 0x183   : > { %v6882_v36 = vmul.f32 %v2137_v34, %v2135_v9  ;;  %v1596_v32 = vadd.s32 536870912, %v1595_v18  ;;  %v2169_v14 = vadd.s32 1, %v5491_v24  ;;  %v6884_v39 = vmul.f32 %v1208_v45, %v1195_v40 }
 0x184   : > { %v6886_v30 = vmul.f32 %v1208_v45, %v1196_v2  ;;  %vm2057_vm12 = vcmp.lt.s32.totalorder %v6576_v11, 0  ;;  %v2166_v63 = vand.u32 8388607, %v8824_v38  ;;  %v2762_v41 = vadd.s32 127, %v2761_v54 }
 0x185   : > { %v6891_v52 = vshrl.u32 %v1596_v32, 30  ;;  %vm2170_vm13 = vcmp.gt.s32.totalorder %v2169_v14, 0  ;;  %v2793_v46 = vshrl.u32 %v2792_v26, 23  ;;  %vm1433_vm14 = vcmp.lt.s32.totalorder %v6574_v10, 0 }
 0x186   : > { %8948 = vst [vmem:[#allocation15_spill] sm:$0xff] %v6886_v30  ;;  %v6897_v42 = vsel %vm2057_vm12, %v2141_v60, %v6730_v44  ;;  %v2741_v45 = vadd.s32 %v6764_v29, %v6756_v15  ;;  %v2171_v59 = vsel %vm2170_vm13, %v2169_v14, 0  ;;  %v1516_v3 = vsel %vm1433_vm14, %v1515_v48, %v1514_v55 }
 0x187   : > { %8949 = vst [vmem:[#allocation16_spill] sm:$0xff] %v6891_v52  ;;  %v2139_v35 = vxor.u32 2147483648, %v6882_v36  ;;  %v1598_v57 = vshll.u32 %v6891_v52, 30  ;;  %v2173_v58 = vand.u32 31, %v2171_v59  ;;  %v2757_v16 = vsub.s32 32, %v6862_v21 }
 0x188   : > { %v2758_v40 = vshll.u32 %v6833_v17, %v6862_v21  ;;  %v2167_v47 = vor.u32 8388608, %v2166_v63  ;;  %v2763_v9 = vshll.u32 %v2762_v41, 23  ;;  %v5515_v29 = vadd.s32 4294967169, %v2793_v46 }
 0x189   : > { %v6909_v22 = vsub.s32 %v1595_v18, %v1598_v57  ;;  %v2174_v15 = vsub.s32 32, %v2173_v58  ;;  %v2172_v2 = vshrl.u32 %v2171_v59, 5  ;;  %v2176_v55 = vshll.u32 %v8825_v49, %v2173_v58 }
 0x18a   : > { %v8950_v34 = vmov 2475754826   ;;  %v8951_v54 = vmov 2131351028   ;;  %v8952_v21 = vmov 2102212464   ;;  %v2188_v41 = vshll.u32 %v8836_v5, %v2173_v58 }
 0x18b   : > { %v2179_v33 = vshll.u32 %v8950_v34, %v2173_v58  ;;  %v2182_v24 = vshll.u32 %v8951_v54, %v2173_v58  ;;  %v1601_v26 = vsub.s32 0, %v6909_v22  ;;  %v2177_v60 = vshrl.u32 %v8950_v34, %v2174_v15 }
 0x18c   : > { %v2180_v17 = vshrl.u32 %v8951_v54, %v2174_v15  ;;  %v2185_v48 = vshll.u32 %v8952_v21, %v2173_v58  ;;  %v8953_v18 = vand.u32 2147483647, %v6574_v10  ;;  %v2183_v14 = vshrl.u32 %v8952_v21, %v2174_v15 }
 0x18d   : > { %v2186_v63 = vshrl.u32 %v8836_v5, %v2174_v15  ;;  %v8956_v46 = vmov 1326507024   ;;  %v5468_v57 = vmin.u32 %v1601_v26, %v6909_v22  ;;  %v2178_v38 = vor.u32 %v2177_v60, %v2176_v55 }
 0x18e   : > { %vm6920_vm15 = vcmp.le.f32.partialorder %v8953_v18, 0.7853982  ;;  %v2189_v59 = vshrl.u32 %v8956_v46, %v2174_v15  ;;  %v2181_v44 = vor.u32 %v2180_v17, %v2179_v33  ;;  %v2207_v49 = vshll.u32 %v2167_v47, 8 }
 0x18f   : > { %v2759_v52 = vshrl.u32 %v2741_v45, %v2757_v16  ;;  %v2184_v25 = vor.u32 %v2183_v14, %v2182_v24  ;;  %v2187_v27 = vor.u32 %v2186_v63, %v2185_v48  ;;  %v8957_v28 = vand.u32 2147483647, %v6576_v11 }
 0x190   : > { %v2190_v18 = vor.u32 %v2189_v59, %v2188_v41  ;;  %v2764_v30 = vor.u32 4788187, %v2763_v9  ;;  %v1603_v7 = vclz %v5468_v57  ;;  %vm2191_vm1 = vcmp.lt.s32.totalorder %v2172_v2, 1 }
 0x191   : > { %vm6931_vm0 = vcmp.le.f32.partialorder %v8957_v28, 0.7853982  ;;  %v2799_v58 = vadd.s32 1, %v5515_v29  ;;  %vm2687_vm2 = vcmp.lt.s32.totalorder %v6579_v13, 0  ;;  %v8960_v26 = vmov 683565275  }
 0x192   : > { %v2175_v55 = vshrl.u32 %v8960_v26, %v2174_v15  ;;  %vm2192_vm3 = vcmp.lt.s32.totalorder %v2172_v2, 2  ;;  %vm2194_vm4 = vcmp.lt.s32.totalorder %v2172_v2, 4  ;;  %v2199_v45 = vsel %vm2191_vm1, %v2178_v38, %v2181_v44 }
 0x193   : > { %v5469_v16 = vadd.s32 4294967294, %v1603_v7  ;;  %vm2193_vm5 = vcmp.lt.s32.totalorder %v2172_v2, 3  ;;  %v2196_v47 = vsel %vm2194_vm4, %v2184_v25, 2102212464  ;;  %v2200_v33 = vsel %vm2194_vm4, %v2187_v27, 920167782 }
 0x194   : > { %v2195_v24 = vsel %vm2191_vm1, %v2175_v55, %v2178_v38  ;;  %v2201_v28 = vsel %vm2193_vm5, %v2184_v25, %v2200_v33  ;;  %v2203_v60 = vsel %vm2191_vm1, %v2181_v44, %v2184_v25  ;;  %v2204_v17 = vsel %vm2194_vm4, %v2190_v18, 1326507024 }
 0x195   : > { %vm5470_vm6 = vcmp.lt.s32.totalorder %v5469_v16, 0  ;;  %v2197_v9 = vsel %vm2193_vm5, %v2181_v44, %v2196_v47  ;;  %v2202_v48 = vsel %vm2192_vm3, %v2199_v45, %v2201_v28  ;;  %v2205_v29 = vsel %vm2193_vm5, %v2187_v27, %v2204_v17 }
 0x196   : > { %v6938_v14 = vsel %vm5470_vm6, 0, %v5469_v16  ;;  %v2206_v15 = vsel %vm2192_vm3, %v2203_v60, %v2205_v29  ;;  %v6941_v63 = vmul.u32.u64.low %v2207_v49, %v2202_v48  ;;  %v6942_v41 = vmul.u32.u64.high %v2207_v49, %v2202_v48, %v6941_v63 }
 0x197   : > { %v1519_v7 = vsel %vm6920_vm15, %v6574_v10, %v1516_v3  ;;  %v2140_v25 = vsel %vm2057_vm12, %v2139_v35, %v6882_v36  ;;  %v2760_v38 = vor.u32 %v2759_v52, %v2758_v40  ;;  %v2771_v44 = vsub.s32 4, %v6823_v51 }
 0x198   : > { %v6952_v27 = vmul.u32.u64.low %v2207_v49, %v2206_v15  ;;  %v6953_v59 = vmul.u32.u64.high %v2207_v49, %v2206_v15, %v6952_v27  ;;  %v8961_v57 = vand.u32 2147483647, %v6859_v1  ;;  %vm2800_vm7 = vcmp.gt.s32.totalorder %v2799_v58, 0 }
 0x199   : > { %v2765_v55 = vand.u32 2147483647, %v2764_v30  ;;  %v1611_v45 = vsub.s32 4294967266, %v6938_v14  ;;  %v2198_v16 = vsel %vm2192_vm3, %v2195_v24, %v2197_v9  ;;  %v2801_v3 = vsel %vm2800_vm7, %v2799_v58, 0 }
 0x19a   : > { %v2796_v18 = vand.u32 8388607, %v8961_v57  ;;  %5965 = vcosq.f32 %v1519_v7  ;;  %v6962_v36 = vsel %vm6931_vm0, 0, %v6897_v42  ;;  %v2217_v52 = vadd.s32 1, %v6942_v41 }
 0x19b   : > { %v2803_v35 = vand.u32 31, %v2801_v3  ;;  %5967 = vsinq.f32 %v1519_v7  ;;  %v6968_v40 = vsel %vm6931_vm0, %v6576_v11, %v2140_v25  ;;  %v2767_v30 = vcvt.s32.f32 %v2760_v38  ;;  %v6991_v25 = vpop.f32.mrf.mxu1 }
 0x19c   : > { %v6973_v2 = vsel %vm2687_vm2, %v2771_v44, %v6823_v51  ;;  %v1591_v58 = vadd.s32 %v6842_v37, %v6850_v53  ;;  %v2214_v42 = vmul.u32 %v2207_v49, %v2198_v16  ;;  %vm2216_vm8 = vc.u32 %v6953_v59, %v6941_v63 }
 0x19d   : > { %v2804_v47 = vsub.s32 32, %v2803_v35  ;;  %v6979_v33 = vmul.f32 %v2767_v30, %v2765_v55  ;;  %v1612_v24 = vadd.s32 127, %v1611_v45  ;;  %v2218_v20 = vsel %vm2216_vm8, %v2217_v52, %v6942_v41 }
 0x19e   : > { %v2797_v28 = vor.u32 8388608, %v2796_v18  ;;  %v1607_v60 = vsub.s32 32, %v6938_v14  ;;  %v2219_v17 = vadd.s32 %v2218_v20, %v2214_v42  ;;  %v2802_v48 = vshrl.u32 %v2801_v3, 5 }
 0x19f   : > { %v2807_v51 = vshrl.u32 %v8950_v34, %v2804_v47  ;;  %v2810_v9 = vshrl.u32 %v8951_v54, %v2804_v47  ;;  %v2806_v49 = vshll.u32 %v8960_v26, %v2803_v35  ;;  %v2809_v37 = vshll.u32 %v8950_v34, %v2803_v35 }
 0x1a0   : > { %v2813_v53 = vshrl.u32 %v8952_v21, %v2804_v47  ;;  %v2220_v29 = vadd.s32 536870912, %v2219_v17  ;;  %v2812_v15 = vshll.u32 %v8951_v54, %v2803_v35  ;;  %v2815_v41 = vshll.u32 %v8952_v21, %v2803_v35 }
 0x1a1   : > { %v2816_v7 = vshrl.u32 %v8836_v5, %v2804_v47  ;;  %v1613_v38 = vshll.u32 %v1612_v24, 23  ;;  %v2808_v44 = vor.u32 %v2807_v51, %v2806_v49  ;;  %v2811_v27 = vor.u32 %v2810_v9, %v2809_v37 }
 0x1a2   : > { %v2819_v57 = vshrl.u32 %v8956_v46, %v2804_v47  ;;  %v6994_v18 = vshrl.u32 %v2220_v29, 30  ;;  %v2814_v55 = vor.u32 %v2813_v53, %v2812_v15  ;;  %v2818_v16 = vshll.u32 %v8836_v5, %v2803_v35 }
 0x1a3   : > { %v2817_v45 = vor.u32 %v2816_v7, %v2815_v41  ;;  %v2769_v3 = vxor.u32 2147483648, %v6979_v33  ;;  %v1609_v52 = vshrl.u32 %v1591_v58, %v1607_v60  ;;  %v2837_v30 = vshll.u32 %v2797_v28, 8 }
 0x1a4   : > { %v7000_v42 = vadd.f32 %v6991_v25, %v6876_v8  ;;  %v8963_v24 = vand.u32 2147483647, %v6579_v13  ;;  %v2222_v51 = vshll.u32 %v6994_v18, 30  ;;  %v2820_v9 = vor.u32 %v2819_v57, %v2818_v16 }
 0x1a5   : > { %vm2821_vm10 = vcmp.lt.s32.totalorder %v2802_v48, 1  ;;  %vm2824_vm11 = vcmp.lt.s32.totalorder %v2802_v48, 4  ;;  %v1608_v35 = vshll.u32 %v6909_v22, %v6938_v14  ;;  %v1614_v58 = vor.u32 4788187, %v1613_v38 }
 0x1a6   : > { %8962 = vst [vmem:[#allocation17_spill] sm:$0xff] %v7000_v42  ;;  %vm7004_vm9 = vcmp.le.f32.partialorder %v8963_v24, 0.7853982  ;;  %v2829_v28 = vsel %vm2821_vm10, %v2808_v44, %v2811_v27  ;;  %v2830_v8 = vsel %vm2824_vm11, %v2817_v45, 920167782  ;;  %v7013_v60 = vsub.s32 %v2219_v17, %v2222_v51 }
 0x1a7   : > { %v2805_v49 = vshrl.u32 %v8960_v26, %v2804_v47  ;;  %vm2823_vm12 = vcmp.lt.s32.totalorder %v2802_v48, 3  ;;  %v2826_v37 = vsel %vm2824_vm11, %v2814_v55, 2102212464  ;;  %v7017_v53 = vpop.eup %5965  ;;  %v1610_v29 = vor.u32 %v1609_v52, %v1608_v35 }
 0x1a8   : > { %vm2822_vm13 = vcmp.lt.s32.totalorder %v2802_v48, 2  ;;  %v2831_v15 = vsel %vm2823_vm12, %v2814_v55, %v2830_v8  ;;  %v2833_v41 = vsel %vm2821_vm10, %v2811_v27, %v2814_v55  ;;  %v7020_v22 = vpop.eup %5967  ;;  %v2225_v14 = vsub.s32 0, %v7013_v60 }
 0x1a9   : > { %v2825_v7 = vsel %vm2821_vm10, %v2805_v49, %v2808_v44  ;;  %v2832_v17 = vsel %vm2822_vm13, %v2829_v28, %v2831_v15  ;;  %v2834_v47 = vsel %vm2824_vm11, %v2820_v9, 1326507024  ;;  %v2827_v38 = vsel %vm2823_vm12, %v2811_v27, %v2826_v37 }
 0x1aa   : > { %v2835_v57 = vsel %vm2823_vm12, %v2817_v45, %v2834_v47  ;;  %v7026_v16 = vmul.u32.u64.low %v2837_v30, %v2832_v17  ;;  %v7027_v24 = vmul.u32.u64.high %v2837_v30, %v2832_v17, %v7026_v16  ;;  %v1615_v52 = vand.u32 2147483647, %v1614_v58 }
 0x1ab   : > { %v5492_v51 = vmin.u32 %v2225_v14, %v7013_v60  ;;  %v2836_v55 = vsel %vm2822_vm13, %v2833_v41, %v2835_v57  ;;  %v1954_v35 = vand.u32 2139095040, %v7000_v42  ;;  %v7038_v44 = vadd.f32 %v6991_v25, %v6880_v19 }
 0x1ac   : > { %v7033_v8 = vmul.u32.u64.low %v2837_v30, %v2836_v55  ;;  %v7034_v5 = vmul.u32.u64.high %v2837_v30, %v2836_v55, %v7033_v8  ;;  %v8839_v27 = vand.u32 2147483647, %v7000_v42  ;;  %v1617_v45 = vcvt.s32.f32 %v1610_v29 }
 0x1ad   : > { %8966 = vst [vmem:[#allocation18_spill] sm:$0xff] %v7038_v44  ;;  %v2227_v9 = vclz %v5492_v51  ;;  %v2828_v28 = vsel %vm2822_vm13, %v2825_v7, %v2827_v38  ;;  %v1955_v58 = vshrl.u32 %v1954_v35, 23  ;;  %5969 = vcosq.f32 %v6968_v40 }
 0x1ae   : > { %v7046_v49 = vsel %vm7004_vm9, 0, %v6973_v2  ;;  %vm1537_vm0 = vcmp.lt.s32.totalorder %v6607_v43, 0  ;;  %v2847_v37 = vadd.s32 1, %v7027_v24  ;;  %v1332_v19 = vmul.f32 %v6793_v23, %v6855_v56 }
 0x1af   : > { %8967 = vst [vmem:[#allocation19_spill] sm:$0xff] %v7046_v49  ;;  %v2770_v48 = vsel %vm2687_vm2, %v2769_v3, %v6979_v33  ;;  %v1618_v29 = vmul.f32 %v1617_v45, %v1615_v52  ;;  %v5493_v15 = vadd.s32 4294967294, %v2227_v9  ;;  %v5483_v41 = vadd.s32 4294967169, %v1955_v58 }
 0x1b0   : > { %5971 = vsinq.f32 %v6968_v40  ;;  %v2844_v14 = vmul.u32 %v2837_v30, %v2828_v28  ;;  %vm2846_vm1 = vc.u32 %v7034_v5, %v7026_v16  ;;  %v1958_v2 = vand.u32 8388607, %v8839_v27 }
 0x1b1   : > { %vm5494_vm3 = vcmp.lt.s32.totalorder %v5493_v15, 0  ;;  %v2848_v7 = vsel %vm2846_vm1, %v2847_v37, %v7027_v24  ;;  %v1961_v56 = vadd.s32 1, %v5483_v41  ;;  %v2578_v17 = vand.u32 2139095040, %v7038_v44 }
 0x1b2   : > { %v2773_v33 = vsel %vm7004_vm9, %v6579_v13, %v2770_v48  ;;  %v2230_v3 = vsel %vm5494_vm3, 0, %v5493_v15  ;;  %v2849_v47 = vadd.s32 %v2848_v7, %v2844_v14  ;;  %v1619_v30 = vxor.u32 2147483648, %v1618_v29 }
 0x1b3   : > { %v2235_v38 = vsub.s32 4294967266, %v2230_v3  ;;  %v7067_v57 = vadd.f32 %v6991_v25, %v1332_v19  ;;  %vm1962_vm2 = vcmp.gt.s32.totalorder %v1961_v56, 0  ;;  %v7070_v24 = vsub.s32 3, %v6529_v50 }
 0x1b4   : > { %v2850_v52 = vadd.s32 536870912, %v2849_v47  ;;  %v1963_v51 = vsel %vm1962_vm2, %v1961_v56, 0  ;;  %v8838_v55 = vand.u32 2147483647, %v7038_v44  ;;  %5973 = vcosq.f32 %v2773_v33 }
 0x1b5   : > { %8968 = vst [vmem:[#allocation20_spill] sm:$0xff] %v7067_v57  ;;  %v1959_v20 = vor.u32 8388608, %v1958_v2  ;;  %v1965_v35 = vand.u32 31, %v1963_v51  ;;  %v2579_v8 = vshrl.u32 %v2578_v17, 23  ;;  %5975 = vsinq.f32 %v2773_v33 }
 0x1b6   : > { %v2215_v45 = vadd.s32 %v6941_v63, %v6953_v59  ;;  %v2236_v9 = vadd.s32 127, %v2235_v38  ;;  %v7075_v28 = vshrl.u32 %v2850_v52, 30  ;;  %v7079_v25 = vsel %vm1537_vm0, %v1619_v30, %v1618_v29 }
 0x1b7   : > { %v1966_v37 = vsub.s32 32, %v1965_v35  ;;  %v1968_v19 = vshll.u32 %v8960_v26, %v1965_v35  ;;  %v1971_v15 = vshll.u32 %v8950_v34, %v1965_v35  ;;  %v1974_v41 = vshll.u32 %v8951_v54, %v1965_v35 }
 0x1b8   : > { %v2852_v48 = vshll.u32 %v7075_v28, 30  ;;  %v7088_v63 = vand.u32 8388607, %v8838_v55  ;;  %v2231_v59 = vsub.s32 32, %v2230_v3  ;;  %v7091_v29 = vshll.u32 %v1959_v20, 8 }
 0x1b9   : > { %v1969_v14 = vshrl.u32 %v8950_v34, %v1966_v37  ;;  %v5507_v2 = vadd.s32 4294967169, %v2579_v8  ;;  %v2237_v7 = vshll.u32 %v2236_v9, 23  ;;  %v1972_v17 = vshrl.u32 %v8951_v54, %v1966_v37 }
 0x1ba   : > { %v7093_v56 = vsub.s32 %v2849_v47, %v2852_v48  ;;  %v1975_v33 = vshrl.u32 %v8952_v21, %v1966_v37  ;;  %v7097_v30 = vpop.eup %5969  ;;  %v2232_v38 = vshll.u32 %v7013_v60, %v2230_v3  ;;  %v1964_v52 = vshrl.u32 %v1963_v51, 5 }
 0x1bb   : > { %8969 = vst [vmem:[#allocation21_spill] sm:$0xff] %v7097_v30  ;;  %v1970_v55 = vor.u32 %v1969_v14, %v1968_v19  ;;  %v1977_v27 = vshll.u32 %v8952_v21, %v1965_v35  ;;  %v1973_v20 = vor.u32 %v1972_v17, %v1971_v15  ;;  %v8970_v8 = vmov 920167782  }
 0x1bc   : > { %v2855_v58 = vsub.s32 0, %v7093_v56  ;;  %v1976_v40 = vor.u32 %v1975_v33, %v1974_v41  ;;  %v1978_v9 = vshrl.u32 %v8970_v8, %v1966_v37  ;;  %v2233_v48 = vshrl.u32 %v2215_v45, %v2231_v59 }
 0x1bd   : > { %v7103_v47 = vpop.eup %5971  ;;  %v1980_v13 = vshll.u32 %v8970_v8, %v1965_v35  ;;  %v1981_v49 = vshrl.u32 %v8956_v46, %v1966_v37  ;;  %v2585_v30 = vadd.s32 1, %v5507_v2  ;;  %v2238_v11 = vor.u32 4788187, %v2237_v7 }
 0x1be   : > { %v5516_v60 = vmin.u32 %v2855_v58, %v7093_v56  ;;  %v1967_v3 = vshrl.u32 %v8960_v26, %v1966_v37  ;;  %v1979_v51 = vor.u32 %v1978_v9, %v1977_v27  ;;  %vm1983_vm4 = vcmp.lt.s32.totalorder %v1964_v52, 1 }
 0x1bf   : > { %v1982_v19 = vor.u32 %v1981_v49, %v1980_v13  ;;  %vm1985_vm5 = vcmp.lt.s32.totalorder %v1964_v52, 3  ;;  %vm1986_vm6 = vcmp.lt.s32.totalorder %v1964_v52, 4  ;;  %v1991_v14 = vsel %vm1983_vm4, %v1970_v55, %v1973_v20 }
 0x1c0   : > { %v2857_v15 = vclz %v5516_v60  ;;  %v1988_v41 = vsel %vm1986_vm6, %v1976_v40, 2102212464  ;;  %v1992_v45 = vsel %vm1986_vm6, %v1979_v51, 920167782  ;;  %v2234_v35 = vor.u32 %v2233_v48, %v2232_v38 }
 0x1c1   : > { %vm1984_vm7 = vcmp.lt.s32.totalorder %v1964_v52, 2  ;;  %v1993_v59 = vsel %vm1985_vm5, %v1976_v40, %v1992_v45  ;;  %vm2586_vm8 = vcmp.gt.s32.totalorder %v2585_v30, 0  ;;  %v7112_v2 = vpop.eup %5973  ;;  %v1987_v37 = vsel %vm1983_vm4, %v1967_v3, %v1970_v55 }
 0x1c2   : > { %8971 = vst [vmem:[#allocation22_spill] sm:$0xff] %v7112_v2  ;;  %v5517_v58 = vadd.s32 4294967294, %v2857_v15  ;;  %v1994_v13 = vsel %vm1984_vm7, %v1991_v14, %v1993_v59  ;;  %v1995_v27 = vsel %vm1983_vm4, %v1973_v20, %v1976_v40  ;;  %v7115_v49 = vpop.eup %5975  ;;  %v1989_v7 = vsel %vm1985_vm5, %v1973_v20, %v1988_v41 }
 0x1c3   : > { %8972 = vst [vmem:[#allocation23_spill] sm:$0xff] %v7115_v49  ;;  %v1996_v17 = vsel %vm1986_vm6, %v1982_v19, 1326507024  ;;  %v7120_v33 = vmul.u32.u64.low %v7091_v29, %v1994_v13  ;;  %v7121_v38 = vmul.u32.u64.high %v7091_v29, %v1994_v13, %v7120_v33  ;;  %v2239_v9 = vand.u32 2147483647, %v2238_v11 }
 0x1c4   : > { %vm5518_vm9 = vcmp.lt.s32.totalorder %v5517_v58, 0  ;;  %v1997_v48 = vsel %vm1985_vm5, %v1979_v51, %v1996_v17  ;;  %v2583_v55 = vor.u32 8388608, %v7088_v63  ;;  %v2587_v3 = vsel %vm2586_vm8, %v2585_v30, 0 }
 0x1c5   : > { %v7126_v60 = vsel %vm5518_vm9, 0, %v5517_v58  ;;  %v1998_v40 = vsel %vm1984_vm7, %v1995_v27, %v1997_v48  ;;  %v3208_v20 = vand.u32 2139095040, %v7067_v57  ;;  %v2241_v19 = vcvt.s32.f32 %v2234_v35 }
 0x1c6   : > { %v2861_v15 = vsub.s32 32, %v7126_v60  ;;  %v2865_v41 = vsub.s32 4294967266, %v7126_v60  ;;  %v1990_v11 = vsel %vm1984_vm7, %v1987_v37, %v1989_v7  ;;  %v2845_v51 = vadd.s32 %v7026_v16, %v7034_v5 }
 0x1c7   : > { %v7137_v63 = vmul.u32.u64.low %v7091_v29, %v1998_v40  ;;  %v7138_v14 = vmul.u32.u64.high %v7091_v29, %v1998_v40, %v7137_v63  ;;  %v2589_v45 = vand.u32 31, %v2587_v3  ;;  %v7140_v59 = vmul.f32 %v2241_v19, %v2239_v9 }
 0x1c8   : > { %v2009_v30 = vadd.s32 1, %v7121_v38  ;;  %v2588_v58 = vshrl.u32 %v2587_v3, 5  ;;  %v7143_v35 = vshll.u32 %v2583_v55, 8  ;;  %v2006_v13 = vmul.u32 %v7091_v29, %v1990_v11 }
 0x1c9   : > { %v2590_v27 = vsub.s32 32, %v2589_v45  ;;  %v2592_v52 = vshll.u32 %v8960_v26, %v2589_v45  ;;  %v3209_v37 = vshrl.u32 %v3208_v20, 23  ;;  %v2862_v5 = vshll.u32 %v7093_v56, %v7126_v60 }
 0x1ca   : > { %v2863_v16 = vshrl.u32 %v2845_v51, %v2861_v15  ;;  %v2866_v7 = vadd.s32 127, %v2865_v41  ;;  %v2595_v17 = vshll.u32 %v8950_v34, %v2589_v45  ;;  %vm2008_vm10 = vc.u32 %v7138_v14, %v7120_v33 }
 0x1cb   : > { %v2593_v9 = vshrl.u32 %v8950_v34, %v2590_v27  ;;  %v2598_v48 = vshll.u32 %v8951_v54, %v2589_v45  ;;  %v2601_v29 = vshll.u32 %v8952_v21, %v2589_v45  ;;  %v2010_v55 = vsel %vm2008_vm10, %v2009_v30, %v7121_v38 }
 0x1cc   : > { %v2596_v40 = vshrl.u32 %v8951_v54, %v2590_v27  ;;  %v2604_v3 = vshll.u32 %v8970_v8, %v2589_v45  ;;  %vm2607_vm11 = vcmp.lt.s32.totalorder %v2588_v58, 1  ;;  %v2011_v56 = vadd.s32 %v2010_v55, %v2006_v13 }
 0x1cd   : > { %v2594_v60 = vor.u32 %v2593_v9, %v2592_v52  ;;  %v2599_v20 = vshrl.u32 %v8952_v21, %v2590_v27  ;;  %v2602_v19 = vshrl.u32 %v8970_v8, %v2590_v27  ;;  %v8973_v15 = vand.u32 2147483647, %v6607_v43 }
 0x1ce   : > { %v8974_v41 = vmov 0  ;;  %v2867_v11 = vshll.u32 %v2866_v7, 23  ;;  %v2591_v38 = vshrl.u32 %v8960_v26, %v2590_v27  ;;  %v2597_v51 = vor.u32 %v2596_v40, %v2595_v17 }
 0x1cf   : > { %vm7162_vm12 = vcmp.le.f32.partialorder %v8973_v15, 0.7853982  ;;  %v2605_v63 = vshrl.u32 %v8956_v46, %v2590_v27  ;;  %vm2161_vm13 = vcmp.lt.s32.totalorder %v6812_v4, 0  ;;  %v2012_v45 = vadd.s32 536870912, %v2011_v56 }
 0x1d0   : > { %v8975_v41 = vsel %vm7162_vm12, 4294967295, %v8974_v41  ;;  %v2600_v30 = vor.u32 %v2599_v20, %v2598_v48  ;;  %v2603_v13 = vor.u32 %v2602_v19, %v2601_v29  ;;  %vm2608_vm1 = vcmp.lt.s32.totalorder %v2588_v58, 2 }
 0x1d1   : > { %8976 = vst [vmem:[#allocation24_spill] sm:$0xff] %v8975_v41  ;;  %v2606_v52 = vor.u32 %v2605_v63, %v2604_v3  ;;  %vm2609_vm3 = vcmp.lt.s32.totalorder %v2588_v58, 3  ;;  %vm2610_vm2 = vcmp.lt.s32.totalorder %v2588_v58, 4  ;;  %v2615_v9 = vsel %vm2607_vm11, %v2594_v60, %v2597_v51 }
 0x1d2   : > { %v7170_v55 = vshrl.u32 %v2012_v45, 30  ;;  %v2612_v15 = vsel %vm2610_vm2, %v2600_v30, 2102212464  ;;  %v2616_v7 = vsel %vm2610_vm2, %v2603_v13, 920167782  ;;  %v2619_v2 = vsel %vm2607_vm11, %v2597_v51, %v2600_v30 }
 0x1d3   : > { %v2868_v17 = vor.u32 4788187, %v2867_v11  ;;  %v2611_v27 = vsel %vm2607_vm11, %v2591_v38, %v2594_v60  ;;  %v2617_v40 = vsel %vm2609_vm3, %v2600_v30, %v2616_v7  ;;  %v2620_v49 = vsel %vm2610_vm2, %v2606_v52, 1326507024 }
 0x1d4   : > { %8977 = vst [vmem:[#allocation25_spill] sm:$0xff] %v7170_v55  ;;  %v8978_v48 = vand.u32 2147483647, %v6812_v4  ;;  %v2014_v3 = vshll.u32 %v7170_v55, 30  ;;  %v2613_v20 = vsel %vm2609_vm3, %v2597_v51, %v2612_v15  ;;  %v2618_v19 = vsel %vm2608_vm1, %v2615_v9, %v2617_v40 }
 0x1d5   : > { %v2621_v63 = vsel %vm2609_vm3, %v2603_v13, %v2620_v49  ;;  %v2864_v45 = vor.u32 %v2863_v16, %v2862_v5  ;;  %v7184_v60 = vmul.u32.u64.low %v7143_v35, %v2618_v19  ;;  %v7185_v38 = vmul.u32.u64.high %v7143_v35, %v2618_v19, %v7184_v60  ;;  %v6037_v13 = vld [vmem:[%s6534_s20 + $0x8] sm:$0xf] }
 0x1d6   : > { %vm7176_vm4 = vcmp.le.f32.partialorder %v8978_v48, 0.7853982  ;;  %v2622_v11 = vsel %vm2608_vm1, %v2619_v2, %v2621_v63  ;;  %v7188_v30 = vsub.s32 %v2011_v56, %v2014_v3  ;;  %v8848_v48 = vand.u32 2147483647, %v7067_v57 }
 0x1d7   : > { %v7191_v52 = vmul.u32.u64.low %v7143_v35, %v2622_v11  ;;  %v7192_v7 = vmul.u32.u64.high %v7143_v35, %v2622_v11, %v7191_v52  ;;  %v2243_v51 = vxor.u32 2147483648, %v7140_v59  ;;  %v2869_v9 = vand.u32 2147483647, %v2868_v17 }
 0x1d8   : > { %v2614_v49 = vsel %vm2608_vm1, %v2611_v27, %v2613_v20  ;;  %v5531_v5 = vadd.s32 4294967169, %v3209_v37  ;;  %v7201_v2 = vsel %vm7162_vm12, %v6607_v43, %v7079_v25  ;;  %v8981_v16 = vsub.f32 1.0, %v6674_v6 }
 0x1d9   : > { %v1391_v15 = vrot.slane %v6037_v13, %v7070_v24  ;;  %v2017_v40 = vsub.s32 0, %v7188_v30  ;;  %v8982_v58 = vsub.s32 4, %v6994_v18  ;;  %v2871_v17 = vcvt.s32.f32 %v2864_v45 }
 0x1da   : > { %v1352_v56 = vrot.slane %v8981_v16, %v7070_v24  ;;  %v2633_v27 = vadd.s32 1, %v7185_v38  ;;  %v3215_v25 = vadd.s32 1, %v5531_v5  ;;  %v2630_v6 = vmul.u32 %v7143_v35, %v2614_v49 }
 0x1db   : > { %v2246_v37 = vsel %vm2161_vm13, %v8982_v58, %v6994_v18  ;;  %v5484_v3 = vmin.u32 %v2017_v40, %v7188_v30  ;;  %vm2632_vm5 = vc.u32 %v7192_v7, %v7184_v60  ;;  %v3212_v20 = vand.u32 8388607, %v8848_v48 }
 0x1dc   : > { %v2244_v19 = vsel %vm2161_vm13, %v2243_v51, %v7140_v59  ;;  %v7224_v63 = vmul.f32 %v2871_v17, %v2869_v9  ;;  %v2634_v18 = vsel %vm2632_vm5, %v2633_v27, %v7185_v38  ;;  %vm3216_vm6 = vcmp.gt.s32.totalorder %v3215_v25, 0 }
 0x1dd   : > { %v7228_v45 = vrot.slane %v1352_v56, %v7070_v24  ;;  %v2019_v11 = vclz %v5484_v3  ;;  %v2635_v35 = vadd.s32 %v2634_v18, %v2630_v6  ;;  %v3217_v52 = vsel %vm3216_vm6, %v3215_v25, 0  ;;  %v7255_v3 = vpop.f32.mrf.mxu0 }
 0x1de   : > { %5977 = vcosq.f32 %v7201_v2  ;;  %v7233_v49 = vsel %vm7176_vm4, 0, %v2246_v37  ;;  %v7236_v5 = vrot.slane %v1391_v15, %v7070_v24  ;;  %v3219_v59 = vand.u32 31, %v3217_v52 }
 0x1df   : > { %8983 = vst [vmem:[#allocation26_spill] sm:$0xff] %v7228_v45  ;;  %8984 = vst [vmem:[#allocation27_spill] sm:$0xff] %v7233_v49  ;;  %v7241_v38 = vsel %vm7176_vm4, %v6812_v4, %v2244_v19  ;;  %v5485_v51 = vadd.s32 4294967294, %v2019_v11  ;;  %v2636_v9 = vadd.s32 536870912, %v2635_v35  ;;  %v1252_v16 = vmul.f32 %v6557_v61, %v6884_v39 }
 0x1e0   : > { %8985 = vst [vmem:[#allocation28_spill] sm:$0xff] %v7236_v5  ;;  %v2007_v13 = vadd.s32 %v7120_v33, %v7138_v14  ;;  %v3213_v40 = vor.u32 8388608, %v3212_v20  ;;  %v3220_v58 = vsub.s32 32, %v3219_v59  ;;  %v3222_v37 = vshll.u32 %v8960_v26, %v3219_v59 }
 0x1e1   : > { %vm5486_vm7 = vcmp.lt.s32.totalorder %v5485_v51, 0  ;;  %v7248_v15 = vshrl.u32 %v2636_v9, 30  ;;  %v3225_v29 = vshll.u32 %v8950_v34, %v3219_v59  ;;  %v3228_v61 = vshll.u32 %v8951_v54, %v3219_v59 }
 0x1e2   : > { %v2022_v17 = vsel %vm5486_vm7, 0, %v5485_v51  ;;  %v3223_v27 = vshrl.u32 %v8950_v34, %v3220_v58  ;;  %v3226_v25 = vshrl.u32 %v8951_v54, %v3220_v58  ;;  %v7259_v20 = vadd.f32 %v1252_v16, %v7255_v3 }
 0x1e3   : > { %v2023_v6 = vsub.s32 32, %v2022_v17  ;;  %v2027_v33 = vsub.s32 4294967266, %v2022_v17  ;;  %v2638_v14 = vshll.u32 %v7248_v15, 30  ;;  %v3229_v19 = vshrl.u32 %v8952_v21, %v3220_v58 }
 0x1e4   : > { %v3231_v18 = vshll.u32 %v8952_v21, %v3219_v59  ;;  %v3234_v11 = vshll.u32 %v8970_v8, %v3219_v59  ;;  %v1291_v51 = vmul.f32 %v6560_v62, %v6884_v39  ;;  %v3218_v56 = vshrl.u32 %v3217_v52, 5 }
 0x1e5   : > { %v2028_v9 = vadd.s32 127, %v2027_v33  ;;  %v7266_v48 = vsub.s32 %v2635_v35, %v2638_v14  ;;  %v3232_v5 = vshrl.u32 %v8970_v8, %v3220_v58  ;;  %v3224_v55 = vor.u32 %v3223_v27, %v3222_v37 }
 0x1e6   : > { %v3227_v45 = vor.u32 %v3226_v25, %v3225_v29  ;;  %v3230_v4 = vor.u32 %v3229_v19, %v3228_v61  ;;  %v3235_v16 = vshrl.u32 %v8956_v46, %v3220_v58  ;;  %vm2791_vm8 = vcmp.lt.s32.totalorder %v6859_v1, 0 }
 0x1e7   : > { %v2025_v49 = vshrl.u32 %v2007_v13, %v2023_v6  ;;  %v2641_v41 = vsub.s32 0, %v7266_v48  ;;  %v7272_v59 = vshll.u32 %v3213_v40, 8  ;;  %v1746_v62 = vand.u32 2139095040, %v7259_v20 }
 0x1e8   : > { %v2029_v33 = vshll.u32 %v2028_v9, 23  ;;  %v3221_v35 = vshrl.u32 %v8960_v26, %v3220_v58  ;;  %v3233_v52 = vor.u32 %v3232_v5, %v3231_v18  ;;  %v3236_v14 = vor.u32 %v3235_v16, %v3234_v11 }
 0x1e9   : > { %v2024_v37 = vshll.u32 %v7188_v30, %v2022_v17  ;;  %v5508_v29 = vmin.u32 %v2641_v41, %v7266_v48  ;;  %vm3237_vm9 = vcmp.lt.s32.totalorder %v3218_v56, 1  ;;  %vm3240_vm10 = vcmp.lt.s32.totalorder %v3218_v56, 4 }
 0x1ea   : > { %v8986_v27 = vand.u32 2147483647, %v6859_v1  ;;  %vm3239_vm13 = vcmp.lt.s32.totalorder %v3218_v56, 3  ;;  %v3242_v40 = vsel %vm3240_vm10, %v3230_v4, 2102212464  ;;  %v3245_v25 = vsel %vm3237_vm9, %v3224_v55, %v3227_v45 }
 0x1eb   : > { %v3246_v61 = vsel %vm3240_vm10, %v3233_v52, 920167782  ;;  %v7285_v58 = vpop.eup %5977  ;;  %v2026_v5 = vor.u32 %v2025_v49, %v2024_v37  ;;  %v2643_v6 = vclz %v5508_v29  ;;  %vm3238_vm1 = vcmp.lt.s32.totalorder %v3218_v56, 2 }
 0x1ec   : > { %vm7280_vm11 = vcmp.le.f32.partialorder %v8986_v27, 0.7853982  ;;  %8989 = vst [vmem:[#allocation29_spill] sm:$0xff] %v7285_v58  ;;  %v3247_v41 = vsel %vm3239_vm13, %v3230_v4, %v3246_v61  ;;  %v2030_v30 = vor.u32 4788187, %v2029_v33  ;;  %v3249_v19 = vsel %vm3237_vm9, %v3227_v45, %v3230_v4 }
 0x1ed   : > { %v3248_v17 = vsel %vm3238_vm1, %v3245_v25, %v3247_v41  ;;  %v3250_v18 = vsel %vm3240_vm10, %v3236_v14, 1326507024  ;;  %v5509_v11 = vadd.s32 4294967294, %v2643_v6  ;;  %v3241_v9 = vsel %vm3237_vm9, %v3221_v35, %v3224_v55 }
 0x1ee   : > { %v3243_v16 = vsel %vm3239_vm13, %v3227_v45, %v3242_v40  ;;  %v3251_v27 = vsel %vm3239_vm13, %v3233_v52, %v3250_v18  ;;  %v7295_v49 = vmul.u32.u64.low %v7272_v59, %v3248_v17  ;;  %v7296_v37 = vmul.u32.u64.high %v7272_v59, %v3248_v17, %v7295_v49 }
 0x1ef   : > { %v3252_v58 = vsel %vm3238_vm1, %v3249_v19, %v3251_v27  ;;  %v1747_v33 = vshrl.u32 %v1746_v62, 23  ;;  %vm5510_vm3 = vcmp.lt.s32.totalorder %v5509_v11, 0  ;;  %v8858_v14 = vand.u32 2147483647, %v7259_v20 }
 0x1f0   : > { %v7300_v29 = vmul.u32.u64.low %v7272_v59, %v3252_v58  ;;  %v7301_v4 = vmul.u32.u64.high %v7272_v59, %v3252_v58, %v7300_v29  ;;  %v8990_v55 = vxor.u32 2147483648, %v7224_v63  ;;  %v2031_v35 = vand.u32 2147483647, %v2030_v30 }
 0x1f1   : > { %v7309_v52 = vsel %vm5510_vm3, 0, %v5509_v11  ;;  %v5475_v40 = vadd.s32 4294967169, %v1747_v33  ;;  %5979 = vsinq.f32 %v7201_v2  ;;  %v2875_v62 = vsub.s32 4, %v7075_v28 }
 0x1f2   : > { %v2874_v45 = vsel %vm2791_vm8, %v8990_v55, %v7224_v63  ;;  %v2651_v25 = vsub.s32 4294967266, %v7309_v52  ;;  %v3244_v61 = vsel %vm3238_vm1, %v3241_v9, %v3243_v16  ;;  %5981 = vcosq.f32 %v7241_v38 }
 0x1f3   : > { %v2033_v58 = vcvt.s32.f32 %v2026_v5  ;;  %v3263_v6 = vadd.s32 1, %v7296_v37  ;;  %v1753_v41 = vadd.s32 1, %v5475_v40  ;;  %v7320_v63 = vsel %vm7280_vm11, %v6859_v1, %v2874_v45 }
 0x1f4   : > { %v7323_v30 = vadd.f32 %v1291_v51, %v7255_v3  ;;  %v1330_v2 = vmul.f32 %v6565_v0, %v6884_v39  ;;  %v1750_v56 = vand.u32 8388607, %v8858_v14  ;;  %v3260_v5 = vmul.u32 %v7272_v59, %v3244_v61 }
 0x1f5   : > { %v2034_v17 = vmul.f32 %v2033_v58, %v2031_v35  ;;  %vm3262_vm2 = vc.u32 %v7301_v4, %v7295_v49  ;;  %vm1754_vm4 = vcmp.gt.s32.totalorder %v1753_v41, 0  ;;  %vm8905_vm5 = vcmp.lt.s32.totalorder %v7000_v42, 0 }
 0x1f6   : > { %vm2577_vm6 = vcmp.lt.s32.totalorder %v7038_v44, 0  ;;  %v2647_v51 = vsub.s32 32, %v7309_v52  ;;  %v2652_v19 = vadd.s32 127, %v2651_v25  ;;  %v3264_v18 = vsel %vm3262_vm2, %v3263_v6, %v7296_v37 }
 0x1f7   : > { %v1755_v0 = vsel %vm1754_vm4, %v1753_v41, 0  ;;  %5983 = vsinq.f32 %v7241_v38  ;;  %v7340_v39 = vsel %vm2791_vm8, %v2875_v62, %v7075_v28  ;;  %v3265_v59 = vadd.s32 %v3264_v18, %v3260_v5 }
 0x1f8   : > { %v1757_v11 = vand.u32 31, %v1755_v0  ;;  %5985 = vcosq.f32 %v7320_v63  ;;  %v2631_v9 = vadd.s32 %v7184_v60, %v7192_v7  ;;  %v2661_v16 = vsub.s32 4, %v7248_v15 }
 0x1f9   : > { %v7347_v27 = vadd.f32 %v1330_v2, %v7255_v3  ;;  %v2035_v37 = vxor.u32 2147483648, %v2034_v17  ;;  %v3266_v33 = vadd.s32 536870912, %v3265_v59  ;;  %v1751_v38 = vor.u32 8388608, %v1750_v56 }
 0x1fa   : > { %v1758_v29 = vsub.s32 32, %v1757_v11  ;;  %v2649_v55 = vshrl.u32 %v2631_v9, %v2647_v51  ;;  %v2653_v45 = vshll.u32 %v2652_v19, 23  ;;  %v1760_v28 = vshll.u32 %v8960_v26, %v1757_v11 }
 0x1fb   : > { %8991 = vst [vmem:[#allocation30_spill] sm:$0xff] %v7347_v27  ;;  %v7351_v40 = vshrl.u32 %v3266_v33, 30  ;;  %v1763_v60 = vshll.u32 %v8950_v34, %v1757_v11  ;;  %v1769_v25 = vshll.u32 %v8952_v21, %v1757_v11  ;;  %v2648_v6 = vshll.u32 %v7266_v48, %v7309_v52 }
 0x1fc   : > { %v1761_v62 = vshrl.u32 %v8950_v34, %v1758_v29  ;;  %v1764_v7 = vshrl.u32 %v8951_v54, %v1758_v29  ;;  %v1767_v3 = vshrl.u32 %v8952_v21, %v1758_v29  ;;  %v1770_v61 = vshrl.u32 %v8970_v8, %v1758_v29 }
 0x1fd   : > { %v1773_v58 = vshrl.u32 %v8956_v46, %v1758_v29  ;;  %v3268_v41 = vshll.u32 %v7351_v40, 30  ;;  %v1756_v2 = vshrl.u32 %v1755_v0, 5  ;;  %v1766_v56 = vshll.u32 %v8951_v54, %v1757_v11 }
 0x1fe   : > { %v1762_v5 = vor.u32 %v1761_v62, %v1760_v28  ;;  %v1765_v51 = vor.u32 %v1764_v7, %v1763_v60  ;;  %v1771_v19 = vor.u32 %v1770_v61, %v1769_v25  ;;  %v1772_v18 = vshll.u32 %v8970_v8, %v1757_v11  ;;  %v7365_v9 = vpop.eup %5979 }
 0x1ff   : > { %v2036_v33 = vsel %vm8905_vm5, %v2035_v37, %v2034_v17  ;;  %v2662_v14 = vsel %vm2577_vm6, %v2661_v16, %v7248_v15  ;;  %v7372_v48 = vsub.s32 %v3265_v59, %v3268_v41  ;;  %v1768_v52 = vor.u32 %v1767_v3, %v1766_v56  ;;  %v7374_v0 = vpop.eup %5981 }
 0x200   : > { %8992 = vst [vmem:[#allocation31_spill] sm:$0xff] %v7374_v0  ;;  %v2650_v35 = vor.u32 %v2649_v55, %v2648_v6  ;;  %v2654_v28 = vor.u32 4788187, %v2653_v45  ;;  %v1774_v62 = vor.u32 %v1773_v58, %v1772_v18  ;;  %v1791_v60 = vshll.u32 %v1751_v38, 8 }
 0x201   : > { %v8993_v11 = vand.u32 2147483647, %v7000_v42  ;;  %v8994_v7 = vmov 0  ;;  %v8997_v17 = vand.u32 2147483647, %v7038_v44  ;;  %v3271_v15 = vsub.s32 0, %v7372_v48 }
 0x202   : > { %vm1775_vm9 = vcmp.lt.s32.totalorder %v1756_v2, 1  ;;  %vm1778_vm10 = vcmp.lt.s32.totalorder %v1756_v2, 4  ;;  %v2370_v59 = vand.u32 2139095040, %v7323_v30  ;;  %vm1777_vm13 = vcmp.lt.s32.totalorder %v1756_v2, 3 }
 0x203   : > { %vm7378_vm7 = vcmp.le.f32.partialorder %v8993_v11, 0.7853982  ;;  %vm7384_vm8 = vcmp.le.f32.partialorder %v8997_v17, 0.7853982  ;;  %v1783_v16 = vsel %vm1775_vm9, %v1762_v5, %v1765_v51  ;;  %v1784_v38 = vsel %vm1778_vm10, %v1771_v19, 920167782 }
 0x204   : > { %v8995_v7 = vsel %vm7378_vm7, 4294967295, %v8994_v7  ;;  %v9000_v55 = vand.u32 2147483647, %v7323_v30  ;;  %v5532_v3 = vmin.u32 %v3271_v15, %v7372_v48  ;;  %vm1776_vm1 = vcmp.lt.s32.totalorder %v1756_v2, 2  ;;  %v7395_v58 = vpop.eup %5983 }
 0x205   : > { %8996 = vst [vmem:[#allocation32_spill] sm:$0xff] %v8995_v7  ;;  %v1780_v25 = vsel %vm1778_vm10, %v1768_v52, 2102212464  ;;  %v1785_v61 = vsel %vm1777_vm13, %v1768_v52, %v1784_v38  ;;  %9001 = vst [vmem:[#allocation33_spill] sm:$0xff] %v7395_v58  ;;  %v1759_v6 = vshrl.u32 %v8960_v26, %v1758_v29  ;;  %v1787_v56 = vsel %vm1775_vm9, %v1765_v51, %v1768_v52  ;;  %v7400_v11 = vpop.eup %5985 }
 0x206   : > { %v2374_v45 = vand.u32 8388607, %v9000_v55  ;;  %v1786_v41 = vsel %vm1776_vm1, %v1783_v16, %v1785_v61  ;;  %v1788_v18 = vsel %vm1778_vm10, %v1774_v62, 1326507024  ;;  %9002 = vst [vmem:[#allocation34_spill] sm:$0xff] %v7400_v11  ;;  %v3273_v17 = vclz %v5532_v3 }
 0x207   : > { %v1789_v55 = vsel %vm1777_vm13, %v1771_v19, %v1788_v18  ;;  %v7403_v1 = vmul.u32.u64.low %v1791_v60, %v1786_v41  ;;  %v7404_v15 = vmul.u32.u64.high %v1791_v60, %v1786_v41, %v7403_v1  ;;  %v1779_v38 = vsel %vm1775_vm9, %v1759_v6, %v1762_v5 }
 0x208   : > { %v1781_v0 = vsel %vm1777_vm13, %v1765_v51, %v1780_v25  ;;  %v1790_v29 = vsel %vm1776_vm1, %v1787_v56, %v1789_v55  ;;  %v2371_v58 = vshrl.u32 %v2370_v59, 23  ;;  %v2655_v16 = vand.u32 2147483647, %v2654_v28 }
 0x209   : > { %v5533_v61 = vadd.s32 4294967294, %v3273_v17  ;;  %v7410_v52 = vmul.u32.u64.low %v1791_v60, %v1790_v29  ;;  %v7411_v62 = vmul.u32.u64.high %v1791_v60, %v1790_v29, %v7410_v52  ;;  %v7416_v19 = vsel %vm7280_vm11, 0, %v7340_v39 }
 0x20a   : > { %9003 = vst [vmem:[#allocation35_spill] sm:$0xff] %v7416_v19  ;;  %5987 = vsinq.f32 %v7320_v63  ;;  %v5499_v3 = vadd.s32 4294967169, %v2371_v58  ;;  %v3000_v5 = vand.u32 2139095040, %v7347_v27  ;;  %v2657_v6 = vcvt.s32.f32 %v2650_v35 }
 0x20b   : > { %vm5534_vm3 = vcmp.lt.s32.totalorder %v5533_v61, 0  ;;  %v1782_v51 = vsel %vm1776_vm1, %v1779_v38, %v1781_v0  ;;  %v1801_v28 = vadd.s32 1, %v7404_v15  ;;  %v2039_v59 = vsel %vm7378_vm7, %v7000_v42, %v2036_v33 }
 0x20c   : > { %v7427_v13 = vsel %vm7384_vm8, 0, %v2662_v14  ;;  %v7429_v39 = vsel %vm5534_vm3, 0, %v5533_v61  ;;  %v2377_v63 = vadd.s32 1, %v5499_v3  ;;  %v7431_v25 = vmul.f32 %v2657_v6, %v2655_v16 }
 0x20d   : > { %9004 = vst [vmem:[#allocation36_spill] sm:$0xff] %v7427_v13  ;;  %v3281_v35 = vsub.s32 4294967266, %v7429_v39  ;;  %v2375_v58 = vor.u32 8388608, %v2374_v45  ;;  %v8863_v2 = vand.u32 2147483647, %v7347_v27  ;;  %v1798_v0 = vmul.u32 %v1791_v60, %v1782_v51 }
 0x20e   : > { %vm1800_vm11 = vc.u32 %v7411_v62, %v7403_v1  ;;  %vm2378_vm2 = vcmp.gt.s32.totalorder %v2377_v63, 0  ;;  %v3001_v33 = vshrl.u32 %v3000_v5, 23  ;;  %5989 = vcosq.f32 %v2039_v59 }
 0x20f   : > { %v3282_v41 = vadd.s32 127, %v3281_v35  ;;  %v1802_v14 = vsel %vm1800_vm11, %v1801_v28, %v7404_v15  ;;  %v2379_v56 = vsel %vm2378_vm2, %v2377_v63, 0  ;;  %5991 = vsinq.f32 %v2039_v59 }
 0x210   : > { %v3261_v18 = vadd.s32 %v7295_v49, %v7301_v4  ;;  %v1803_v17 = vadd.s32 %v1802_v14, %v1798_v0  ;;  %v2381_v55 = vand.u32 31, %v2379_v56  ;;  %v2659_v45 = vxor.u32 2147483648, %v7431_v25 }
 0x211   : > { %v3291_v60 = vsub.s32 4, %v7351_v40  ;;  %v7442_v38 = vshll.u32 %v2375_v58, 8  ;;  %v7446_v29 = vand.u32 8388607, %v8863_v2  ;;  %v3277_v16 = vsub.s32 32, %v7429_v39 }
 0x212   : > { %v1804_v15 = vadd.s32 536870912, %v1803_v17  ;;  %v2382_v61 = vsub.s32 32, %v2381_v55  ;;  %v5523_v52 = vadd.s32 4294967169, %v3001_v33  ;;  %v3283_v3 = vshll.u32 %v3282_v41, 23 }
 0x213   : > { %v2380_v5 = vshrl.u32 %v2379_v56, 5  ;;  %v2384_v49 = vshll.u32 %v8960_v26, %v2381_v55  ;;  %v2387_v4 = vshll.u32 %v8950_v34, %v2381_v55  ;;  %v2390_v59 = vshll.u32 %v8951_v54, %v2381_v55 }
 0x214   : > { %v7451_v6 = vshrl.u32 %v1804_v15, 30  ;;  %v2385_v51 = vshrl.u32 %v8950_v34, %v2382_v61  ;;  %v2388_v28 = vshrl.u32 %v8951_v54, %v2382_v61  ;;  %vm3207_vm4 = vcmp.lt.s32.totalorder %v7067_v57, 0 }
 0x215   : > { %v2391_v63 = vshrl.u32 %v8952_v21, %v2382_v61  ;;  %v2393_v35 = vshll.u32 %v8952_v21, %v2381_v55  ;;  %v2394_v58 = vshrl.u32 %v8970_v8, %v2382_v61  ;;  %v2396_v0 = vshll.u32 %v8970_v8, %v2381_v55 }
 0x216   : > { %9005 = vst [vmem:[#allocation37_spill] sm:$0xff] %v7451_v6  ;;  %v1806_v33 = vshll.u32 %v7451_v6, 30  ;;  %v2386_v41 = vor.u32 %v2385_v51, %v2384_v49  ;;  %v2389_v14 = vor.u32 %v2388_v28, %v2387_v4  ;;  %v2397_v56 = vshrl.u32 %v8956_v46, %v2382_v61 }
 0x217   : > { %v7463_v15 = vpop.eup %5987  ;;  %v3278_v2 = vshll.u32 %v7372_v48, %v7429_v39  ;;  %v3279_v13 = vshrl.u32 %v3261_v18, %v3277_v16  ;;  %v2392_v7 = vor.u32 %v2391_v63, %v2390_v59  ;;  %v2395_v42 = vor.u32 %v2394_v58, %v2393_v35 }
 0x218   : > { %v9006_v11 = vand.u32 2147483647, %v7067_v57  ;;  %v7473_v55 = vsub.s32 %v1803_v17, %v1806_v33  ;;  %v2398_v49 = vor.u32 %v2397_v56, %v2396_v0  ;;  %vm2399_vm10 = vcmp.lt.s32.totalorder %v2380_v5, 1 }
 0x219   : > { %v3007_v4 = vadd.s32 1, %v5523_v52  ;;  %v3284_v51 = vor.u32 4788187, %v3283_v3  ;;  %v2383_v28 = vshrl.u32 %v8960_v26, %v2382_v61  ;;  %vm2402_vm13 = vcmp.lt.s32.totalorder %v2380_v5, 4 }
 0x21a   : > { %vm7469_vm9 = vcmp.le.f32.partialorder %v9006_v11, 0.7853982  ;;  %v2407_v48 = vsel %vm2399_vm10, %v2386_v41, %v2389_v14  ;;  %v1809_v39 = vsub.s32 0, %v7473_v55  ;;  %vm2401_vm1 = vcmp.lt.s32.totalorder %v2380_v5, 3 }
 0x21b   : > { %v2404_v18 = vsel %vm2402_vm13, %v2392_v7, 2102212464  ;;  %v2408_v16 = vsel %vm2402_vm13, %v2395_v42, 920167782  ;;  %vm2400_vm3 = vcmp.lt.s32.totalorder %v2380_v5, 2  ;;  %v2411_v59 = vsel %vm2399_vm10, %v2389_v14, %v2392_v7  ;;  %v7479_v63 = vpop.eup %5989 }
 0x21c   : > { %v2409_v11 = vsel %vm2401_vm1, %v2392_v7, %v2408_v16  ;;  %v2412_v17 = vsel %vm2402_vm13, %v2398_v49, 1326507024  ;;  %9009 = vst [vmem:[#allocation38_spill] sm:$0xff] %v7479_v63  ;;  %v3280_v35 = vor.u32 %v3279_v13, %v3278_v2  ;;  %v5476_v52 = vmin.u32 %v1809_v39, %v7473_v55  ;;  %v7484_v58 = vpop.eup %5991 }
 0x21d   : > { %v2403_v61 = vsel %vm2399_vm10, %v2383_v28, %v2386_v41  ;;  %v2410_v3 = vsel %vm2400_vm3, %v2407_v48, %v2409_v11  ;;  %9010 = vst [vmem:[#allocation39_spill] sm:$0xff] %v7484_v58  ;;  %v2405_v0 = vsel %vm2401_vm1, %v2389_v14, %v2404_v18  ;;  %v2413_v33 = vsel %vm2401_vm1, %v2395_v42, %v2412_v17  ;;  %v7519_v17 = vpop.f32.mrf.mxu1 }
 0x21e   : > { %v7487_v56 = vmul.u32.u64.low %v7442_v38, %v2410_v3  ;;  %v7488_v6 = vmul.u32.u64.high %v7442_v38, %v2410_v3, %v7487_v56  ;;  %v3285_v7 = vand.u32 2147483647, %v3284_v51  ;;  %v3292_v13 = vsel %vm3207_vm4, %v3291_v60, %v7351_v40 }
 0x21f   : > { %v1811_v2 = vclz %v5476_v52  ;;  %v2414_v49 = vsel %vm2400_vm3, %v2411_v59, %v2413_v33  ;;  %v2660_v41 = vsel %vm2577_vm6, %v2659_v45, %v7431_v25  ;;  %vm3008_vm11 = vcmp.gt.s32.totalorder %v3007_v4, 0  ;;  %v9012_v52 = vld [vmem:[#allocation12_spill] sm:$0xff] }
 0x220   : > { %v7499_v14 = vmul.u32.u64.low %v7442_v38, %v2414_v49  ;;  %v7500_v42 = vmul.u32.u64.high %v7442_v38, %v2414_v49, %v7499_v14  ;;  %v3287_v28 = vcvt.s32.f32 %v3280_v35  ;;  %v2406_v51 = vsel %vm2400_vm3, %v2403_v61, %v2405_v0 }
 0x221   : > { %v5477_v48 = vadd.s32 4294967294, %v1811_v2  ;;  %v3009_v39 = vsel %vm3008_vm11, %v3007_v4, 0  ;;  %v7505_v40 = vsel %vm7469_vm9, 0, %v3292_v13  ;;  %v2425_v60 = vadd.s32 1, %v7488_v6 }
 0x222   : > { %9011 = vst [vmem:[#allocation40_spill] sm:$0xff] %v7505_v40  ;;  %v3005_v18 = vor.u32 8388608, %v7446_v29  ;;  %v3011_v16 = vand.u32 31, %v3009_v39  ;;  %v7512_v25 = vsel %vm7384_vm8, %v7038_v44, %v2660_v41  ;;  %v3288_v45 = vmul.f32 %v3287_v28, %v3285_v7 }
 0x223   : > { %vm5478_vm6 = vcmp.lt.s32.totalorder %v5477_v48, 0  ;;  %v1251_v5 = vmul.f32 %v6777_v12, %v6871_v31  ;;  %v2422_v11 = vmul.u32 %v7442_v38, %v2406_v51  ;;  %vm2424_vm2 = vc.u32 %v7500_v42, %v7487_v56 }
 0x224   : > { %v1814_v4 = vsel %vm5478_vm6, 0, %v5477_v48  ;;  %v3012_v59 = vsub.s32 32, %v3011_v16  ;;  %v2426_v37 = vsel %vm2424_vm2, %v2425_v60, %v7488_v6  ;;  %v1290_v61 = vmul.f32 %v9012_v52, %v6871_v31 }
 0x225   : > { %v1815_v29 = vsub.s32 32, %v1814_v4  ;;  %v1819_v35 = vsub.s32 4294967266, %v1814_v4  ;;  %v1799_v3 = vadd.s32 %v7403_v1, %v7411_v62  ;;  %v2427_v12 = vadd.s32 %v2426_v37, %v2422_v11 }
 0x226   : > { %v3015_v0 = vshrl.u32 %v8950_v34, %v3012_v59  ;;  %v7527_v38 = vshll.u32 %v3005_v18, 8  ;;  %v3014_v7 = vshll.u32 %v8960_v26, %v3011_v16  ;;  %v3018_v13 = vshrl.u32 %v8951_v54, %v3012_v59 }
 0x227   : > { %v1820_v33 = vadd.s32 127, %v1819_v35  ;;  %v7532_v2 = vadd.f32 %v1251_v5, %v7519_v17  ;;  %v3289_v6 = vxor.u32 2147483648, %v3288_v45  ;;  %v2428_v49 = vadd.s32 536870912, %v2427_v12 }
 0x228   : > { %v3020_v41 = vshll.u32 %v8951_v54, %v3011_v16  ;;  %v3021_v14 = vshrl.u32 %v8952_v21, %v3012_v59  ;;  %v1817_v1 = vshrl.u32 %v1799_v3, %v1815_v29  ;;  %v3010_v62 = vshrl.u32 %v3009_v39, 5 }
 0x229   : > { %9013 = vst [vmem:[#allocation12_spill] sm:$0xff] %v7532_v2  ;;  %v3016_v28 = vor.u32 %v3015_v0, %v3014_v7  ;;  %v3017_v48 = vshll.u32 %v8950_v34, %v3011_v16  ;;  %v7537_v51 = vshrl.u32 %v2428_v49, 30  ;;  %v3023_v18 = vshll.u32 %v8952_v21, %v3011_v16 }
 0x22a   : > { %v3022_v60 = vor.u32 %v3021_v14, %v3020_v41  ;;  %v3024_v11 = vshrl.u32 %v8970_v8, %v3012_v59  ;;  %v1821_v5 = vshll.u32 %v1820_v33, 23  ;;  %v3026_v37 = vshll.u32 %v8970_v8, %v3011_v16 }
 0x22b   : > { %v3019_v35 = vor.u32 %v3018_v13, %v3017_v48  ;;  %v3027_v52 = vshrl.u32 %v8956_v46, %v3012_v59  ;;  %v3290_v29 = vsel %vm3207_vm4, %v3289_v6, %v3288_v45  ;;  %v2430_v39 = vshll.u32 %v7537_v51, 30 }
 0x22c   : > { %v3025_v3 = vor.u32 %v3024_v11, %v3023_v18  ;;  %v7547_v0 = vadd.f32 %v1290_v61, %v7519_v17  ;;  %v1816_v7 = vshll.u32 %v7473_v55, %v1814_v4  ;;  %vm3032_vm8 = vcmp.lt.s32.totalorder %v3010_v62, 4 }
 0x22d   : > { %v3028_v49 = vor.u32 %v3027_v52, %v3026_v37  ;;  %v1642_v33 = vand.u32 2139095040, %v7532_v2  ;;  %v7551_v13 = vsub.s32 %v2427_v12, %v2430_v39  ;;  %v3013_v16 = vshrl.u32 %v8960_v26, %v3012_v59 }
 0x22e   : > { %9014 = vst [vmem:[#allocation41_spill] sm:$0xff] %v7547_v0  ;;  %vm3029_vm10 = vcmp.lt.s32.totalorder %v3010_v62, 1  ;;  %v3034_v41 = vsel %vm3032_vm8, %v3022_v60, 2102212464  ;;  %v1818_v45 = vor.u32 %v1817_v1, %v1816_v7  ;;  %v1822_v6 = vor.u32 4788187, %v1821_v5 }
 0x22f   : > { %vm3030_vm4 = vcmp.lt.s32.totalorder %v3010_v62, 2  ;;  %v3037_v14 = vsel %vm3029_vm10, %v3016_v28, %v3019_v35  ;;  %v2433_v61 = vsub.s32 0, %v7551_v13  ;;  %vm3031_vm13 = vcmp.lt.s32.totalorder %v3010_v62, 3 }
 0x230   : > { %v3038_v55 = vsel %vm3032_vm8, %v3025_v3, 920167782  ;;  %v3041_v4 = vsel %vm3029_vm10, %v3019_v35, %v3022_v60  ;;  %v3033_v48 = vsel %vm3029_vm10, %v3013_v16, %v3016_v28  ;;  %v3035_v18 = vsel %vm3031_vm13, %v3019_v35, %v3034_v41 }
 0x231   : > { %v3039_v11 = vsel %vm3031_vm13, %v3022_v60, %v3038_v55  ;;  %v3042_v12 = vsel %vm3032_vm8, %v3028_v49, 1326507024  ;;  %v5500_v59 = vmin.u32 %v2433_v61, %v7551_v13  ;;  %v1643_v1 = vshrl.u32 %v1642_v33, 23 }
 0x232   : > { %v3040_v37 = vsel %vm3030_vm4, %v3037_v14, %v3039_v11  ;;  %v3043_v52 = vsel %vm3031_vm13, %v3025_v3, %v3042_v12  ;;  %v1823_v5 = vand.u32 2147483647, %v1822_v6  ;;  %5993 = vcosq.f32 %v7512_v25 }
 0x233   : > { %v3044_v39 = vsel %vm3030_vm4, %v3041_v4, %v3043_v52  ;;  %v7562_v7 = vmul.u32.u64.low %v7527_v38, %v3040_v37  ;;  %v7563_v40 = vmul.u32.u64.high %v7527_v38, %v3040_v37, %v7562_v7  ;;  %vm2369_vm1 = vcmp.lt.s32.totalorder %v7323_v30, 0 }
 0x234   : > { %v2435_v28 = vclz %v5500_v59  ;;  %v7569_v60 = vmul.u32.u64.low %v7527_v38, %v3044_v39  ;;  %v7570_v35 = vmul.u32.u64.high %v7527_v38, %v3044_v39, %v7569_v60  ;;  %5995 = vsinq.f32 %v7512_v25 }
 0x235   : > { %v1825_v3 = vcvt.s32.f32 %v1818_v45  ;;  %v3036_v49 = vsel %vm3030_vm4, %v3033_v48, %v3035_v18  ;;  %v5471_v33 = vadd.s32 4294967169, %v1643_v1  ;;  %v3293_v16 = vsel %vm7469_vm9, %v7067_v57, %v3290_v29 }
 0x236   : > { %vm8906_vm3 = vcmp.lt.s32.totalorder %v7259_v20, 0  ;;  %v5501_v41 = vadd.s32 4294967294, %v2435_v28  ;;  %v1329_v6 = vmul.f32 %v6793_v23, %v6871_v31  ;;  %v8874_v14 = vand.u32 2147483647, %v7532_v2 }
 0x237   : > { %v1826_v61 = vmul.f32 %v1825_v3, %v1823_v5  ;;  %v3055_v55 = vadd.s32 1, %v7563_v40  ;;  %v1649_v25 = vadd.s32 1, %v5471_v33  ;;  %v2266_v62 = vand.u32 2139095040, %v7547_v0 }
 0x238   : > { %v2423_v45 = vadd.s32 %v7487_v56, %v7500_v42  ;;  %vm5502_vm11 = vcmp.lt.s32.totalorder %v5501_v41, 0  ;;  %v3052_v19 = vmul.u32 %v7527_v38, %v3036_v49  ;;  %vm3054_vm9 = vc.u32 %v7570_v35, %v7562_v7 }
 0x239   : > { %v2438_v29 = vsel %vm5502_vm11, 0, %v5501_v41  ;;  %v2453_v23 = vsub.s32 4, %v7537_v51  ;;  %v3056_v31 = vsel %vm3054_vm9, %v3055_v55, %v7563_v40  ;;  %vm1650_vm6 = vcmp.gt.s32.totalorder %v1649_v25, 0 }
 0x23a   : > { %v2439_v4 = vsub.s32 32, %v2438_v29  ;;  %v2443_v48 = vsub.s32 4294967266, %v2438_v29  ;;  %v3057_v18 = vadd.s32 %v3056_v31, %v3052_v19  ;;  %v1646_v11 = vand.u32 8388607, %v8874_v14 }
 0x23b   : > { %5997 = vcosq.f32 %v3293_v16  ;;  %v1827_v56 = vxor.u32 2147483648, %v1826_v61  ;;  %v1651_v42 = vsel %vm1650_vm6, %v1649_v25, 0  ;;  %v2267_v12 = vshrl.u32 %v2266_v62, 23 }
 0x23c   : > { %5999 = vsinq.f32 %v3293_v16  ;;  %v2441_v38 = vshrl.u32 %v2423_v45, %v2439_v4  ;;  %v2444_v59 = vadd.s32 127, %v2443_v48  ;;  %v3058_v37 = vadd.s32 536870912, %v3057_v18 }
 0x23d   : > { %v7595_v52 = vsel %vm2369_vm1, %v2453_v23, %v7537_v51  ;;  %v7598_v40 = vadd.f32 %v1329_v6, %v7519_v17  ;;  %v1653_v1 = vand.u32 31, %v1651_v42  ;;  %v8873_v5 = vand.u32 2147483647, %v7547_v0 }
 0x23e   : > { %v2440_v39 = vshll.u32 %v7551_v13, %v2438_v29  ;;  %v2445_v28 = vshll.u32 %v2444_v59, 23  ;;  %v7602_v60 = vshrl.u32 %v3058_v37, 30  ;;  %v1647_v3 = vor.u32 8388608, %v1646_v11 }
 0x23f   : > { %9015 = vst [vmem:[#allocation42_spill] sm:$0xff] %v7598_v40  ;;  %v1828_v49 = vsel %vm8906_vm3, %v1827_v56, %v1826_v61  ;;  %v1652_v33 = vshrl.u32 %v1651_v42, 5  ;;  %v1654_v16 = vsub.s32 32, %v1653_v1  ;;  %v5495_v41 = vadd.s32 4294967169, %v2267_v12  ;;  %v7609_v25 = vpop.eup %5993 }
 0x240   : > { %v2442_v51 = vor.u32 %v2441_v38, %v2440_v39  ;;  %v3060_v55 = vshll.u32 %v7602_v60, 30  ;;  %v1656_v17 = vshll.u32 %v8960_v26, %v1653_v1  ;;  %v1659_v6 = vshll.u32 %v8950_v34, %v1653_v1  ;;  %9016 = vst [vmem:[#allocation43_spill] sm:$0xff] %v7609_v25 }
 0x241   : > { %v9017_v13 = vand.u32 2147483647, %v7259_v20  ;;  %v1657_v61 = vshrl.u32 %v8950_v34, %v1654_v16  ;;  %v1660_v45 = vshrl.u32 %v8951_v54, %v1654_v16  ;;  %v1662_v19 = vshll.u32 %v8951_v54, %v1653_v1  ;;  %v7621_v23 = vpop.eup %5995 }
 0x242   : > { %v1663_v29 = vshrl.u32 %v8952_v21, %v1654_v16  ;;  %9020 = vst [vmem:[#allocation44_spill] sm:$0xff] %v7621_v23  ;;  %v2446_v31 = vor.u32 4788187, %v2445_v28  ;;  %v7623_v4 = vsub.s32 %v3057_v18, %v3060_v55  ;;  %v7625_v48 = vshll.u32 %v1647_v3, 8 }
 0x243   : > { %vm7613_vm2 = vcmp.le.f32.partialorder %v9017_v13, 0.7853982  ;;  %v7629_v11 = vand.u32 8388607, %v8873_v5  ;;  %v1658_v56 = vor.u32 %v1657_v61, %v1656_v17  ;;  %v1661_v42 = vor.u32 %v1660_v45, %v1659_v6 }
 0x244   : > { %v1664_v12 = vor.u32 %v1663_v29, %v1662_v19  ;;  %v2273_v38 = vadd.s32 1, %v5495_v41  ;;  %v3063_v59 = vsub.s32 0, %v7623_v4  ;;  %v1665_v37 = vshll.u32 %v8952_v21, %v1653_v1 }
 0x245   : > { %v1666_v39 = vshrl.u32 %v8970_v8, %v1654_v16  ;;  %vm1671_vm8 = vcmp.lt.s32.totalorder %v1652_v33, 1  ;;  %v2449_v28 = vcvt.s32.f32 %v2442_v51  ;;  %v1655_v18 = vshrl.u32 %v8960_v26, %v1654_v16 }
 0x246   : > { %v1668_v3 = vshll.u32 %v8970_v8, %v1653_v1  ;;  %v1669_v55 = vshrl.u32 %v8956_v46, %v1654_v16  ;;  %v2447_v13 = vand.u32 2147483647, %v2446_v31  ;;  %v5524_v17 = vmin.u32 %v3063_v59, %v7623_v4 }
 0x247   : > { %v1667_v6 = vor.u32 %v1666_v39, %v1665_v37  ;;  %vm1674_vm10 = vcmp.lt.s32.totalorder %v1652_v33, 4  ;;  %vm1672_vm4 = vcmp.lt.s32.totalorder %v1652_v33, 2  ;;  %v1679_v45 = vsel %vm1671_vm8, %v1658_v56, %v1661_v42 }
 0x248   : > { %v1670_v41 = vor.u32 %v1669_v55, %v1668_v3  ;;  %v1676_v61 = vsel %vm1674_vm10, %v1664_v12, 2102212464  ;;  %v7639_v19 = vpop.eup %5997  ;;  %v3065_v29 = vclz %v5524_v17  ;;  %vm1673_vm13 = vcmp.lt.s32.totalorder %v1652_v33, 3 }
 0x249   : > { %9021 = vst [vmem:[#allocation45_spill] sm:$0xff] %v7639_v19  ;;  %v1680_v51 = vsel %vm1674_vm10, %v1667_v6, 920167782  ;;  %v1683_v5 = vsel %vm1671_vm8, %v1661_v42, %v1664_v12  ;;  %v7642_v1 = vpop.eup %5999  ;;  %v1675_v16 = vsel %vm1671_vm8, %v1655_v18, %v1658_v56  ;;  %v1677_v31 = vsel %vm1673_vm13, %v1661_v42, %v1676_v61 }
 0x24a   : > { %9022 = vst [vmem:[#allocation46_spill] sm:$0xff] %v7642_v1  ;;  %v1681_v59 = vsel %vm1673_vm13, %v1664_v12, %v1680_v51  ;;  %v1684_v37 = vsel %vm1674_vm10, %v1670_v41, 1326507024  ;;  %v7648_v39 = vsel %vm7613_vm2, %v7259_v20, %v1828_v49  ;;  %v5525_v3 = vadd.s32 4294967294, %v3065_v29 }
 0x24b   : > { %v1682_v55 = vsel %vm1672_vm4, %v1679_v45, %v1681_v59  ;;  %v1685_v17 = vsel %vm1673_vm13, %v1667_v6, %v1684_v37  ;;  %v7651_v14 = vmul.f32 %v2449_v28, %v2447_v13  ;;  %v1678_v56 = vsel %vm1672_vm4, %v1675_v16, %v1677_v31 }
 0x24c   : > { %v1686_v57 = vsel %vm1672_vm4, %v1683_v5, %v1685_v17  ;;  %v7655_v19 = vmul.u32.u64.low %v7625_v48, %v1682_v55  ;;  %v7656_v1 = vmul.u32.u64.high %v7625_v48, %v1682_v55, %v7655_v19  ;;  %vm5526_vm11 = vcmp.lt.s32.totalorder %v5525_v3, 0 }
 0x24d   : > { %v7661_v42 = vmul.u32.u64.low %v7625_v48, %v1686_v57  ;;  %v7662_v49 = vmul.u32.u64.high %v7625_v48, %v1686_v57, %v7661_v42  ;;  %v3053_v12 = vadd.s32 %v7562_v7, %v7570_v35  ;;  %v3068_v18 = vsel %vm5526_vm11, 0, %v5525_v3 }
 0x24e   : > { %v2271_v28 = vor.u32 8388608, %v7629_v11  ;;  %vm2274_vm9 = vcmp.gt.s32.totalorder %v2273_v38, 0  ;;  %v3069_v5 = vsub.s32 32, %v3068_v18  ;;  %v3073_v13 = vsub.s32 4294967266, %v3068_v18 }
 0x24f   : > { %v2275_v41 = vsel %vm2274_vm9, %v2273_v38, 0  ;;  %v2451_v61 = vxor.u32 2147483648, %v7651_v14  ;;  %v1694_v33 = vmul.u32 %v7625_v48, %v1678_v56  ;;  %v1697_v45 = vadd.s32 1, %v7656_v1 }
 0x250   : > { %v2277_v57 = vand.u32 31, %v2275_v41  ;;  %v3070_v29 = vshll.u32 %v7623_v4, %v3068_v18  ;;  %v3071_v51 = vshrl.u32 %v3053_v12, %v3069_v5  ;;  %v3074_v7 = vadd.s32 127, %v3073_v13 }
 0x251   : > { %vm1696_vm6 = vc.u32 %v7662_v49, %v7655_v19  ;;  %v2276_v11 = vshrl.u32 %v2275_v41, 5  ;;  %vm2999_vm8 = vcmp.lt.s32.totalorder %v7347_v27, 0  ;;  %6001 = vcosq.f32 %v7648_v39 }
 0x252   : > { %v1698_v35 = vsel %vm1696_vm6, %v1697_v45, %v7656_v1  ;;  %v2278_v16 = vsub.s32 32, %v2277_v57  ;;  %v2280_v38 = vshll.u32 %v8960_v26, %v2277_v57  ;;  %v3072_v31 = vor.u32 %v3071_v51, %v3070_v29 }
 0x253   : > { %v3075_v59 = vshll.u32 %v3074_v7, 23  ;;  %v1699_v37 = vadd.s32 %v1698_v35, %v1694_v33  ;;  %v2283_v48 = vshll.u32 %v8950_v34, %v2277_v57  ;;  %v2286_v55 = vshll.u32 %v8951_v54, %v2277_v57 }
 0x254   : > { %v2281_v3 = vshrl.u32 %v8950_v34, %v2278_v16  ;;  %v2284_v4 = vshrl.u32 %v8951_v54, %v2278_v16  ;;  %v2287_v17 = vshrl.u32 %v8952_v21, %v2278_v16  ;;  %v3079_v42 = vcvt.s32.f32 %v3072_v31 }
 0x255   : > { %v3076_v56 = vor.u32 4788187, %v3075_v59  ;;  %v1700_v1 = vadd.s32 536870912, %v1699_v37  ;;  %v2289_v12 = vshll.u32 %v8952_v21, %v2277_v57  ;;  %v2290_v41 = vshrl.u32 %v8970_v8, %v2278_v16 }
 0x256   : > { %v2282_v18 = vor.u32 %v2281_v3, %v2280_v38  ;;  %v2285_v5 = vor.u32 %v2284_v4, %v2283_v48  ;;  %v2288_v13 = vor.u32 %v2287_v17, %v2286_v55  ;;  %v2292_v29 = vshll.u32 %v8970_v8, %v2277_v57  ;;  %v9036_v55 = vld [vmem:[#allocation11_spill] sm:$0xff] }
 0x257   : > { %v3077_v33 = vand.u32 2147483647, %v3076_v56  ;;  %v7684_v45 = vshrl.u32 %v1700_v1, 30  ;;  %v2293_v51 = vshrl.u32 %v8956_v46, %v2278_v16  ;;  %v9024_v7 = vand.u32 2147483647, %v7323_v30 }
 0x258   : > { %v2291_v38 = vor.u32 %v2290_v41, %v2289_v12  ;;  %vm2295_vm4 = vcmp.lt.s32.totalorder %v2276_v11, 1  ;;  %v2311_v31 = vshll.u32 %v2271_v28, 8  ;;  %v2896_v59 = vand.u32 2139095040, %v7598_v40 }
 0x259   : > { %9023 = vst [vmem:[#allocation47_spill] sm:$0xff] %v7684_v45  ;;  %vm7690_vm10 = vcmp.le.f32.partialorder %v9024_v7, 0.7853982  ;;  %v3080_v48 = vmul.f32 %v3079_v42, %v3077_v33  ;;  %v1702_v3 = vshll.u32 %v7684_v45, 30  ;;  %v2294_v4 = vor.u32 %v2293_v51, %v2292_v29 }
 0x25a   : > { %vm2298_vm13 = vcmp.lt.s32.totalorder %v2276_v11, 4  ;;  %v9027_v57 = vand.u32 2147483647, %v7347_v27  ;;  %vm2297_vm9 = vcmp.lt.s32.totalorder %v2276_v11, 3  ;;  %v2303_v56 = vsel %vm2295_vm4, %v2282_v18, %v2285_v5 }
 0x25b   : > { %v2300_v17 = vsel %vm2298_vm13, %v2288_v13, 2102212464  ;;  %v2304_v1 = vsel %vm2298_vm13, %v2291_v38, 920167782  ;;  %v7703_v12 = vsub.s32 %v1699_v37, %v1702_v3  ;;  %v2279_v28 = vshrl.u32 %v8960_v26, %v2278_v16 }
 0x25c   : > { %vm7698_vm11 = vcmp.le.f32.partialorder %v9027_v57, 0.7853982  ;;  %vm2296_vm6 = vcmp.lt.s32.totalorder %v2276_v11, 2  ;;  %v2305_v42 = vsel %vm2297_vm9, %v2288_v13, %v2304_v1  ;;  %v3081_v41 = vxor.u32 2147483648, %v3080_v48 }
 0x25d   : > { %v2306_v33 = vsel %vm2296_vm6, %v2303_v56, %v2305_v42  ;;  %v2307_v29 = vsel %vm2295_vm4, %v2285_v5, %v2288_v13  ;;  %v2308_v51 = vsel %vm2298_vm13, %v2294_v4, 1326507024  ;;  %v1705_v7 = vsub.s32 0, %v7703_v12 }
 0x25e   : > { %v2299_v57 = vsel %vm2295_vm4, %v2279_v28, %v2282_v18  ;;  %v2301_v6 = vsel %vm2297_vm9, %v2285_v5, %v2300_v17  ;;  %v2309_v45 = vsel %vm2297_vm9, %v2291_v38, %v2308_v51  ;;  %v2452_v37 = vsel %vm2369_vm1, %v2451_v61, %v7651_v14  ;;  %v9030_v14 = vld [vmem:[#allocation15_spill] sm:$0xff] }
 0x25f   : > { %v2310_v16 = vsel %vm2296_vm6, %v2307_v29, %v2309_v45  ;;  %v7714_v3 = vmul.u32.u64.low %v2311_v31, %v2306_v33  ;;  %v7715_v1 = vmul.u32.u64.high %v2311_v31, %v2306_v33, %v7714_v3  ;;  %v5472_v13 = vmin.u32 %v1705_v7, %v7703_v12  ;;  %v9031_v61 = vld [vmem:[#allocation7_spill] sm:$0xff]  ;;  %v7748_v33 = vpop.f32.mrf.mxu0 }
 0x260   : > { %v7719_v4 = vmul.u32.u64.low %v2311_v31, %v2310_v16  ;;  %v7720_v56 = vmul.u32.u64.high %v2311_v31, %v2310_v16, %v7719_v4  ;;  %v3082_v18 = vsel %vm2999_vm8, %v3081_v41, %v3080_v48  ;;  %v2302_v5 = vsel %vm2296_vm6, %v2299_v57, %v2301_v6 }
 0x261   : > { %v2897_v38 = vshrl.u32 %v2896_v59, 23  ;;  %v1253_v45 = vmul.f32 %v9031_v61, %v9030_v14  ;;  %6003 = vsinq.f32 %v7648_v39  ;;  %v2455_v17 = vsel %vm7690_vm10, %v7323_v30, %v2452_v37  ;;  %v9034_v4 = vld [vmem:[#allocation10_spill] sm:$0xff] }
 0x262   : > { %v7734_v28 = vsel %vm7690_vm10, 0, %v7595_v52  ;;  %v1707_v42 = vclz %v5472_v13  ;;  %v9033_v11 = vsub.s32 4, %v7602_v60  ;;  %v2321_v59 = vadd.s32 1, %v7715_v1 }
 0x263   : > { %9032 = vst [vmem:[#allocation15_spill] sm:$0xff] %v7734_v28  ;;  %v8881_v39 = vand.u32 2147483647, %v7598_v40  ;;  %v5519_v48 = vadd.s32 4294967169, %v2897_v38  ;;  %v3085_v41 = vsel %vm7698_vm11, %v7347_v27, %v3082_v18  ;;  %v2318_v52 = vmul.u32 %v2311_v31, %v2302_v5 }
 0x264   : > { %v3084_v6 = vsel %vm2999_vm8, %v9033_v11, %v7602_v60  ;;  %v5473_v35 = vadd.s32 4294967294, %v1707_v42  ;;  %vm2320_vm1 = vc.u32 %v7720_v56, %v7714_v3  ;;  %6005 = vcosq.f32 %v2455_v17 }
 0x265   : > { %v2322_v29 = vsel %vm2320_vm1, %v2321_v59, %v7715_v1  ;;  %v2903_v60 = vadd.s32 1, %v5519_v48  ;;  %v7752_v51 = vadd.f32 %v1253_v45, %v7748_v33  ;;  %6007 = vsinq.f32 %v2455_v17 }
 0x266   : > { %v1695_v7 = vadd.s32 %v7655_v19, %v7662_v49  ;;  %vm5474_vm8 = vcmp.lt.s32.totalorder %v5473_v35, 0  ;;  %v2323_v57 = vadd.s32 %v2322_v29, %v2318_v52  ;;  %6009 = vcosq.f32 %v3085_v41  ;;  %v7782_v52 = vpop.eup %6001 }
 0x267   : > { %v1710_v37 = vsel %vm5474_vm8, 0, %v5473_v35  ;;  %v7758_v31 = vand.u32 8388607, %v8881_v39  ;;  %vm2904_vm10 = vcmp.gt.s32.totalorder %v2903_v60, 0  ;;  %v1292_v18 = vmul.f32 %v9034_v4, %v9030_v14  ;;  %9037 = vst [vmem:[#allocation10_spill] sm:$0xff] %v7782_v52 }
 0x268   : > { %v1711_v16 = vsub.s32 32, %v1710_v37  ;;  %v1715_v13 = vsub.s32 4294967266, %v1710_v37  ;;  %v2324_v1 = vadd.s32 536870912, %v2323_v57  ;;  %v7764_v5 = vsel %vm7698_vm11, 0, %v3084_v6 }
 0x269   : > { %9035 = vst [vmem:[#allocation7_spill] sm:$0xff] %v7764_v5  ;;  %6011 = vsinq.f32 %v3085_v41  ;;  %v2905_v19 = vsel %vm2904_vm10, %v2903_v60, 0  ;;  %v1850_v49 = vand.u32 2139095040, %v7752_v51  ;;  %v1712_v38 = vshll.u32 %v7703_v12, %v1710_v37 }
 0x26a   : > { %v1713_v61 = vshrl.u32 %v1695_v7, %v1711_v16  ;;  %v1716_v45 = vadd.s32 127, %v1715_v13  ;;  %v7768_v17 = vshrl.u32 %v2324_v1, 30  ;;  %v7771_v42 = vadd.s32 %v7714_v3, %v7720_v56 }
 0x26b   : > { %v2901_v11 = vor.u32 8388608, %v7758_v31  ;;  %v2907_v59 = vand.u32 31, %v2905_v19  ;;  %v7776_v6 = vmul.f32 %v9036_v55, %v9030_v14  ;;  %v7780_v12 = vadd.f32 %v1292_v18, %v7748_v33 }
 0x26c   : > { %v1714_v48 = vor.u32 %v1713_v61, %v1712_v38  ;;  %v1717_v41 = vshll.u32 %v1716_v45, 23  ;;  %v2326_v35 = vshll.u32 %v7768_v17, 30  ;;  %v7784_v29 = vshrl.u32 %v2905_v19, 5 }
 0x26d   : > { %v2908_v3 = vsub.s32 32, %v2907_v59  ;;  %v1851_v60 = vshrl.u32 %v1850_v49, 23  ;;  %v2910_v14 = vshll.u32 %v8960_v26, %v2907_v59  ;;  %v2913_v31 = vshll.u32 %v8950_v34, %v2907_v59 }
 0x26e   : > { %v1718_v7 = vor.u32 4788187, %v1717_v41  ;;  %v7787_v37 = vsub.s32 %v2323_v57, %v2326_v35  ;;  %v7791_v16 = vpop.eup %6003  ;;  %v1721_v13 = vcvt.s32.f32 %v1714_v48  ;;  %v2916_v18 = vshll.u32 %v8951_v54, %v2907_v59 }
 0x26f   : > { %v2911_v1 = vshrl.u32 %v8950_v34, %v2908_v3  ;;  %v2914_v4 = vshrl.u32 %v8951_v54, %v2908_v3  ;;  %vm8904_vm4 = vcmp.lt.s32.totalorder %v7532_v2, 0  ;;  %v2917_v57 = vshrl.u32 %v8952_v21, %v2908_v3 }
 0x270   : > { %v1719_v19 = vand.u32 2147483647, %v1718_v7  ;;  %v2329_v49 = vsub.s32 0, %v7787_v37  ;;  %v2919_v38 = vshll.u32 %v8952_v21, %v2907_v59  ;;  %v2920_v55 = vshrl.u32 %v8970_v8, %v2908_v3 }
 0x271   : > { %v2912_v61 = vor.u32 %v2911_v1, %v2910_v14  ;;  %v2915_v45 = vor.u32 %v2914_v4, %v2913_v31  ;;  %v2922_v48 = vshll.u32 %v8970_v8, %v2907_v59  ;;  %v7802_v41 = vpop.eup %6005  ;;  %v2918_v56 = vor.u32 %v2917_v57, %v2916_v18 }
 0x272   : > { %9038 = vst [vmem:[#allocation11_spill] sm:$0xff] %v7802_v41  ;;  %v1722_v35 = vmul.f32 %v1721_v13, %v1719_v19  ;;  %v5496_v39 = vmin.u32 %v2329_v49, %v7787_v37  ;;  %v2923_v7 = vshrl.u32 %v8956_v46, %v2908_v3  ;;  %v7806_v25 = vpop.eup %6007  ;;  %v2909_v23 = vshrl.u32 %v8960_v26, %v2908_v3 }
 0x273   : > { %9039 = vst [vmem:[#allocation48_spill] sm:$0xff] %v7806_v25  ;;  %v2921_v44 = vor.u32 %v2920_v55, %v2919_v38  ;;  %vm2925_vm13 = vcmp.lt.s32.totalorder %v7784_v29, 1  ;;  %v5479_v14 = vadd.s32 4294967169, %v1851_v60  ;;  %v7810_v31 = vpop.eup %6009  ;;  %vm2927_vm11 = vcmp.lt.s32.totalorder %v7784_v29, 3 }
 0x274   : > { %9040 = vst [vmem:[#allocation49_spill] sm:$0xff] %v7810_v31  ;;  %v2331_v1 = vclz %v5496_v39  ;;  %v2924_v59 = vor.u32 %v2923_v7, %v2922_v48  ;;  %vm2928_vm9 = vcmp.lt.s32.totalorder %v7784_v29, 4  ;;  %v1723_v13 = vxor.u32 2147483648, %v1722_v35 }
 0x275   : > { %vm2265_vm6 = vcmp.lt.s32.totalorder %v7547_v0, 0  ;;  %v2930_v4 = vsel %vm2928_vm9, %v2918_v56, 2102212464  ;;  %v2933_v3 = vsel %vm2925_vm13, %v2912_v61, %v2915_v45  ;;  %v2934_v60 = vsel %vm2928_vm9, %v2921_v44, 920167782 }
 0x276   : > { %v7821_v18 = vpop.eup %6011  ;;  %v9042_v39 = vand.u32 2147483647, %v7532_v2  ;;  %v9043_v19 = vmov 0  ;;  %v5497_v49 = vadd.s32 4294967294, %v2331_v1  ;;  %v2935_v57 = vsel %vm2927_vm11, %v2918_v56, %v2934_v60 }
 0x277   : > { %9041 = vst [vmem:[#allocation50_spill] sm:$0xff] %v7821_v18  ;;  %v2941_v38 = vshll.u32 %v2901_v11, 8  ;;  %v9046_v55 = vand.u32 2147483647, %v7752_v51  ;;  %vm2926_vm8 = vcmp.lt.s32.totalorder %v7784_v29, 2  ;;  %v2929_v7 = vsel %vm2925_vm13, %v2909_v23, %v2912_v61 }
 0x278   : > { %vm7825_vm1 = vcmp.le.f32.partialorder %v9042_v39, 0.7853982  ;;  %v2931_v39 = vsel %vm2927_vm11, %v2915_v45, %v2930_v4  ;;  %v2937_v63 = vsel %vm2925_vm13, %v2915_v45, %v2918_v56  ;;  %vm5498_vm10 = vcmp.lt.s32.totalorder %v5497_v49, 0 }
 0x279   : > { %v9044_v19 = vsel %vm7825_vm1, 4294967295, %v9043_v19  ;;  %v7833_v48 = vand.u32 8388607, %v9046_v55  ;;  %v2349_v1 = vsub.s32 4, %v7768_v17  ;;  %v2936_v60 = vsel %vm2926_vm8, %v2933_v3, %v2935_v57 }
 0x27a   : > { %9045 = vst [vmem:[#allocation51_spill] sm:$0xff] %v9044_v19  ;;  %v2938_v11 = vsel %vm2928_vm9, %v2924_v59, 1326507024  ;;  %v1724_v55 = vsel %vm8904_vm4, %v1723_v13, %v1722_v35  ;;  %v2334_v58 = vsel %vm5498_vm10, 0, %v5497_v49  ;;  %v1857_v61 = vadd.s32 1, %v5479_v14 }
 0x27b   : > { %v2939_v23 = vsel %vm2927_vm11, %v2921_v44, %v2938_v11  ;;  %v2335_v4 = vsub.s32 32, %v2334_v58  ;;  %v2339_v27 = vsub.s32 4294967266, %v2334_v58  ;;  %v2932_v31 = vsel %vm2926_vm8, %v2929_v7, %v2931_v39  ;;  %v7867_v7 = vld [vmem:[%s6534_s20] sm:$0xff] }
 0x27c   : > { %v2940_v56 = vsel %vm2926_vm8, %v2937_v63, %v2939_v23  ;;  %v7852_v3 = vmul.u32.u64.low %v2941_v38, %v2936_v60  ;;  %v7853_v57 = vmul.u32.u64.high %v2941_v38, %v2936_v60, %v7852_v3  ;;  %v2336_v59 = vshll.u32 %v7787_v37, %v2334_v58 }
 0x27d   : > { %v7849_v45 = vmul.u32.u64.low %v2941_v38, %v2940_v56  ;;  %v7850_v18 = vmul.u32.u64.high %v2941_v38, %v2940_v56, %v7849_v45  ;;  %v2337_v35 = vshrl.u32 %v7771_v42, %v2335_v4  ;;  %v2340_v13 = vadd.s32 127, %v2339_v27 }
 0x27e   : > { %vm1858_vm13 = vcmp.gt.s32.totalorder %v1857_v61, 0  ;;  %v9047_v44 = vand.u32 2147483647, %v7547_v0  ;;  %v1855_v63 = vor.u32 8388608, %v7833_v48  ;;  %v2350_v27 = vsel %vm2265_vm6, %v2349_v1, %v7768_v17 }
 0x27f   : > { %v1859_v14 = vsel %vm1858_vm13, %v1857_v61, 0  ;;  %v2338_v58 = vor.u32 %v2337_v35, %v2336_v59  ;;  %v2341_v37 = vshll.u32 %v2340_v13, 23  ;;  %v1727_v60 = vsel %vm7825_vm1, %v7532_v2, %v1724_v55 }
 0x280   : > { %vm7860_vm11 = vcmp.le.f32.partialorder %v9047_v44, 0.7853982  ;;  %v1861_v42 = vand.u32 31, %v1859_v14  ;;  %v2948_v11 = vmul.u32 %v2941_v38, %v2932_v31  ;;  %vm2950_vm9 = vc.u32 %v7850_v18, %v7852_v3 }
 0x281   : > { %v2951_v48 = vadd.s32 1, %v7853_v57  ;;  %v2342_v23 = vor.u32 4788187, %v2341_v37  ;;  %v1860_v61 = vshrl.u32 %v1859_v14, 5  ;;  %v2474_v56 = vand.u32 2139095040, %v7780_v12 }
 0x282   : > { %v1862_v4 = vsub.s32 32, %v1861_v42  ;;  %v2345_v45 = vcvt.s32.f32 %v2338_v58  ;;  %v1864_v17 = vshll.u32 %v8960_v26, %v1861_v42  ;;  %v1867_v1 = vshll.u32 %v8950_v34, %v1861_v42 }
 0x283   : > { %v2952_v59 = vsel %vm2950_vm9, %v2951_v48, %v7853_v57  ;;  %v2343_v35 = vand.u32 2147483647, %v2342_v23  ;;  %v1870_v38 = vshll.u32 %v8951_v54, %v1861_v42  ;;  %v1873_v14 = vshll.u32 %v8952_v21, %v1861_v42 }
 0x284   : > { %v2953_v55 = vadd.s32 %v2952_v59, %v2948_v11  ;;  %v1865_v31 = vshrl.u32 %v8950_v34, %v1862_v4  ;;  %v1868_v13 = vshrl.u32 %v8951_v54, %v1862_v4  ;;  %v1871_v44 = vshrl.u32 %v8952_v21, %v1862_v4 }
 0x285   : > { %v1874_v58 = vshrl.u32 %v8970_v8, %v1862_v4  ;;  %v2346_v37 = vmul.f32 %v2345_v45, %v2343_v35  ;;  %v1876_v48 = vshll.u32 %v8970_v8, %v1861_v42  ;;  %v1877_v39 = vshrl.u32 %v8956_v46, %v1862_v4 }
 0x286   : > { %v2954_v57 = vadd.s32 536870912, %v2953_v55  ;;  %v1866_v23 = vor.u32 %v1865_v31, %v1864_v17  ;;  %v1869_v11 = vor.u32 %v1868_v13, %v1867_v1  ;;  %v1872_v59 = vor.u32 %v1871_v44, %v1870_v38 }
 0x287   : > { %v1875_v49 = vor.u32 %v1874_v58, %v1873_v14  ;;  %6013 = vcosq.f32 %v1727_v60  ;;  %v7893_v19 = vsel %vm7860_vm11, 0, %v2350_v27  ;;  %v7899_v5 = vadd.f32 %v7776_v6, %v7748_v33 }
 0x288   : > { %9050 = vst [vmem:[#allocation52_spill] sm:$0xff] %v7893_v19  ;;  %v7895_v2 = vshrl.u32 %v2954_v57, 30  ;;  %v2347_v45 = vxor.u32 2147483648, %v2346_v37  ;;  %v1878_v35 = vor.u32 %v1877_v39, %v1876_v48  ;;  %v1895_v42 = vshll.u32 %v1855_v63, 8 }
 0x289   : > { %v9051_v41 = vand.u32 2147483647, %v7780_v12  ;;  %vm1879_vm8 = vcmp.lt.s32.totalorder %v1860_v61, 1  ;;  %vm1882_vm10 = vcmp.lt.s32.totalorder %v1860_v61, 4  ;;  %v2475_v31 = vshrl.u32 %v2474_v56, 23 }
 0x28a   : > { %v2956_v1 = vshll.u32 %v7895_v2, 30  ;;  %v1863_v27 = vshrl.u32 %v8960_v26, %v1862_v4  ;;  %v1884_v38 = vsel %vm1882_vm10, %v1872_v59, 2102212464  ;;  %v1887_v13 = vsel %vm1879_vm8, %v1866_v23, %v1869_v11 }
 0x28b   : > { %v2478_v17 = vand.u32 8388607, %v9051_v41  ;;  %v1888_v44 = vsel %vm1882_vm10, %v1875_v49, 920167782  ;;  %vm1880_vm13 = vcmp.lt.s32.totalorder %v1860_v61, 2  ;;  %vm1881_vm9 = vcmp.lt.s32.totalorder %v1860_v61, 3 }
 0x28c   : > { %v7905_v14 = vsub.s32 %v2953_v55, %v2956_v1  ;;  %v1891_v33 = vsel %vm1879_vm8, %v1869_v11, %v1872_v59  ;;  %v2348_v6 = vsel %vm2265_vm6, %v2347_v45, %v2346_v37  ;;  %v1883_v63 = vsel %vm1879_vm8, %v1863_v27, %v1866_v23 }
 0x28d   : > { %v1889_v41 = vsel %vm1881_vm9, %v1872_v59, %v1888_v44  ;;  %v1892_v39 = vsel %vm1882_vm10, %v1878_v35, 1326507024  ;;  %v1885_v57 = vsel %vm1881_vm9, %v1869_v11, %v1884_v38  ;;  %v5503_v1 = vadd.s32 4294967169, %v2475_v31 }
 0x28e   : > { %v2959_v58 = vsub.s32 0, %v7905_v14  ;;  %v1890_v56 = vsel %vm1880_vm13, %v1887_v13, %v1889_v41  ;;  %v1893_v4 = vsel %vm1881_vm9, %v1875_v49, %v1892_v39  ;;  %6015 = vsinq.f32 %v1727_v60 }
 0x28f   : > { %v1894_v48 = vsel %vm1880_vm13, %v1891_v33, %v1893_v4  ;;  %v7912_v19 = vmul.u32.u64.low %v1895_v42, %v1890_v56  ;;  %v7913_v55 = vmul.u32.u64.high %v1895_v42, %v1890_v56, %v7912_v19  ;;  %v1886_v59 = vsel %vm1880_vm13, %v1883_v63, %v1885_v57 }
 0x290   : > { %v5520_v25 = vmin.u32 %v2959_v58, %v7905_v14  ;;  %v7917_v37 = vmul.u32.u64.low %v1895_v42, %v1894_v48  ;;  %v7918_v23 = vmul.u32.u64.high %v1895_v42, %v1894_v48, %v7917_v37  ;;  %v2479_v45 = vor.u32 8388608, %v2478_v17 }
 0x291   : > { %v2481_v11 = vadd.s32 1, %v5503_v1  ;;  %v3104_v35 = vand.u32 2139095040, %v7899_v5  ;;  %v7925_v49 = vsel %vm7860_vm11, %v7547_v0, %v2348_v6  ;;  %v2949_v31 = vadd.s32 %v7852_v3, %v7850_v18 }
 0x292   : > { %v2961_v60 = vclz %v5520_v25  ;;  %v1905_v38 = vadd.s32 1, %v7913_v55  ;;  %v8899_v61 = vand.u32 2147483647, %v7899_v5  ;;  %v1902_v44 = vmul.u32 %v1895_v42, %v1886_v59 }
 0x293   : > { %vm2482_vm6 = vcmp.gt.s32.totalorder %v2481_v11, 0  ;;  %v3105_v17 = vshrl.u32 %v3104_v35, 23  ;;  %vm1904_vm8 = vc.u32 %v7918_v23, %v7912_v19  ;;  %v7937_v25 = vshll.u32 %v2479_v45, 8 }
 0x294   : > { %v5521_v13 = vadd.s32 4294967294, %v2961_v60  ;;  %v2483_v29 = vsel %vm2482_vm6, %v2481_v11, 0  ;;  %v7934_v33 = vpop.eup %6013  ;;  %v1906_v6 = vsel %vm1904_vm8, %v1905_v38, %v7913_v55  ;;  %v9053_v3 = vsub.f32 1.0, %v7867_v7 }
 0x295   : > { %9052 = vst [vmem:[#allocation53_spill] sm:$0xff] %v7934_v33  ;;  %v2485_v18 = vand.u32 31, %v2483_v29  ;;  %v1907_v41 = vadd.s32 %v1906_v6, %v1902_v44  ;;  %v2484_v39 = vshrl.u32 %v2483_v29, 5  ;;  %v5527_v42 = vadd.s32 4294967169, %v3105_v17 }
 0x296   : > { %v7942_v63 = vrot.slane %v9053_v3, %v7070_v24  ;;  %vm5522_vm11 = vcmp.lt.s32.totalorder %v5521_v13, 0  ;;  %v7947_v4 = vand.u32 8388607, %v8899_v61  ;;  %vm2895_vm10 = vcmp.lt.s32.totalorder %v7598_v40, 0 }
 0x297   : > { %v2964_v58 = vsel %vm5522_vm11, 0, %v5521_v13  ;;  %v2486_v57 = vsub.s32 32, %v2485_v18  ;;  %v2488_v56 = vshll.u32 %v8960_v26, %v2485_v18  ;;  %v1908_v1 = vadd.s32 536870912, %v1907_v41 }
 0x298   : > { %v2965_v48 = vsub.s32 32, %v2964_v58  ;;  %v2969_v55 = vsub.s32 4294967266, %v2964_v58  ;;  %v2491_v37 = vshll.u32 %v8950_v34, %v2485_v18  ;;  %v2966_v59 = vshll.u32 %v7905_v14, %v2964_v58 }
 0x299   : > { %v2489_v45 = vshrl.u32 %v8950_v34, %v2486_v57  ;;  %v2492_v11 = vshrl.u32 %v8951_v54, %v2486_v57  ;;  %v2494_v35 = vshll.u32 %v8951_v54, %v2485_v18  ;;  %v7954_v17 = vshrl.u32 %v1908_v1, 30 }
 0x29a   : > { %v2967_v60 = vshrl.u32 %v2949_v31, %v2965_v48  ;;  %v2970_v38 = vadd.s32 127, %v2969_v55  ;;  %v2495_v13 = vshrl.u32 %v8952_v21, %v2486_v57  ;;  %v2497_v6 = vshll.u32 %v8952_v21, %v2485_v18 }
 0x29b   : > { %v2490_v44 = vor.u32 %v2489_v45, %v2488_v56  ;;  %v2493_v29 = vor.u32 %v2492_v11, %v2491_v37  ;;  %v2498_v3 = vshrl.u32 %v8970_v8, %v2486_v57  ;;  %v1910_v58 = vshll.u32 %v7954_v17, 30  ;;  %v7960_v0 = vpop.eup %6015 }
 0x29c   : > { %v2968_v61 = vor.u32 %v2967_v60, %v2966_v59  ;;  %v2971_v14 = vshll.u32 %v2970_v38, 23  ;;  %v2496_v27 = vor.u32 %v2495_v13, %v2494_v35  ;;  %9054 = vst [vmem:[#allocation54_spill] sm:$0xff] %v7960_v0  ;;  %v2487_v31 = vshrl.u32 %v8960_v26, %v2486_v57 }
 0x29d   : > { %v2499_v48 = vor.u32 %v2498_v3, %v2497_v6  ;;  %v2500_v55 = vshll.u32 %v8970_v8, %v2485_v18  ;;  %v2501_v56 = vshrl.u32 %v8956_v46, %v2486_v57  ;;  %v7966_v45 = vsub.s32 %v1907_v41, %v1910_v58 }
 0x29e   : > { %v2972_v1 = vor.u32 4788187, %v2971_v14  ;;  %v2975_v37 = vcvt.s32.f32 %v2968_v61  ;;  %vm2503_vm13 = vcmp.lt.s32.totalorder %v2484_v39, 1  ;;  %vm2505_vm9 = vcmp.lt.s32.totalorder %v2484_v39, 3 }
 0x29f   : > { %v2502_v59 = vor.u32 %v2501_v56, %v2500_v55  ;;  %vm2506_vm6 = vcmp.lt.s32.totalorder %v2484_v39, 4  ;;  %v2507_v11 = vsel %vm2503_vm13, %v2487_v31, %v2490_v44  ;;  %v1913_v60 = vsub.s32 0, %v7966_v45  ;;  %v7974_v56 = vpop.f32.mrf.mxu0 }
 0x2a0   : > { %v2973_v35 = vand.u32 2147483647, %v2972_v1  ;;  %v2508_v38 = vsel %vm2506_vm6, %v2496_v27, 2102212464  ;;  %v2511_v13 = vsel %vm2503_vm13, %v2490_v44, %v2493_v29  ;;  %v2512_v3 = vsel %vm2506_vm6, %v2499_v48, 920167782 }
 0x2a1   : > { %v2509_v6 = vsel %vm2505_vm9, %v2493_v29, %v2508_v38  ;;  %v2515_v18 = vsel %vm2503_vm13, %v2493_v29, %v2496_v27  ;;  %v2516_v33 = vsel %vm2506_vm6, %v2502_v59, 1326507024  ;;  %v5480_v61 = vmin.u32 %v1913_v60, %v7966_v45  ;;  %v8002_v60 = vpop.f32.mrf.mxu0 }
 0x2a2   : > { %v2976_v57 = vmul.f32 %v2975_v37, %v2973_v35  ;;  %vm2504_vm8 = vcmp.lt.s32.totalorder %v2484_v39, 2  ;;  %v2513_v41 = vsel %vm2505_vm9, %v2496_v27, %v2512_v3  ;;  %v2517_v31 = vsel %vm2505_vm9, %v2499_v48, %v2516_v33 }
 0x2a3   : > { %v2510_v14 = vsel %vm2504_vm8, %v2507_v11, %v2509_v6  ;;  %v2514_v58 = vsel %vm2504_vm8, %v2511_v13, %v2513_v41  ;;  %v3109_v55 = vor.u32 8388608, %v7947_v4  ;;  %v1915_v1 = vclz %v5480_v61 }
 0x2a4   : > { %v2977_v44 = vxor.u32 2147483648, %v2976_v57  ;;  %v2518_v38 = vsel %vm2504_vm8, %v2515_v18, %v2517_v31  ;;  %v3111_v0 = vadd.s32 1, %v5527_v42  ;;  %6017 = vcosq.f32 %v7925_v49 }
 0x2a5   : > { %v7977_v29 = vmul.u32.u64.low %v7937_v25, %v2518_v38  ;;  %v7978_v37 = vmul.u32.u64.high %v7937_v25, %v2518_v38, %v7977_v29  ;;  %v7981_v59 = vmul.u32.u64.low %v7937_v25, %v2514_v58  ;;  %v7982_v35 = vmul.u32.u64.high %v7937_v25, %v2514_v58, %v7981_v59 }
 0x2a6   : > { %v9055_v27 = vand.u32 2147483647, %v7598_v40  ;;  %v9058_v39 = vsub.s32 4, %v7895_v2  ;;  %v5481_v4 = vadd.s32 4294967294, %v1915_v1  ;;  %vm3112_vm13 = vcmp.gt.s32.totalorder %v3111_v0, 0 }
 0x2a7   : > { %6019 = vsinq.f32 %v7925_v49  ;;  %v1903_v48 = vadd.s32 %v7912_v19, %v7918_v23  ;;  %v3113_v11 = vsel %vm3112_vm13, %v3111_v0, 0  ;;  %v8907_v13 = vsub.s32 7, %v6529_v50 }
 0x2a8   : > { %vm7988_vm11 = vcmp.le.f32.partialorder %v9055_v27, 0.7853982  ;;  %v7997_v42 = vsel %vm2895_vm10, %v9058_v39, %v7895_v2  ;;  %vm5482_vm9 = vcmp.lt.s32.totalorder %v5481_v4, 0  ;;  %v2526_v6 = vmul.u32 %v7937_v25, %v2510_v14 }
 0x2a9   : > { %v3115_v3 = vand.u32 31, %v3113_v11  ;;  %v8008_v2 = vrot.slane %v7942_v63, %v7070_v24  ;;  %v2978_v18 = vsel %vm2895_vm10, %v2977_v44, %v2976_v57  ;;  %v1918_v49 = vsel %vm5482_vm9, 0, %v5481_v4  ;;  %v8022_v57 = vpop.f32.mrf.mxu0 }
 0x2aa   : > { %vm2528_vm6 = vc.u32 %v7978_v37, %v7981_v59  ;;  %v8014_v0 = vshll.u32 %v3109_v55, 8  ;;  %v1919_v19 = vsub.s32 32, %v1918_v49  ;;  %v1923_v23 = vsub.s32 4294967266, %v1918_v49 }
 0x2ab   : > { %v2529_v61 = vadd.s32 1, %v7982_v35  ;;  %v8017_v41 = vshrl.u32 %v3113_v11, 5  ;;  %v1920_v25 = vshll.u32 %v7966_v45, %v1918_v49  ;;  %v3116_v14 = vsub.s32 32, %v3115_v3 }
 0x2ac   : > { %v3118_v63 = vshll.u32 %v8960_v26, %v3115_v3  ;;  %v3121_v58 = vshll.u32 %v8950_v34, %v3115_v3  ;;  %v1921_v31 = vshrl.u32 %v1903_v48, %v1919_v19  ;;  %v1924_v44 = vadd.s32 127, %v1923_v23  ;;  %v8039_v19 = vpop.f32.mrf.mxu0 }
 0x2ad   : > { %v2530_v55 = vsel %vm2528_vm6, %v2529_v61, %v7982_v35  ;;  %v3124_v1 = vshll.u32 %v8951_v54, %v3115_v3  ;;  %v3119_v29 = vshrl.u32 %v8950_v34, %v3116_v14  ;;  %v3122_v27 = vshrl.u32 %v8951_v54, %v3116_v14 }
 0x2ae   : > { %v2531_v38 = vadd.s32 %v2530_v55, %v2526_v6  ;;  %v3127_v45 = vshll.u32 %v8952_v21, %v3115_v3  ;;  %v1922_v39 = vor.u32 %v1921_v31, %v1920_v25  ;;  %v1925_v4 = vshll.u32 %v1924_v44, 23 }
 0x2af   : > { %v3125_v11 = vshrl.u32 %v8952_v21, %v3116_v14  ;;  %v3128_v49 = vshrl.u32 %v8970_v8, %v3116_v14  ;;  %v2981_v48 = vsel %vm7988_vm11, %v7598_v40, %v2978_v18  ;;  %vm8912_vm10 = vcmp.lt.s32.totalorder %v7752_v51, 0  ;;  %v9082_v40 = vld [vmem:[#allocation6_spill] sm:$0xff] }
 0x2b0   : > { %v2532_v35 = vadd.s32 536870912, %v2531_v38  ;;  %v3120_v6 = vor.u32 %v3119_v29, %v3118_v63  ;;  %v9059_v34 = vsub.f32 1.0, %v7867_v7  ;;  %v1926_v23 = vor.u32 4788187, %v1925_v4 }
 0x2b1   : > { %vm2473_vm8 = vcmp.lt.s32.totalorder %v7780_v12, 0  ;;  %v3123_v21 = vor.u32 %v3122_v27, %v3121_v58  ;;  %v3126_v61 = vor.u32 %v3125_v11, %v3124_v1  ;;  %v3129_v25 = vor.u32 %v3128_v49, %v3127_v45  ;;  %v8053_v58 = vpop.eup %6017 }
 0x2b2   : > { %v1348_v54 = vrot.slane %v9059_v34, %v8907_v13  ;;  %v9060_v31 = vand.u32 2147483647, %v7752_v51  ;;  %v2533_v63 = vshrl.u32 %v2532_v35, 30  ;;  %v3117_v44 = vshrl.u32 %v8960_v26, %v3116_v14  ;;  %9063 = vst [vmem:[#allocation55_spill] sm:$0xff] %v8053_v58 }
 0x2b3   : > { %v3130_v55 = vshll.u32 %v8970_v8, %v3115_v3  ;;  %v3131_v29 = vshrl.u32 %v8956_v46, %v3116_v14  ;;  %v1927_v34 = vand.u32 2147483647, %v1926_v23  ;;  %v1929_v4 = vcvt.s32.f32 %v1922_v39  ;;  %v688_v8 = vpop.f32.mrf.mxu0 }
 0x2b4   : > { %vm8044_vm13 = vcmp.le.f32.partialorder %v9060_v31, 0.7853982  ;;  %vm3133_vm9 = vcmp.lt.s32.totalorder %v8017_v41, 1  ;;  %vm3136_vm6 = vcmp.lt.s32.totalorder %v8017_v41, 4  ;;  %v9064_v1 = vand.u32 2147483647, %v7780_v12  ;;  %v8064_v3 = vpop.eup %6019 }
 0x2b5   : > { %v2534_v45 = vshll.u32 %v2533_v63, 30  ;;  %v3132_v26 = vor.u32 %v3131_v29, %v3130_v55  ;;  %vm3134_vm5 = vcmp.lt.s32.totalorder %v8017_v41, 2  ;;  %v3138_v46 = vsel %vm3136_vm6, %v3126_v61, 2102212464  ;;  %9067 = vst [vmem:[#allocation56_spill] sm:$0xff] %v8064_v3  ;;  %v9085_v3 = vld [vmem:[#allocation22_spill] sm:$0xff] }
 0x2b6   : > { %vm8057_vm4 = vcmp.le.f32.partialorder %v9064_v1, 0.7853982  ;;  %v1930_v14 = vmul.f32 %v1929_v4, %v1927_v34  ;;  %vm3135_vm3 = vcmp.lt.s32.totalorder %v8017_v41, 3  ;;  %v3141_v39 = vsel %vm3133_vm9, %v3120_v6, %v3123_v21 }
 0x2b7   : > { %v3142_v11 = vsel %vm3136_vm6, %v3129_v25, 920167782  ;;  %v8071_v49 = vsub.s32 %v2531_v38, %v2534_v45  ;;  %v2557_v35 = vsub.s32 4, %v2533_v63  ;;  %v3137_v23 = vsel %vm3133_vm9, %v3117_v44, %v3120_v6  ;;  %v690_v45 = vpop.f32.mrf.mxu0 }
 0x2b8   : > { %v3143_v31 = vsel %vm3135_vm3, %v3126_v61, %v3142_v11  ;;  %v1931_v55 = vxor.u32 2147483648, %v1930_v14  ;;  %v3139_v29 = vsel %vm3135_vm3, %v3123_v21, %v3138_v46  ;;  %v3145_v4 = vsel %vm3133_vm9, %v3123_v21, %v3126_v61 }
 0x2b9   : > { %v3144_v34 = vsel %vm3134_vm5, %v3141_v39, %v3143_v31  ;;  %v2537_v38 = vsub.s32 0, %v8071_v49  ;;  %v3146_v1 = vsel %vm3136_vm6, %v3132_v26, 1326507024  ;;  %v8094_v46 = vsel %vm7988_vm11, 0, %v7997_v42  ;;  %v694_v41 = vpop.f32.mrf.mxu0 }
 0x2ba   : > { %v8087_v6 = vmul.u32.u64.low %v8014_v0, %v3144_v34  ;;  %v8088_v44 = vmul.u32.u64.high %v8014_v0, %v3144_v34, %v8087_v6  ;;  %9068 = vst [vmem:[#allocation57_spill] sm:$0xff] %v8094_v46  ;;  %6021 = vcosq.f32 %v2981_v48  ;;  %v1932_v21 = vsel %vm8912_vm10, %v1931_v55, %v1930_v14 }
 0x2bb   : > { %v3147_v61 = vsel %vm3135_vm3, %v3129_v25, %v3146_v1  ;;  %v5504_v26 = vmin.u32 %v2537_v38, %v8071_v49  ;;  %v2558_v39 = vsel %vm2473_vm8, %v2557_v35, %v2533_v63  ;;  %v3140_v11 = vsel %vm3134_vm5, %v3137_v23, %v3139_v29  ;;  %v8150_v1 = vpop.f32.mrf.mxu0 }
 0x2bc   : > { %v3148_v33 = vsel %vm3134_vm5, %v3145_v4, %v3147_v61  ;;  %v1935_v42 = vsel %vm8044_vm13, %v7752_v51, %v1932_v21  ;;  %v8115_v25 = vrot.slane %v1348_v54, %v7070_v24  ;;  %6023 = vsinq.f32 %v2981_v48  ;;  %v9069_v4 = vld [vmem:[#allocation9_spill] sm:$0xff] }
 0x2bd   : > { %v8111_v14 = vmul.u32.u64.low %v8014_v0, %v3148_v33  ;;  %v8112_v31 = vmul.u32.u64.high %v8014_v0, %v3148_v33, %v8111_v14  ;;  %v2539_v55 = vclz %v5504_v26  ;;  %v3159_v63 = vadd.s32 1, %v8088_v44 }
 0x2be   : > { %v8120_v35 = vmul.f32 %v8008_v2, %v7974_v56  ;;  %v2527_v23 = vadd.s32 %v7981_v59, %v7978_v37  ;;  %v8126_v29 = vsel %vm8057_vm4, 0, %v2558_v39  ;;  %v3156_v34 = vmul.u32 %v8014_v0, %v3140_v11 }
 0x2bf   : > { %v8131_v48 = vmul.f32 %v8008_v2, %v8022_v57  ;;  %6025 = vcosq.f32 %v1935_v42  ;;  %v5505_v54 = vadd.s32 4294967294, %v2539_v55  ;;  %v1383_v56 = vrot.slane %v7867_v7, %v7070_v24 }
 0x2c0   : > { %v1517_v38 = vsub.s32 4, %v9069_v4  ;;  %6027 = vsinq.f32 %v1935_v42  ;;  %vm3158_vm5 = vc.u32 %v8112_v31, %v8087_v6  ;;  %v8140_v37 = vmul.f32 %v8115_v25, %v8002_v60 }
 0x2c1   : > { %v8144_v59 = vmul.f32 %v8115_v25, %v8039_v19  ;;  %vm5506_vm3 = vcmp.lt.s32.totalorder %v5505_v54, 0  ;;  %v3160_v0 = vsel %vm3158_vm5, %v3159_v63, %v8088_v44  ;;  %v8148_v57 = vmul.f32 %v8008_v2, %v688_v8 }
 0x2c2   : > { %v1518_v21 = vsel %vm1433_vm14, %v1517_v38, %v9069_v4  ;;  %v2542_v61 = vsel %vm5506_vm3, 0, %v5505_v54  ;;  %v3161_v26 = vadd.s32 %v3160_v0, %v3156_v34  ;;  %v8156_v60 = vrot.slane %v1383_v56, %v7070_v24  ;;  %v1078_v54 = vpop.f32.mrf.mxu0  ;;  %v9074_v38 = vld [vmem:[#allocation5_spill] sm:$0xff]  ;;  %v9079_v56 = vld [vmem:[#allocation23_spill] sm:$0xff] }
 0x2c3   : > { %9070 = vst [vmem:[#allocation9_spill] sm:$0xff] %v8144_v59  ;;  %9071 = vst [vmem:[#allocation58_spill] sm:$0xff] %v8148_v57  ;;  %v8160_v19 = vsel %vm6920_vm15, 0, %v1518_v21  ;;  %v2543_v39 = vsub.s32 32, %v2542_v61  ;;  %v2547_v44 = vsub.s32 4294967266, %v2542_v61  ;;  %v8163_v8 = vmul.f32 %v8115_v25, %v690_v45  ;;  %v9087_v59 = vld [vmem:[#allocation16_spill] sm:$0xff] }
 0x2c4   : > { %v8166_v11 = vmul.f32 %v8008_v2, %v694_v41  ;;  %v3162_v33 = vadd.s32 536870912, %v3161_v26  ;;  %v1524_v42 = vadd.s32 3, %v8160_v19  ;;  %v2148_v55 = vadd.s32 3, %v6962_v36 }
 0x2c5   : > { %9072 = vst [vmem:[#allocation59_spill] sm:$0xff] %v8163_v8  ;;  %v2544_v63 = vshll.u32 %v8071_v49, %v2542_v61  ;;  %v2545_v32 = vshrl.u32 %v2527_v23, %v2543_v39  ;;  %v2548_v34 = vadd.s32 127, %v2547_v44  ;;  %v1407_v45 = vmul.f32 %v8156_v60, %v1078_v54  ;;  %v9076_v23 = vld [vmem:[#allocation21_spill] sm:$0xff]  ;;  %v9077_v39 = vld [vmem:[#allocation19_spill] sm:$0xff] }
 0x2c6   : > { %9073 = vst [vmem:[#allocation60_spill] sm:$0xff] %v8166_v11  ;;  %v8173_v4 = vshrl.u32 %v3162_v33, 30  ;;  %v1525_v41 = vand.u32 3, %v1524_v42  ;;  %vm2147_vm14 = vweird.f32 %v9074_v38  ;;  %v2149_v14 = vand.u32 3, %v2148_v55 }
 0x2c7   : > { %v8177_v0 = vpop.eup %6021  ;;  %v2546_v21 = vor.u32 %v2545_v32, %v2544_v63  ;;  %v2549_v13 = vshll.u32 %v2548_v34, 23  ;;  %v2778_v44 = vadd.s32 3, %v9077_v39  ;;  %v9078_v54 = vxor.u32 2147483648, %v7020_v22 }
 0x2c8   : > { %9075 = vst [vmem:[#allocation5_spill] sm:$0xff] %v8177_v0  ;;  %v3164_v49 = vshll.u32 %v8173_v4, 30  ;;  %vm1527_vm15 = vcmp.eq.s32.totalorder %v1525_v41, 0  ;;  %vm1530_vm11 = vcmp.eq.s32.totalorder %v1525_v41, 2  ;;  %v3187_v32 = vsub.s32 4, %v8173_v4 }
 0x2c9   : > { %v2550_v33 = vor.u32 4788187, %v2549_v13  ;;  %v1529_v42 = vsel %vm1527_vm15, %v7017_v53, %v9078_v54  ;;  %v8187_v63 = vpop.eup %6023  ;;  %vm1526_vm9 = vcmp.lt.s32.totalorder %v1525_v41, 2  ;;  %v9081_v34 = vxor.u32 2147483648, %v7017_v53 }
 0x2ca   : > { %9080 = vst [vmem:[#allocation21_spill] sm:$0xff] %v8187_v63  ;;  %v8189_v55 = vsub.s32 %v3161_v26, %v3164_v49  ;;  %vm2777_vm6 = vweird.f32 %v9082_v40  ;;  %v2553_v58 = vcvt.s32.f32 %v2546_v21  ;;  %vm3103_vm5 = vcmp.lt.s32.totalorder %v7899_v5, 0 }
 0x2cb   : > { %v1532_v61 = vsel %vm1530_vm11, %v9081_v34, %v7020_v22  ;;  %v2551_v13 = vand.u32 2147483647, %v2550_v33  ;;  %vm2150_vm3 = vcmp.lt.s32.totalorder %v2149_v14, 2  ;;  %vm2151_vm15 = vcmp.eq.s32.totalorder %v2149_v14, 0 }
 0x2cc   : > { %v8197_v54 = vpop.eup %6025  ;;  %v3167_v26 = vsub.s32 0, %v8189_v55  ;;  %v1533_v49 = vsel %vm1526_vm9, %v1529_v42, %v1532_v61  ;;  %v9083_v0 = vxor.u32 2147483648, %v7103_v47  ;;  %vm2154_vm10 = vcmp.eq.s32.totalorder %v2149_v14, 2 }
 0x2cd   : > { %v8203_v63 = vpop.eup %6027  ;;  %v2554_v34 = vmul.f32 %v2553_v58, %v2551_v13  ;;  %v9084_v21 = vxor.u32 2147483648, %v9076_v23  ;;  %v2779_v46 = vand.u32 3, %v2778_v44  ;;  %v8916_v11 = vxor.u32 2147483648, %v9085_v3 }
 0x2ce   : > { %v2153_v41 = vsel %vm2151_vm15, %v9076_v23, %v9083_v0  ;;  %v5528_v8 = vmin.u32 %v3167_v26, %v8189_v55  ;;  %v9086_v61 = vsub.s32 7, %v6529_v50  ;;  %v1621_v0 = vsub.s32 4, %v9087_v59 }
 0x2cf   : > { %v2156_v33 = vsel %vm2154_vm10, %v9084_v21, %v7103_v47  ;;  %v2555_v14 = vxor.u32 2147483648, %v2554_v34  ;;  %vm2780_vm11 = vcmp.lt.s32.totalorder %v2779_v46, 2  ;;  %vm2781_vm9 = vcmp.eq.s32.totalorder %v2779_v46, 0 }
 0x2d0   : > { %v2157_v57 = vsel %vm2150_vm3, %v2153_v41, %v2156_v33  ;;  %v1387_v42 = vrot.slane %v7867_v7, %v9086_v61  ;;  %v3169_v13 = vclz %v5528_v8  ;;  %v9088_v21 = vxor.u32 2147483648, %v9079_v56  ;;  %v1080_v61 = vpop.f32.mrf.mxu0 }
 0x2d1   : > { %v2158_v58 = vsel %vm2147_vm14, nan, %v2157_v57  ;;  %vm2784_vm10 = vcmp.eq.s32.totalorder %v2779_v46, 2  ;;  %v2556_v50 = vsel %vm2473_vm8, %v2555_v14, %v2554_v34  ;;  %v1622_v57 = vsel %vm1537_vm0, %v1621_v0, %v9087_v59 }
 0x2d2   : > { %v2679_v44 = vmul.f32 %v2158_v58, %v8008_v2  ;;  %v2783_v26 = vsel %vm2781_vm9, %v9085_v3, %v9088_v21  ;;  %v2786_v7 = vsel %vm2784_vm10, %v8916_v11, %v9079_v56  ;;  %v8226_v41 = vrot.slane %v1387_v42, %v7070_v24  ;;  %v9092_v11 = vld [vmem:[#allocation33_spill] sm:$0xff] }
 0x2d3   : > { %v2559_v8 = vsel %vm8057_vm4, %v7780_v12, %v2556_v50  ;;  %v5529_v46 = vadd.s32 4294967294, %v3169_v13  ;;  %v2787_v33 = vsel %vm2780_vm11, %v2783_v26, %v2786_v7  ;;  %v8236_v14 = vsel %vm7162_vm12, 0, %v1622_v57  ;;  %v9090_v50 = vld [vmem:[#allocation29_spill] sm:$0xff]  ;;  %v9091_v57 = vld [vmem:[#allocation27_spill] sm:$0xff] }
 0x2d4   : > { %v3157_v24 = vadd.s32 %v8087_v6, %v8112_v31  ;;  %v1419_v42 = vadd.f32 %v1407_v45, %v8120_v35  ;;  %vm1523_vm8 = vweird.f32 %v6574_v10  ;;  %v2788_v59 = vsel %vm2777_vm6, nan, %v2787_v33 }
 0x2d5   : > { %vm5530_vm0 = vcmp.lt.s32.totalorder %v5529_v46, 0  ;;  %v8247_v27 = vsel %vm3103_vm5, %v3187_v32, %v8173_v4  ;;  %v3309_v0 = vmul.f32 %v2788_v59, %v8156_v60  ;;  %v1628_v58 = vadd.s32 3, %v8236_v14 }
 0x2d6   : > { %6029 = vcosq.f32 %v2559_v8  ;;  %v3172_v13 = vsel %vm5530_vm0, 0, %v5529_v46  ;;  %v1534_v6 = vsel %vm1523_vm8, nan, %v1533_v49  ;;  %v1408_v31 = vmul.f32 %v8226_v41, %v1080_v61  ;;  %v9093_v61 = vld [vmem:[#allocation31_spill] sm:$0xff] }
 0x2d7   : > { %v3173_v35 = vsub.s32 32, %v3172_v13  ;;  %v3177_v45 = vsub.s32 4294967266, %v3172_v13  ;;  %v3315_v21 = vadd.f32 %v3309_v0, %v2679_v44  ;;  %v3174_v4 = vshll.u32 %v8189_v55, %v3172_v13 }
 0x2d8   : > { %v1629_v32 = vand.u32 3, %v1628_v58  ;;  %v8919_v7 = vxor.u32 2147483648, %v9090_v50  ;;  %v2252_v33 = vadd.s32 3, %v9091_v57  ;;  %v8923_v40 = vxor.u32 2147483648, %v9092_v11 }
 0x2d9   : > { %v3175_v46 = vshrl.u32 %v3157_v24, %v3173_v35  ;;  %v3178_v34 = vadd.s32 127, %v3177_v45  ;;  %v3321_v59 = vsub.f32 %v1534_v6, %v3315_v21  ;;  %v8922_v3 = vxor.u32 2147483648, %v9093_v61 }
 0x2da   : > { %vm1631_vm12 = vcmp.eq.s32.totalorder %v1629_v32, 0  ;;  %vm1634_vm4 = vcmp.eq.s32.totalorder %v1629_v32, 2  ;;  %v2253_v49 = vand.u32 3, %v2252_v33  ;;  %v9094_v55 = vxor.u32 2147483648, %v7365_v9 }
 0x2db   : > { %v3176_v44 = vor.u32 %v3175_v46, %v3174_v4  ;;  %v3179_v0 = vshll.u32 %v3178_v34, 23  ;;  %v3327_v26 = vadd.f32 %v3321_v59, %v1419_v42  ;;  %vm8926_vm3 = vweird.f32 %v6607_v43  ;;  %v9106_v43 = vld [vmem:[#allocation7_spill] sm:$0xff] }
 0x2dc   : > { %v1633_v58 = vsel %vm1631_vm12, %v9090_v50, %v9094_v55  ;;  %vm1630_vm15 = vcmp.lt.s32.totalorder %v1629_v32, 2  ;;  %v1636_v24 = vsel %vm1634_vm4, %v8919_v7, %v7365_v9  ;;  %vm2255_vm11 = vcmp.eq.s32.totalorder %v2253_v49, 0  ;;  %v9098_v32 = vld [vmem:[#allocation35_spill] sm:$0xff]  ;;  %v9100_v55 = vld [vmem:[#allocation13_spill] sm:$0xff] }
 0x2dd   : > { %v9095_v13 = vand.u32 2147483647, %v7899_v5  ;;  %v3180_v35 = vor.u32 4788187, %v3179_v0  ;;  %3333 = vst [vmem:[%s8275_s9] sm:$0xff] %v3327_v26  ;;  %vm2254_vm10 = vcmp.lt.s32.totalorder %v2253_v49, 2  ;;  %v2257_v42 = vsel %vm2255_vm11, %v9093_v61, %v8923_v40  ;;  %v9099_v0 = vld [vmem:[#allocation34_spill] sm:$0xff] }
 0x2de   : > { %vm2258_vm0 = vcmp.eq.s32.totalorder %v2253_v49, 2  ;;  %v3183_v45 = vcvt.s32.f32 %v3176_v44  ;;  %v1637_v21 = vsel %vm1630_vm15, %v1633_v58, %v1636_v24  ;;  %v2882_v33 = vadd.s32 3, %v9098_v32  ;;  %v9101_v7 = vld [vmem:[#allocation37_spill] sm:$0xff] }
 0x2df   : > { %vm8271_vm9 = vcmp.le.f32.partialorder %v9095_v13, 0.7853982  ;;  %v2260_v4 = vsel %vm2258_vm0, %v8922_v3, %v9092_v11  ;;  %v3181_v46 = vand.u32 2147483647, %v3180_v35  ;;  %v8920_v59 = vxor.u32 2147483648, %v7463_v15 }
 0x2e0   : > { %v2261_v34 = vsel %vm2254_vm10, %v2257_v42, %v2260_v4  ;;  %v8921_v26 = vxor.u32 2147483648, %v9099_v0  ;;  %6031 = vsinq.f32 %v2559_v8  ;;  %vm2251_vm12 = vweird.f32 %v9100_v55  ;;  %v9102_v42 = vld [vmem:[#allocation14_spill] sm:$0xff] }
 0x2e1   : > { %v2883_v13 = vand.u32 3, %v2882_v33  ;;  %v1829_v49 = vsub.s32 4, %v9101_v7  ;;  %v3184_v44 = vmul.f32 %v3183_v45, %v3181_v46  ;;  %v1420_v58 = vadd.f32 %v1408_v31, %v8140_v37  ;;  %v1084_v31 = vpop.f32.mrf.mxu0 }
 0x2e2   : > { %v1638_v24 = vsel %vm8926_vm3, nan, %v1637_v21  ;;  %v2262_v35 = vsel %vm2251_vm12, nan, %v2261_v34  ;;  %vm2881_vm4 = vweird.f32 %v9102_v42  ;;  %vm9103_vm0 = vcmp.lt.s32.totalorder %v7259_v20, 0 }
 0x2e3   : > { %vm2884_vm15 = vcmp.lt.s32.totalorder %v2883_v13, 2  ;;  %vm2885_vm11 = vcmp.eq.s32.totalorder %v2883_v13, 0  ;;  %vm2888_vm10 = vcmp.eq.s32.totalorder %v2883_v13, 2  ;;  %v8295_v8 = vpop.eup %6029  ;;  %v3185_v4 = vxor.u32 2147483648, %v3184_v44 }
 0x2e4   : > { %v2887_v45 = vsel %vm2885_vm11, %v9099_v0, %v8920_v59  ;;  %v2890_v37 = vsel %vm2888_vm10, %v8921_v26, %v7463_v15  ;;  %v1830_v21 = vsel %vm9103_vm0, %v1829_v49, %v9101_v7  ;;  %v2680_v33 = vmul.f32 %v2262_v35, %v8115_v25 }
 0x2e5   : > { %v2891_v46 = vsel %vm2884_vm15, %v2887_v45, %v2890_v37  ;;  %v1410_v34 = vmul.f32 %v8156_v60, %v1084_v31  ;;  %v8310_v13 = vsel %vm7613_vm2, 0, %v1830_v21  ;;  %v3186_v59 = vsel %vm3103_vm5, %v3185_v4, %v3184_v44  ;;  %v9104_v4 = vld [vmem:[#allocation48_spill] sm:$0xff]  ;;  %v9105_v21 = vld [vmem:[#allocation11_spill] sm:$0xff] }
 0x2e6   : > { %v2892_v26 = vsel %vm2881_vm4, nan, %v2891_v46  ;;  %v1836_v3 = vadd.s32 3, %v8310_v13  ;;  %v2460_v40 = vadd.s32 3, %v7734_v28  ;;  %v3189_v7 = vsel %vm8271_vm9, %v7899_v5, %v3186_v59  ;;  %v9107_v59 = vld [vmem:[#allocation50_spill] sm:$0xff] }
 0x2e7   : > { %v3310_v49 = vmul.f32 %v2892_v26, %v8226_v41  ;;  %vm8933_vm2 = vweird.f32 %v7323_v30  ;;  %6033 = vsinq.f32 %v3189_v7  ;;  %v3090_v28 = vadd.s32 3, %v9106_v43 }
 0x2e8   : > { %v1837_v45 = vand.u32 3, %v1836_v3  ;;  %v2461_v44 = vand.u32 3, %v2460_v40  ;;  %6035 = vcosq.f32 %v3189_v7  ;;  %v9108_v35 = vxor.u32 2147483648, %v7791_v16 }
 0x2e9   : > { %v3316_v31 = vadd.f32 %v3310_v49, %v2680_v33  ;;  %v9109_v40 = vxor.u32 2147483648, %v7782_v52  ;;  %v9110_v33 = vxor.u32 2147483648, %v9104_v4  ;;  %v3091_v49 = vand.u32 3, %v3090_v28 }
 0x2ea   : > { %vm1839_vm5 = vcmp.eq.s32.totalorder %v1837_v45, 0  ;;  %vm1842_vm15 = vcmp.eq.s32.totalorder %v1837_v45, 2  ;;  %vm2463_vm11 = vcmp.eq.s32.totalorder %v2461_v44, 0  ;;  %vm1838_vm10 = vcmp.lt.s32.totalorder %v1837_v45, 2 }
 0x2eb   : > { %v3322_v62 = vsub.f32 %v1638_v24, %v3316_v31  ;;  %v1841_v3 = vsel %vm1839_vm5, %v7782_v52, %v9108_v35  ;;  %v1844_v37 = vsel %vm1842_vm15, %v9109_v40, %v7791_v16  ;;  %v2465_v7 = vsel %vm2463_vm11, %v9105_v21, %v9110_v33  ;;  %v9112_v35 = vld [vmem:[#allocation49_spill] sm:$0xff]  ;;  %v9114_v33 = vld [vmem:[#allocation30_spill] sm:$0xff] }
 0x2ec   : > { %vm2466_vm0 = vcmp.eq.s32.totalorder %v2461_v44, 2  ;;  %vm2462_vm3 = vcmp.lt.s32.totalorder %v2461_v44, 2  ;;  %v9111_v24 = vxor.u32 2147483648, %v9105_v21  ;;  %v8929_v26 = vxor.u32 2147483648, %v9112_v35 }
 0x2ed   : > { %v3328_v46 = vadd.f32 %v3322_v62, %v1420_v58  ;;  %v8342_v43 = vpop.eup %6031  ;;  %v1845_v52 = vsel %vm1838_vm10, %v1841_v3, %v1844_v37  ;;  %vm3093_vm5 = vcmp.eq.s32.totalorder %v3091_v49, 0  ;;  %vm3096_vm15 = vcmp.eq.s32.totalorder %v3091_v49, 2  ;;  %v1086_v3 = vpop.f32.mrf.mxu0 }
 0x2ee   : > { %v2468_v31 = vsel %vm2466_vm0, %v9111_v24, %v9104_v4  ;;  %vm3092_vm11 = vcmp.lt.s32.totalorder %v3091_v49, 2  ;;  %v9113_v28 = vxor.u32 2147483648, %v9107_v59  ;;  %v3098_v62 = vsel %vm3096_vm15, %v8929_v26, %v9107_v59 }
 0x2ef   : > { %v2469_v40 = vsel %vm2462_vm3, %v2465_v7, %v2468_v31  ;;  %3334 = vst [vmem:[%s8275_s9 + $0x8] sm:$0xff] %v3328_v46  ;;  %vm8930_vm10 = vweird.f32 %v9114_v33  ;;  %v1933_v46 = vsub.s32 4, %v7954_v17  ;;  %v8359_v7 = vsel %vm8271_vm9, 0, %v8247_v27 }
 0x2f0   : > { %v2470_v45 = vsel %vm8933_vm2, nan, %v2469_v40  ;;  %v3095_v58 = vsel %vm3093_vm5, %v9112_v35, %v9113_v28  ;;  %v1422_v49 = vadd.f32 %v1410_v34, %v8131_v48  ;;  %vm8932_vm3 = vweird.f32 %v7259_v20 }
 0x2f1   : > { %v2682_v44 = vmul.f32 %v2470_v45, %v8008_v2  ;;  %v3099_v37 = vsel %vm3092_vm11, %v3095_v58, %v3098_v62  ;;  %v1846_v31 = vsel %vm8932_vm3, nan, %v1845_v52  ;;  %vm9115_vm0 = vcmp.lt.s32.totalorder %v7752_v51, 0 }
 0x2f2   : > { %v3100_v24 = vsel %vm8930_vm10, nan, %v3099_v37  ;;  %v1934_v45 = vsel %vm9115_vm0, %v1933_v46, %v7954_v17  ;;  %v2564_v6 = vadd.s32 3, %v8126_v29  ;;  %v8373_v27 = vmul.f32 %v8226_v41, %v1086_v3  ;;  %v1090_v17 = vpop.f32.mrf.mxu0 }
 0x2f3   : > { %v3312_v40 = vmul.f32 %v3100_v24, %v8156_v60  ;;  %v8377_v48 = vsel %vm8044_vm13, 0, %v1934_v45  ;;  %v8931_v28 = vxor.u32 2147483648, %v8342_v43  ;;  %v3194_v37 = vadd.s32 3, %v8359_v7 }
 0x2f4   : > { %v1940_v58 = vadd.s32 3, %v8377_v48  ;;  %v2565_v62 = vand.u32 3, %v2564_v6  ;;  %vm8934_vm9 = vweird.f32 %v7780_v12  ;;  %v1413_v18 = vmul.f32 %v8156_v60, %v1090_v17  ;;  %v8387_v24 = vpop.eup %6033 }
 0x2f5   : > { %v3318_v52 = vadd.f32 %v3312_v40, %v2682_v44  ;;  %vm3193_vm5 = vweird.f32 %v7899_v5  ;;  %v3432_v44 = vand.u32 3, %v8160_v19  ;;  %v8391_v40 = vpop.eup %6035  ;;  %v3195_v46 = vand.u32 3, %v3194_v37  ;;  %v9167_v5 = vld [vmem:[#allocation44_spill] sm:$0xff] }
 0x2f6   : > { %v1941_v26 = vand.u32 3, %v1940_v58  ;;  %vm2567_vm13 = vcmp.eq.s32.totalorder %v2565_v62, 0  ;;  %v3198_v3 = vxor.u32 2147483648, %v8387_v24  ;;  %v4050_v17 = vand.u32 3, %v6962_v36 }
 0x2f7   : > { %v3324_v45 = vsub.f32 %v1846_v31, %v3318_v52  ;;  %v2569_v6 = vsel %vm2567_vm13, %v8295_v8, %v8931_v28  ;;  %vm2570_vm0 = vcmp.eq.s32.totalorder %v2565_v62, 2  ;;  %v9116_v31 = vxor.u32 2147483648, %v8203_v63 }
 0x2f8   : > { %vm1943_vm15 = vcmp.eq.s32.totalorder %v1941_v26, 0  ;;  %vm1946_vm11 = vcmp.eq.s32.totalorder %v1941_v26, 2  ;;  %v9117_v19 = vxor.u32 2147483648, %v8197_v54  ;;  %vm2566_vm10 = vcmp.lt.s32.totalorder %v2565_v62, 2 }
 0x2f9   : > { %v3330_v34 = vadd.f32 %v3324_v45, %v1422_v49  ;;  %v1945_v52 = vsel %vm1943_vm15, %v8197_v54, %v9116_v31  ;;  %v9118_v37 = vxor.u32 2147483648, %v8295_v8  ;;  %vm1942_vm13 = vcmp.lt.s32.totalorder %v1941_v26, 2 }
 0x2fa   : > { %v1948_v58 = vsel %vm1946_vm11, %v9117_v19, %v8203_v63  ;;  %vm3196_vm3 = vcmp.lt.s32.totalorder %v3195_v46, 2  ;;  %vm3197_vm2 = vcmp.eq.s32.totalorder %v3195_v46, 0  ;;  %v8935_v19 = vxor.u32 2147483648, %v8391_v40 }
 0x2fb   : > { %v2572_v28 = vsel %vm2570_vm0, %v9118_v37, %v8342_v43  ;;  %3336 = vst [vmem:[%s8275_s9 + $0x18] sm:$0xff] %v3330_v34  ;;  %v1949_v49 = vsel %vm1942_vm13, %v1945_v52, %v1948_v58  ;;  %v3199_v31 = vsel %vm3197_vm2, %v8391_v40, %v3198_v3  ;;  %vm3200_vm15 = vcmp.eq.s32.totalorder %v3195_v46, 2  ;;  %v5790_v37 = vpop.f32.mrf.mxu1 }
 0x2fc   : > { %v2573_v36 = vsel %vm2566_vm10, %v2569_v6, %v2572_v28  ;;  %vm3433_vm11 = vcmp.lt.s32.totalorder %v3432_v44, 2  ;;  %vm3434_vm0 = vcmp.eq.s32.totalorder %v3432_v44, 0  ;;  %v3202_v26 = vsel %vm3200_vm15, %v8935_v19, %v8387_v24 }
 0x2fd   : > { %v2574_v45 = vsel %vm8934_vm9, nan, %v2573_v36  ;;  %v9119_v34 = vxor.u32 2147483648, %v7020_v22  ;;  %vm3437_vm10 = vcmp.eq.s32.totalorder %v3432_v44, 2  ;;  %vm4051_vm13 = vcmp.lt.s32.totalorder %v4050_v17, 2 }
 0x2fe   : > { %v2683_v62 = vmul.f32 %v2574_v45, %v8115_v25  ;;  %v3203_v6 = vsel %vm3196_vm3, %v3199_v31, %v3202_v26  ;;  %v9120_v52 = vxor.u32 2147483648, %v7017_v53  ;;  %vm4052_vm2 = vcmp.eq.s32.totalorder %v4050_v17, 0  ;;  %v9123_v26 = vld [vmem:[#allocation9_spill] sm:$0xff] }
 0x2ff   : > { %v3436_v28 = vsel %vm3434_vm0, %v7017_v53, %v9119_v34  ;;  %vm4055_vm9 = vcmp.eq.s32.totalorder %v4050_v17, 2  ;;  %v3204_v46 = vsel %vm3193_vm5, nan, %v3203_v6  ;;  %v9121_v45 = vxor.u32 2147483648, %v7103_v47 }
 0x300   : > { %v3439_v58 = vsel %vm3437_vm10, %v9120_v52, %v7020_v22  ;;  %v9122_v44 = vxor.u32 2147483648, %v9076_v23  ;;  %vm1939_vm3 = vweird.f32 %v7752_v51  ;;  %v3313_v53 = vmul.f32 %v3204_v46, %v8226_v41  ;;  %v9124_v52 = vld [vmem:[#allocation26_spill] sm:$0xff] }
 0x301   : > { %v3440_v36 = vsel %vm3433_vm11, %v3436_v28, %v3439_v58  ;;  %v4054_v19 = vsel %vm4052_vm2, %v9076_v23, %v9121_v45  ;;  %v4674_v17 = vand.u32 3, %v9077_v39  ;;  %v8437_v31 = vmul.f32 %v8115_v25, %v8150_v1  ;;  %v9125_v46 = vld [vmem:[#allocation58_spill] sm:$0xff] }
 0x302   : > { %v4057_v34 = vsel %vm4055_vm9, %v9122_v44, %v7103_v47  ;;  %v1423_v28 = vadd.f32 %v8373_v27, %v9123_v26  ;;  %v1950_v6 = vsel %vm1939_vm3, nan, %v1949_v49  ;;  %v8444_v23 = vmul.f32 %v5790_v37, %v9124_v52  ;;  %v9127_v44 = vld [vmem:[#allocation22_spill] sm:$0xff]  ;;  %v785_v37 = vpop.f32.mrf.mxu1 }
 0x303   : > { %v4058_v22 = vsel %vm4051_vm13, %v4054_v19, %v4057_v34  ;;  %v3319_v47 = vadd.f32 %v3313_v53, %v2683_v62  ;;  %vm4676_vm9 = vcmp.eq.s32.totalorder %v4674_v17, 0  ;;  %v1092_v19 = vpop.f32.mrf.mxu0  ;;  %v3535_v39 = vand.u32 3, %v8236_v14 }
 0x304   : > { %v4059_v58 = vsel %vm2147_vm14, nan, %v4058_v22  ;;  %v1425_v1 = vadd.f32 %v1413_v18, %v9125_v46  ;;  %v3441_v45 = vsel %vm1523_vm8, nan, %v3440_v36  ;;  %v9126_v27 = vxor.u32 2147483648, %v9079_v56 }
 0x305   : > { %vm4679_vm15 = vcmp.eq.s32.totalorder %v4674_v17, 2  ;;  %v3325_v34 = vsub.f32 %v1950_v6, %v3319_v47  ;;  %vm4675_vm11 = vcmp.lt.s32.totalorder %v4674_v17, 2  ;;  %v9128_v38 = vxor.u32 2147483648, %v9127_v44 }
 0x306   : > { %v4678_v49 = vsel %vm4676_vm9, %v9127_v44, %v9126_v27  ;;  %v8459_v14 = vmul.f32 %v9124_v52, %v785_v37  ;;  %v4575_v18 = vmul.f32 %v4059_v58, %v8008_v2  ;;  %v1414_v36 = vmul.f32 %v8226_v41, %v1092_v19 }
 0x307   : > { %v4681_v62 = vsel %vm4679_vm15, %v9128_v38, %v9079_v56  ;;  %v4153_v53 = vand.u32 3, %v9091_v57  ;;  %v3331_v22 = vadd.f32 %v3325_v34, %v1423_v28  ;;  %vm3537_vm14 = vcmp.eq.s32.totalorder %v3535_v39, 0 }
 0x308   : > { %v4682_v10 = vsel %vm4675_vm11, %v4678_v49, %v4681_v62  ;;  %v4777_v17 = vand.u32 3, %v9098_v32  ;;  %v9130_v56 = vxor.u32 2147483648, %v7365_v9  ;;  %vm3540_vm8 = vcmp.eq.s32.totalorder %v3535_v39, 2 }
 0x309   : > { %v4683_v6 = vsel %vm2777_vm6, nan, %v4682_v10  ;;  %vm4155_vm0 = vcmp.eq.s32.totalorder %v4153_v53, 0  ;;  %3337 = vst [vmem:[%s8275_s9 + $0x20] sm:$0xff] %v3331_v22  ;;  %vm4154_vm10 = vcmp.lt.s32.totalorder %v4153_v53, 2  ;;  %v9131_v58 = vxor.u32 2147483648, %v9092_v11 }
 0x30a   : > { %v5199_v47 = vmul.f32 %v4683_v6, %v8156_v60  ;;  %v3539_v46 = vsel %vm3537_vm14, %v9090_v50, %v9130_v56  ;;  %vm4158_vm13 = vcmp.eq.s32.totalorder %v4153_v53, 2  ;;  %vm4779_vm2 = vcmp.eq.s32.totalorder %v4777_v17, 0 }
 0x30b   : > { %v4157_v57 = vsel %vm4155_vm0, %v9093_v61, %v9131_v58  ;;  %v9132_v32 = vxor.u32 2147483648, %v9093_v61  ;;  %v9133_v27 = vxor.u32 2147483648, %v7463_v15  ;;  %vm4782_vm6 = vcmp.eq.s32.totalorder %v4777_v17, 2  ;;  %v9142_v58 = vld [vmem:[#allocation8_spill] sm:$0xff] }
 0x30c   : > { %v5205_v28 = vadd.f32 %v5199_v47, %v4575_v18  ;;  %v9134_v49 = vxor.u32 2147483648, %v9090_v50  ;;  %vm4778_vm9 = vcmp.lt.s32.totalorder %v4777_v17, 2  ;;  %v9135_v38 = vxor.u32 2147483648, %v9099_v0  ;;  %v9136_v50 = vld [vmem:[#allocation15_spill] sm:$0xff]  ;;  %v9139_v17 = vld [vmem:[#allocation10_spill] sm:$0xff] }
 0x30d   : > { %v4160_v19 = vsel %vm4158_vm13, %v9132_v32, %v9092_v11  ;;  %v4781_v44 = vsel %vm4779_vm2, %v9099_v0, %v9133_v27  ;;  %v3741_v10 = vand.u32 3, %v8310_v13  ;;  %vm3536_vm15 = vcmp.lt.s32.totalorder %v3535_v39, 2  ;;  %v9137_v0 = vld [vmem:[#allocation59_spill] sm:$0xff]  ;;  %v1096_v39 = vpop.f32.mrf.mxu0 }
 0x30e   : > { %v3542_v37 = vsel %vm3540_vm8, %v9134_v49, %v7365_v9  ;;  %v4161_v34 = vsel %vm4154_vm10, %v4157_v57, %v4160_v19  ;;  %v4784_v62 = vsel %vm4782_vm6, %v9135_v38, %v7463_v15  ;;  %v5211_v18 = vsub.f32 %v3441_v45, %v5205_v28  ;;  %v9145_v32 = vld [vmem:[#allocation7_spill] sm:$0xff] }
 0x30f   : > { %v4162_v11 = vsel %vm2251_vm12, nan, %v4161_v34  ;;  %v4785_v61 = vsel %vm4778_vm9, %v4781_v44, %v4784_v62  ;;  %v4359_v22 = vand.u32 3, %v9136_v50  ;;  %v3543_v6 = vsel %vm3536_vm15, %v3539_v46, %v3542_v37 }
 0x310   : > { %v4576_v53 = vmul.f32 %v4162_v11, %v8115_v25  ;;  %v4786_v9 = vsel %vm2881_vm4, nan, %v4785_v61  ;;  %v5217_v26 = vadd.f32 %v5211_v18, %v1425_v1  ;;  %vm3743_vm11 = vcmp.eq.s32.totalorder %v3741_v10, 0  ;;  %v1098_v18 = vpop.f32.mrf.mxu0  ;;  %v8521_v11 = vpop.f32.mrf.mxu1 }
 0x311   : > { %v5200_v15 = vmul.f32 %v4786_v9, %v8226_v41  ;;  %v1426_v55 = vadd.f32 %v1414_v36, %v9137_v0  ;;  %v9138_v45 = vxor.u32 2147483648, %v7791_v16  ;;  %vm3746_vm12 = vcmp.eq.s32.totalorder %v3741_v10, 2  ;;  %v9149_v9 = vld [vmem:[#allocation60_spill] sm:$0xff] }
 0x312   : > { %vm4361_vm14 = vcmp.eq.s32.totalorder %v4359_v22, 0  ;;  %5223 = vst [vmem:[%s8275_s9 + $0x30] sm:$0xff] %v5217_v26  ;;  %v9140_v42 = vxor.u32 2147483648, %v9139_v17  ;;  %v9141_v1 = vxor.u32 2147483648, %v9104_v4  ;;  %vm4364_vm4 = vcmp.eq.s32.totalorder %v4359_v22, 2 }
 0x313   : > { %v3745_v47 = vsel %vm3743_vm11, %v9139_v17, %v9138_v45  ;;  %v5206_v13 = vadd.f32 %v5200_v15, %v4576_v53  ;;  %vm9143_vm8 = vweird.f32 %v9142_v58  ;;  %vm4360_vm0 = vcmp.lt.s32.totalorder %v4359_v22, 2  ;;  %v9154_v15 = vld [vmem:[#allocation25_spill] sm:$0xff] }
 0x314   : > { %v3748_v56 = vsel %vm3746_vm12, %v9140_v42, %v7791_v16  ;;  %v4363_v46 = vsel %vm4361_vm14, %v9105_v21, %v9141_v1  ;;  %v3544_v36 = vsel %vm9143_vm8, nan, %v3543_v6  ;;  %v9144_v57 = vxor.u32 2147483648, %v9105_v21 }
 0x315   : > { %v4983_v19 = vand.u32 3, %v9145_v32  ;;  %v5212_v27 = vsub.f32 %v3544_v36, %v5206_v13  ;;  %v1416_v44 = vmul.f32 %v8156_v60, %v1096_v39  ;;  %vm3742_vm10 = vcmp.lt.s32.totalorder %v3741_v10, 2 }
 0x316   : > { %v4366_v28 = vsel %vm4364_vm4, %v9144_v57, %v9104_v4  ;;  %v3749_v49 = vsel %vm3742_vm10, %v3745_v47, %v3748_v56  ;;  %vm9146_vm13 = vweird.f32 %v7323_v30  ;;  %v9147_v38 = vxor.u32 2147483648, %v9107_v59  ;;  %v9178_v57 = vld [vmem:[#allocation54_spill] sm:$0xff] }
 0x317   : > { %v4367_v16 = vsel %vm4360_vm0, %v4363_v46, %v4366_v28  ;;  %vm4985_vm2 = vcmp.eq.s32.totalorder %v4983_v19, 0  ;;  %vm4988_vm6 = vcmp.eq.s32.totalorder %v4983_v19, 2  ;;  %v5218_v34 = vadd.f32 %v5212_v27, %v1426_v55  ;;  %v8542_v55 = vpop.f32.mrf.mxu1  ;;  %v9163_v27 = vld [vmem:[#allocation39_spill] sm:$0xff] }
 0x318   : > { %v4368_v37 = vsel %vm9146_vm13, nan, %v4367_v16  ;;  %vm4984_vm9 = vcmp.lt.s32.totalorder %v4983_v19, 2  ;;  %v4987_v4 = vsel %vm4985_vm2, %v9112_v35, %v9147_v38  ;;  %v9148_v21 = vxor.u32 2147483648, %v9112_v35  ;;  %v9166_v38 = vld [vmem:[#allocation18_spill] sm:$0xff] }
 0x319   : > { %v4578_v61 = vmul.f32 %v4368_v37, %v8008_v2  ;;  %v3844_v30 = vand.u32 3, %v8377_v48  ;;  %v4462_v53 = vand.u32 3, %v8126_v29  ;;  %5224 = vst [vmem:[%s8275_s9 + $0x38] sm:$0xff] %v5218_v34  ;;  %v1428_v50 = vadd.f32 %v1416_v44, %v9149_v9  ;;  %v5828_v36 = vpop.f32.mrf.mxu1  ;;  %v9164_v44 = vld [vmem:[#allocation38_spill] sm:$0xff] }
 0x31a   : > { %v4990_v62 = vsel %vm4988_vm6, %v9148_v21, %v9107_v59  ;;  %vm9150_vm15 = vweird.f32 %v7259_v20  ;;  %vm9151_vm11 = vweird.f32 %v9114_v33  ;;  %v5086_v59 = vand.u32 3, %v8359_v7 }
 0x31b   : > { %v4991_v10 = vsel %vm4984_vm9, %v4987_v4, %v4990_v62  ;;  %v3750_v22 = vsel %vm9150_vm15, nan, %v3749_v49  ;;  %v1417_v2 = vmul.f32 %v8226_v41, %v1098_v18  ;;  %vm3846_vm12 = vcmp.eq.s32.totalorder %v3844_v30, 0  ;;  %v9165_v49 = vld [vmem:[#allocation36_spill] sm:$0xff]  ;;  %v9168_v18 = vld [vmem:[#allocation43_spill] sm:$0xff] }
 0x31c   : > { %v4992_v35 = vsel %vm9151_vm11, nan, %v4991_v10  ;;  %vm3849_vm14 = vcmp.eq.s32.totalorder %v3844_v30, 2  ;;  %v9152_v48 = vxor.u32 2147483648, %v8203_v63  ;;  %v9153_v6 = vxor.u32 2147483648, %v8197_v54  ;;  %v9169_v10 = vld [vmem:[#allocation40_spill] sm:$0xff] }
 0x31d   : > { %v5202_v26 = vmul.f32 %v4992_v35, %v8156_v60  ;;  %vm4464_vm4 = vcmp.eq.s32.totalorder %v4462_v53, 0  ;;  %v2037_v33 = vsub.s32 4, %v9154_v15  ;;  %vm3845_vm8 = vcmp.lt.s32.totalorder %v3844_v30, 2  ;;  %v9170_v30 = vld [vmem:[#allocation46_spill] sm:$0xff] }
 0x31e   : > { %v3848_v29 = vsel %vm3846_vm12, %v8197_v54, %v9152_v48  ;;  %v3851_v20 = vsel %vm3849_vm14, %v9153_v6, %v8203_v63  ;;  %v9155_v60 = vxor.u32 2147483648, %v8342_v43  ;;  %vm4467_vm0 = vcmp.eq.s32.totalorder %v4462_v53, 2 }
 0x31f   : > { %v5208_v0 = vadd.f32 %v5202_v26, %v4578_v61  ;;  %v3852_v45 = vsel %vm3845_vm8, %v3848_v29, %v3851_v20  ;;  %vm4463_vm10 = vcmp.lt.s32.totalorder %v4462_v53, 2  ;;  %v9156_v17 = vxor.u32 2147483648, %v8295_v8  ;;  %v1167_v26 = vpop.f32.mrf.mxu1 }
 0x320   : > { %v4466_v7 = vsel %vm4464_vm4, %v8295_v8, %v9155_v60  ;;  %vm5088_vm13 = vcmp.eq.s32.totalorder %v5086_v59, 0  ;;  %vm5091_vm2 = vcmp.eq.s32.totalorder %v5086_v59, 2  ;;  %vm9157_vm6 = vweird.f32 %v7780_v12  ;;  %v9159_v8 = vld [vmem:[#allocation17_spill] sm:$0xff] }
 0x321   : > { %v4469_v47 = vsel %vm4467_vm0, %v9156_v17, %v8342_v43  ;;  %v5214_v63 = vsub.f32 %v3750_v22, %v5208_v0  ;;  %v5090_v13 = vsel %vm5088_vm13, %v8391_v40, %v3198_v3  ;;  %vm5087_vm9 = vcmp.lt.s32.totalorder %v5086_v59, 2  ;;  %v9171_v22 = vld [vmem:[#allocation45_spill] sm:$0xff] }
 0x322   : > { %v4470_v54 = vsel %vm4463_vm10, %v4466_v7, %v4469_v47  ;;  %v9158_v42 = vxor.u32 2147483648, %v8391_v40  ;;  %vm9160_vm15 = vcmp.lt.s32.totalorder %v9159_v8, 0  ;;  %v1429_v12 = vadd.f32 %v1417_v2, %v8437_v31  ;;  %v9162_v40 = vld [vmem:[#allocation28_spill] sm:$0xff]  ;;  %v9173_v47 = vld [vmem:[#allocation47_spill] sm:$0xff] }
 0x323   : > { %v4471_v39 = vsel %vm9157_vm6, nan, %v4470_v54  ;;  %v2038_v43 = vsel %vm9160_vm15, %v2037_v33, %v9154_v15  ;;  %v5220_v1 = vadd.f32 %v5214_v63, %v1428_v50  ;;  %v2051_v16 = vxor.u32 2147483648, %v9164_v44 }
 0x324   : > { %v5093_v56 = vsel %vm5091_vm2, %v9158_v42, %v8387_v24  ;;  %v4579_v46 = vmul.f32 %v4471_v39, %v8115_v25  ;;  %v8564_v3 = vsel %vm7378_vm7, 0, %v2038_v43  ;;  %v1412_v24 = vmul.f32 %v5828_v36, %v9162_v40  ;;  %v9174_v43 = vld [vmem:[#allocation12_spill] sm:$0xff] }
 0x325   : > { %v5094_v58 = vsel %vm5087_vm9, %v5090_v13, %v5093_v56  ;;  %v2044_v32 = vadd.s32 3, %v8564_v3  ;;  %5226 = vst [vmem:[%s8275_s9 + $0x48] sm:$0xff] %v5220_v1  ;;  %v2048_v25 = vxor.u32 2147483648, %v9163_v27  ;;  %v2668_v37 = vadd.s32 3, %v9165_v49 }
 0x326   : > { %v5095_v28 = vsel %vm3193_vm5, nan, %v5094_v58  ;;  %v3853_v34 = vsel %vm1939_vm3, nan, %v3852_v45  ;;  %vm2667_vm7 = vweird.f32 %v9166_v38  ;;  %v2672_v4 = vxor.u32 2147483648, %v9167_v5  ;;  %v9172_v45 = vld [vmem:[#allocation20_spill] sm:$0xff] }
 0x327   : > { %v5203_v19 = vmul.f32 %v5095_v28, %v8226_v41  ;;  %v2045_v31 = vand.u32 3, %v2044_v32  ;;  %v2669_v62 = vand.u32 3, %v2668_v37  ;;  %v2675_v61 = vxor.u32 2147483648, %v9168_v18  ;;  %v9179_v28 = vld [vmem:[#allocation56_spill] sm:$0xff] }
 0x328   : > { %v3298_v41 = vadd.s32 3, %v9169_v10  ;;  %v3302_v53 = vxor.u32 2147483648, %v9170_v30  ;;  %v3305_v35 = vxor.u32 2147483648, %v9171_v22  ;;  %v1409_v60 = vmul.f32 %v9162_v40, %v1167_v26 }
 0x329   : > { %v5209_v21 = vadd.f32 %v5203_v19, %v4579_v46  ;;  %vm2046_vm5 = vcmp.lt.s32.totalorder %v2045_v31, 2  ;;  %vm2047_vm11 = vcmp.eq.s32.totalorder %v2045_v31, 0  ;;  %vm2050_vm12 = vcmp.eq.s32.totalorder %v2045_v31, 2  ;;  %v9176_v46 = vld [vmem:[#allocation52_spill] sm:$0xff] }
 0x32a   : > { %v2049_v51 = vsel %vm2047_vm11, %v9164_v44, %v2048_v25  ;;  %v2052_v50 = vsel %vm2050_vm12, %v2051_v16, %v9163_v27  ;;  %vm2670_vm3 = vcmp.lt.s32.totalorder %v2669_v62, 2  ;;  %vm2671_vm14 = vcmp.eq.s32.totalorder %v2669_v62, 0 }
 0x32b   : > { %v5215_v9 = vsub.f32 %v3853_v34, %v5209_v21  ;;  %vm2674_vm4 = vcmp.eq.s32.totalorder %v2669_v62, 2  ;;  %v3299_v59 = vand.u32 3, %v3298_v41  ;;  %v2053_v48 = vsel %vm2046_vm5, %v2049_v51, %v2052_v50  ;;  %v9180_v34 = vld [vmem:[#allocation57_spill] sm:$0xff]  ;;  %v9183_v41 = vld [vmem:[#allocation55_spill] sm:$0xff] }
 0x32c   : > { %v2673_v29 = vsel %vm2671_vm14, %v9168_v18, %v2672_v4  ;;  %v2676_v6 = vsel %vm2674_vm4, %v2675_v61, %v9167_v5  ;;  %vm3297_vm13 = vweird.f32 %v9172_v45  ;;  %v1725_v63 = vsub.s32 4, %v9173_v47  ;;  %v9181_v21 = vld [vmem:[#allocation53_spill] sm:$0xff] }
 0x32d   : > { %v5221_v2 = vadd.f32 %v5215_v9, %v1429_v12  ;;  %v2677_v20 = vsel %vm2670_vm3, %v2673_v29, %v2676_v6  ;;  %vm3300_vm8 = vcmp.lt.s32.totalorder %v3299_v59, 2  ;;  %vm3301_vm0 = vcmp.eq.s32.totalorder %v3299_v59, 0  ;;  %v9184_v51 = vld [vmem:[#allocation21_spill] sm:$0xff] }
 0x32e   : > { %vm3304_vm10 = vcmp.eq.s32.totalorder %v3299_v59, 2  ;;  %v2678_v15 = vsel %vm2667_vm7, nan, %v2677_v20  ;;  %v3303_v33 = vsel %vm3301_vm0, %v9171_v22, %v3302_v53  ;;  %v8611_v54 = vmul.f32 %v8521_v11, %v9124_v52 }
 0x32f   : > { %5227 = vst [vmem:[%s8275_s9 + $0x50] sm:$0xff] %v5221_v2  ;;  %v3306_v0 = vsel %vm3304_vm10, %v3305_v35, %v9170_v30  ;;  %v2684_v7 = vmul.f32 %v2678_v15, %v9124_v52  ;;  %v1424_v13 = vadd.f32 %v1412_v24, %v8444_v23  ;;  %vm2043_vm2 = vweird.f32 %v9159_v8  ;;  %v9185_v2 = vld [vmem:[#allocation5_spill] sm:$0xff] }
 0x330   : > { %v3307_v17 = vsel %vm3300_vm8, %v3303_v33, %v3306_v0  ;;  %v2054_v42 = vsel %vm2043_vm2, nan, %v2053_v48  ;;  %vm9175_vm6 = vcmp.lt.s32.totalorder %v9174_v43, 0  ;;  %v2356_v58 = vadd.s32 3, %v9176_v46 }
 0x331   : > { %v3308_v39 = vsel %vm3297_vm13, nan, %v3307_v17  ;;  %v1726_v1 = vsel %vm9175_vm6, %v1725_v63, %v9173_v47  ;;  %v8625_v11 = vadd.f32 %v1409_v60, %v8459_v14  ;;  %v1736_v12 = vxor.u32 2147483648, %v9178_v57  ;;  %v9182_v14 = vld [vmem:[#allocation41_spill] sm:$0xff] }
 0x332   : > { %v3314_v56 = vmul.f32 %v3308_v39, %v9162_v40  ;;  %v8629_v36 = vsel %vm7825_vm1, 0, %v1726_v1  ;;  %v2360_v24 = vxor.u32 2147483648, %v9179_v28  ;;  %vm1731_vm9 = vweird.f32 %v9174_v43 }
 0x333   : > { %v1732_v19 = vadd.s32 3, %v8629_v36  ;;  %v2357_v37 = vand.u32 3, %v2356_v58  ;;  %v2986_v31 = vadd.s32 3, %v9180_v34  ;;  %v1739_v62 = vxor.u32 2147483648, %v9181_v21 }
 0x334   : > { %v3320_v32 = vadd.f32 %v3314_v56, %v2684_v7  ;;  %vm2355_vm15 = vweird.f32 %v9182_v14  ;;  %v2363_v9 = vxor.u32 2147483648, %v9183_v41  ;;  %v2990_v50 = vxor.u32 2147483648, %v9184_v51 }
 0x335   : > { %v1733_v26 = vand.u32 3, %v1732_v19  ;;  %vm2359_vm1 = vcmp.eq.s32.totalorder %v2357_v37, 0  ;;  %v2993_v48 = vxor.u32 2147483648, %v9185_v2  ;;  %vm2358_vm5 = vcmp.lt.s32.totalorder %v2357_v37, 2 }
 0x336   : > { %v3326_v59 = vsub.f32 %v2054_v42, %v3320_v32  ;;  %v2361_v29 = vsel %vm2359_vm1, %v9183_v41, %v2360_v24  ;;  %v2987_v6 = vand.u32 3, %v2986_v31  ;;  %v3947_v20 = vand.u32 3, %v8564_v3  ;;  %v9186_v42 = vld [vmem:[#allocation42_spill] sm:$0xff] }
 0x337   : > { %vm1735_vm11 = vcmp.eq.s32.totalorder %v1733_v26, 0  ;;  %vm1738_vm12 = vcmp.eq.s32.totalorder %v1733_v26, 2  ;;  %vm2362_vm3 = vcmp.eq.s32.totalorder %v2357_v37, 2  ;;  %vm1734_vm14 = vcmp.lt.s32.totalorder %v1733_v26, 2 }
 0x338   : > { %v3332_v15 = vadd.f32 %v3326_v59, %v1424_v13  ;;  %v1737_v33 = vsel %vm1735_vm11, %v9181_v21, %v1736_v12  ;;  %v1740_v0 = vsel %vm1738_vm12, %v1739_v62, %v9178_v57  ;;  %v2364_v60 = vsel %vm2362_vm3, %v2363_v9, %v9179_v28  ;;  %v5831_v13 = vpop.f32.mrf.mxu1 }
 0x339   : > { %v1741_v7 = vsel %vm1734_vm14, %v1737_v33, %v1740_v0  ;;  %v2365_v3 = vsel %vm2358_vm5, %v2361_v29, %v2364_v60  ;;  %vm2989_vm4 = vcmp.eq.s32.totalorder %v2987_v6, 0  ;;  %vm2992_vm8 = vcmp.eq.s32.totalorder %v2987_v6, 2 }
 0x33a   : > { %3338 = vst [vmem:[%s8275_s9 + $0x28] sm:$0xff] %v3332_v15  ;;  %v2366_v17 = vsel %vm2355_vm15, nan, %v2365_v3  ;;  %vm2988_vm0 = vcmp.lt.s32.totalorder %v2987_v6, 2  ;;  %v2991_v47 = vsel %vm2989_vm4, %v9185_v2, %v2990_v50  ;;  %v2994_v63 = vsel %vm2992_vm8, %v2993_v48, %v9184_v51 }
 0x33b   : > { %v2681_v39 = vmul.f32 %v2366_v17, %v9124_v52  ;;  %vm2985_vm10 = vweird.f32 %v9186_v42  ;;  %v2995_v56 = vsel %vm2988_vm0, %v2991_v47, %v2994_v63  ;;  %v1418_v1 = vmul.f32 %v5831_v13, %v9162_v40 }
 0x33c   : > { %v1742_v58 = vsel %vm1731_vm9, nan, %v1741_v7  ;;  %v2996_v23 = vsel %vm2985_vm10, nan, %v2995_v56  ;;  %vm3948_vm6 = vcmp.lt.s32.totalorder %v3947_v20, 2  ;;  %v4565_v32 = vand.u32 3, %v9165_v49 }
 0x33d   : > { %v3311_v19 = vmul.f32 %v2996_v23, %v9162_v40  ;;  %vm3949_vm1 = vcmp.eq.s32.totalorder %v3947_v20, 0  ;;  %vm3952_vm5 = vcmp.eq.s32.totalorder %v3947_v20, 2  ;;  %v5189_v37 = vand.u32 3, %v9169_v10 }
 0x33e   : > { %v3951_v31 = vsel %vm3949_vm1, %v9164_v44, %v2048_v25  ;;  %v3954_v59 = vsel %vm3952_vm5, %v2051_v16, %v9163_v27  ;;  %vm4567_vm11 = vcmp.eq.s32.totalorder %v4565_v32, 0  ;;  %vm4570_vm12 = vcmp.eq.s32.totalorder %v4565_v32, 2 }
 0x33f   : > { %v3317_v26 = vadd.f32 %v3311_v19, %v2681_v39  ;;  %vm4566_vm3 = vcmp.lt.s32.totalorder %v4565_v32, 2  ;;  %v4569_v49 = vsel %vm4567_vm11, %v9168_v18, %v2672_v4  ;;  %v4572_v10 = vsel %vm4570_vm12, %v2675_v61, %v9167_v5 }
 0x340   : > { %v4573_v29 = vsel %vm4566_vm3, %v4569_v49, %v4572_v10  ;;  %vm5190_vm14 = vcmp.lt.s32.totalorder %v5189_v37, 2  ;;  %vm5191_vm4 = vcmp.eq.s32.totalorder %v5189_v37, 0  ;;  %vm5194_vm8 = vcmp.eq.s32.totalorder %v5189_v37, 2 }
 0x341   : > { %v3323_v25 = vsub.f32 %v1742_v58, %v3317_v26  ;;  %v4574_v27 = vsel %vm2667_vm7, nan, %v4573_v29  ;;  %v5193_v44 = vsel %vm5191_vm4, %v9171_v22, %v3302_v53  ;;  %v5196_v16 = vsel %vm5194_vm8, %v3305_v35, %v9170_v30 }
 0x342   : > { %v3955_v4 = vsel %vm3948_vm6, %v3951_v31, %v3954_v59  ;;  %v4580_v5 = vmul.f32 %v4574_v27, %v9124_v52  ;;  %v5197_v18 = vsel %vm5190_vm14, %v5193_v44, %v5196_v16  ;;  %v3638_v61 = vand.u32 3, %v8629_v36 }
 0x343   : > { %v3329_v6 = vadd.f32 %v3323_v25, %v8625_v11  ;;  %v5198_v38 = vsel %vm3297_vm13, nan, %v5197_v18  ;;  %v4256_v15 = vand.u32 3, %v9176_v46  ;;  %v4880_v53 = vand.u32 3, %v9180_v34 }
 0x344   : > { %v5204_v33 = vmul.f32 %v5198_v38, %v9162_v40  ;;  %v1430_v30 = vadd.f32 %v1418_v1, %v8611_v54  ;;  %v3956_v22 = vsel %vm2043_vm2, nan, %v3955_v4  ;;  %vm3640_vm7 = vcmp.eq.s32.totalorder %v3638_v61, 0 }
 0x345   : > { %3335 = vst [vmem:[%s8275_s9 + $0x10] sm:$0xff] %v3329_v6  ;;  %vm4258_vm0 = vcmp.eq.s32.totalorder %v4256_v15, 0  ;;  %vm3643_vm6 = vcmp.eq.s32.totalorder %v3638_v61, 2  ;;  %vm4261_vm13 = vcmp.eq.s32.totalorder %v4256_v15, 2  ;;  %v3642_v46 = vsel %vm3640_vm7, %v9181_v21, %v1736_v12 }
 0x346   : > { %v5210_v35 = vadd.f32 %v5204_v33, %v4580_v5  ;;  %v4260_v45 = vsel %vm4258_vm0, %v9183_v41, %v2360_v24  ;;  %vm4257_vm1 = vcmp.lt.s32.totalorder %v4256_v15, 2  ;;  %v4263_v54 = vsel %vm4261_vm13, %v2363_v9, %v9179_v28  ;;  %v1177_v24 = vpop.f32.mrf.mxu1 }
 0x347   : > { %vm4882_vm5 = vcmp.eq.s32.totalorder %v4880_v53, 0  ;;  %v4264_v11 = vsel %vm4257_vm1, %v4260_v45, %v4263_v54  ;;  %vm4885_vm2 = vcmp.eq.s32.totalorder %v4880_v53, 2  ;;  %v3645_v34 = vsel %vm3643_vm6, %v1739_v62, %v9178_v57 }
 0x348   : > { %v5216_v8 = vsub.f32 %v3956_v22, %v5210_v35  ;;  %v4884_v36 = vsel %vm4882_vm5, %v9185_v2, %v2990_v50  ;;  %v4265_v12 = vsel %vm2355_vm15, nan, %v4264_v11  ;;  %vm4881_vm11 = vcmp.lt.s32.totalorder %v4880_v53, 2 }
 0x349   : > { %v4887_v28 = vsel %vm4885_vm2, %v2993_v48, %v9184_v51  ;;  %v4577_v9 = vmul.f32 %v4265_v12, %v9124_v52  ;;  %vm3639_vm12 = vcmp.lt.s32.totalorder %v3638_v61, 2  ;;  %v1376_v57 = vmul.f32 %v9124_v52, %v8542_v55 }
 0x34a   : > { %v5222_v41 = vadd.f32 %v5216_v8, %v1430_v30  ;;  %v4888_v50 = vsel %vm4881_vm11, %v4884_v36, %v4887_v28  ;;  %v1415_v21 = vmul.f32 %v9162_v40, %v1177_v24  ;;  %v3646_v62 = vsel %vm3639_vm12, %v3642_v46, %v3645_v34 }
 0x34b   : > { %v4889_v20 = vsel %vm2985_vm10, nan, %v4888_v50  ;;  %v3647_v2 = vsel %vm1731_vm9, nan, %v3646_v62 }
 0x34c   : > { %5228 = vst [vmem:[%s8275_s9 + $0x58] sm:$0xff] %v5222_v41  ;;  %v5201_v14 = vmul.f32 %v4889_v20, %v9162_v40  ;;  %v1427_v48 = vadd.f32 %v1415_v21, %v1376_v57 }
 0x34e   : > { %v5207_v51 = vadd.f32 %v5201_v14, %v4577_v9 }
 0x350   : > { %v5213_v0 = vsub.f32 %v3647_v2, %v5207_v51  ;;  %5236 = sbr.rel (!%p6184_p5) target bundleno = 881 (0x371), region = 48 }
 0x352   : > { %v5219_v60 = vadd.f32 %v5213_v0, %v1427_v48 }
 0x354   : > { %5225 = vst [vmem:[%s8275_s9 + $0x40] sm:$0xff] %v5219_v60 }
 0x355   : > { %s9194_s11 = smov (!%p5239_p12, %s5238_s11), 3 }
 0x356   : > { %s8747_s12 = sshll.u32 %s9194_s11, 9 }
 0x357   : > { %s5243_s28 = ssub.s32 1536, %s8747_s12 }
 0x358   : > { %5244 = vsyncadd %s8739_s10, %s5243_s28  ;;  %p5608_p13 = scmp.ne.s32.totalorder %s8747_s12, 0  ;;  %s5615_s7 = smul.u32 384, %s6167_s25 }
 0x359   : > { %s5610_s13 = sshll.u32 %s9194_s11, 3  ;;  %s5250_s14 = sshll.u32 %s8275_s9, 4  ;;  %s8760_s14 = int_to_ptr.vmem [resolvable:$true] %s5250_s14 }
 0x35a   : > { %s8758_s17 = scalar_lea.hbm %s8811_s6, %s5615_s7  ;;  %s6039_s18 = scalar_lea.vmem %s8760_s14, %s8747_s12 }
 0x35b   : > { %p6040_p0 = scmp.ne.s32.totalorder %s8760_s14, %s6039_s18  ;;  %s6108_s19 = smov [#allocation2]  }
 0x35c   : > { %s6043_s20 = sshll.u32 %s6108_s19, 4  ;;  %s6044_s20 = int_to_ptr.vmem [resolvable:$false] %s6043_s20 }
 0x35d   : > { %p6041_p1 = pnand %p6040_p0, %p5608_p13  ;;  %s6045_s25 = scalar_lea.vmem %s6044_s20, 3072 }
 0x35e   : > { %p6046_p3 = scmp.lt.s32.totalorder %s8760_s14, %s6044_s20  ;;  %p6047_p4 = scmp.lt.s32.totalorder %s6045_s25, %s6039_s18 }
 0x35f   : > { %p6042_p2 = pneg %p6041_p1 }
 0x360   : > { %p6048_p5 = por %p6047_p4, %p6046_p3 }
 0x362   : > { %p6049_p7 = pnand %p6048_p5, %p6042_p2 }
 0x364   : > { %6052 = shalt.err (!%p6049_p7)
}
 0x365   : > { %s6053_s26 = scalar_lea.hbm %s8758_s17, %s8747_s12  ;;  %s6057_s28 = scalar_lea.hbm %s8811_s6, 2560 }
 0x366   : > { %p6054_p8 = scmp.ne.s32.totalorder %s8758_s17, %s6053_s26  ;;  %p6058_p11 = scmp.lt.s32.totalorder %s8758_s17, %s8811_s6 }
 0x367   : > { %p6059_p12 = scmp.lt.s32.totalorder %s6057_s28, %s6053_s26 }
 0x368   : > { %p6055_p9 = pnand %p6054_p8, %p5608_p13 }
 0x369   : > { %p6060_p0 = por %p6059_p12, %p6058_p11 }
 0x36a   : > { %p6056_p10 = pneg %p6055_p9 }
 0x36c   : > { %p6061_p1 = pnand %p6060_p0, %p6056_p10 }
 0x36e   : > { %6064 = shalt.err (!%p6061_p1)
}
 0x36f   : > { %s6109_s16 = smov 384   ;;  %s6110_s18 = smov 640  }
 0x370   : > { %5256 = dma.vmem_to_hbm [thread:$0]  (%p5608_p13), %s8760_s14, %s8747_s12, %s8758_s17, %s8739_s10, %s6109_s16, %s6110_s18, %s5610_s13  }
 0x371 PF: > { %p5910_p2 = scmp.ge.s32.totalorder %s6099_s24, 2  ;;  %s5265_s19 = sand.u32 1, %s6087_s21  }
 0x372   : > { %s5266_s20 = scalar_lea.sflag [#allocation3], %s5265_s19 }
 0x373   : > { %p5907_p3 = pnand %p5910_p2, %p6188_p6 }
 0x375   : > { %p5908_p4 = pneg %p5907_p3 }
 0x377   : > { %6082 = dma.done.wait (%p5908_p4), %s5266_s20, 1536  }
 0x378   : > { %6084 = vsyncadd (%p5908_p4), %s5266_s20, 4294965760  ;;  %p16_p5 = scmp.ge.s32.totalorder %s6171_s27, 4   ;;  %s9187_s21 = smov %s6091_s22 }
 0x379   : > { %s9188_s22 = smov %s6095_s23  ;;  %s9189_s23 = smov %s6182_s30 }
 0x37a   : > { %s9190_s24 = smov %s6171_s27  ;;  %18 = sbr.rel (!%p16_p5) target bundleno = 3 (0x3), region = 85 }
 0x37f   :  { %5271 = vsyncpa [#allocation3], 1 }
 0x380   :  { %5273 = vsyncpa [#allocation3 + $0x1], 1 }

</bundles_post_ra>
